<compile_context>
chip_gen: v7x
topology: tpu7x:2x2x1
jax: 0.10.0
libtpu: 0.0.40
codegen_flags: <defaults>
</compile_context>

<pallas_src>
import jax
import jax.numpy as jnp
from jax.experimental import pallas as pl
from jax.experimental.pallas import tpu as pltpu


# ----------------------------------------------------------------------------
# Pallas kernel: NB batch rows per grid step.
# ----------------------------------------------------------------------------
def _personality_kernel(len_ref,                       # (NB, 1)             i32
                        x_ref,                         # (NB, T, CIN)        f32
                        w1_ref, b1_ref,                # (9*CIN, 4*128) bf16, (1, 4*128) f32
                        w2_0, w2_1, w2_2, w2_3,        # (k_i*128, C2)  bf16
                        b2_ref,                        # (4, 1, C2)          f32
                        wl1_ref, bl1_ref,              # (4*C2, C2) bf16, (1, C2) f32
                        wl2_ref, bl2_ref,              # (C2, NOUT) bf16, (1, NOUT) f32
                        out_ref):                      # (NB, NOUT)          f32
    NB, T, CIN = x_ref.shape
    NBT = NB * T
    n_branch = b2_ref.shape[0]
    C1P = w1_ref.shape[1] // n_branch                  # 128 lane-aligned branch width
    n_tap = w1_ref.shape[0] // CIN                     # 9 (centered tap window)
    PAD = n_tap // 2                                   # 4
    C2 = b2_ref.shape[2]

    # ---- masked_fill(t >= length, 0): one select, condition from an iota ----
    lens = len_ref[...].reshape(NB, 1, 1)              # (NB,1,1) i32
    t_iota = jax.lax.broadcasted_iota(jnp.int32, (NB, T, 1), 1)
    x = jnp.where(t_iota < lens, x_ref[...], 0.0)      # (NB, T, CIN) f32
    xb = x.astype(jnp.bfloat16)                        # cast once, assemble in bf16

    # ---- conv "same" padding: per-element zero rows on the time axis --------
    # (no cross-element leakage, no per-offset boundary masks).
    zx = jnp.zeros((NB, PAD, CIN), jnp.bfloat16)
    xz = jnp.concatenate([zx, xb, zx], axis=1)         # (NB, T+2*PAD, CIN)
    # in-register im2col: tap chunk j corresponds to offset d = j - PAD.
    x_cols = jnp.concatenate(
        [xz[:, j:j + T, :] for j in range(n_tap)], axis=2
    ).reshape(NBT, n_tap * CIN)                        # (NB*T, 9*CIN) bf16

    # ---- conv*_1 of all 4 branches fused into ONE matmul, ReLU in f32 -------
    h1 = jnp.dot(x_cols, w1_ref[...], preferred_element_type=jnp.float32)
    h1 = jnp.maximum(h1 + b1_ref[...], 0.0)            # (NB*T, 4*128) f32
    h1b = h1.astype(jnp.bfloat16).reshape(NB, T, n_branch * C1P)

    zh = jnp.zeros((NB, PAD, n_branch * C1P), jnp.bfloat16)
    hz = jnp.concatenate([zh, h1b, zh], axis=1)        # (NB, T+2*PAD, 512) bf16

    # ---- conv*_2 per branch; 128-lane-aligned channel blocks (dropout = id) -
    pooled = []
    for i, w2 in enumerate((w2_0, w2_1, w2_2, w2_3)):
        ksz = w2.shape[0] // C1P                       # 3 / 5 / 7 / 9
        p = ksz // 2
        h_cols = jnp.concatenate(
            [hz[:, PAD - p + u:PAD - p + u + T, i * C1P:(i + 1) * C1P]
             for u in range(ksz)], axis=2
        ).reshape(NBT, ksz * C1P)                      # (NB*T, k_i*128) bf16
        h2 = jnp.dot(h_cols, w2[...], preferred_element_type=jnp.float32)
        h2 = jnp.maximum(h2 + b2_ref[i], 0.0)          # (NB*T, C2) f32
        # AdaptiveAvgPool1d(1): mean over the full time axis.
        pooled.append(jnp.sum(h2.reshape(NB, T, C2), axis=1) * (1.0 / T))

    # ---- Linear(4*C2 -> C2) then Linear(C2 -> nb_classes) -------------------
    feat = jnp.concatenate(pooled, axis=-1)            # (NB, 4*C2) f32
    z1 = jnp.dot(feat.astype(jnp.bfloat16), wl1_ref[...],
                 preferred_element_type=jnp.float32) + bl1_ref[...]
    out = jnp.dot(z1.astype(jnp.bfloat16), wl2_ref[...],
                  preferred_element_type=jnp.float32) + bl2_ref[...]
    out_ref[...] = out                                 # lane-dense (NB, 128) write


# ----------------------------------------------------------------------------
# Host-side wrapper: weight packing, batch stacking, BlockSpecs.
# ----------------------------------------------------------------------------
def personality_forward(action_units, lengths, timesteps, params,
                        rows_per_step=None):
    del timesteps                                      # unused by torch forward
    B, T, CIN = action_units.shape
    ksizes = tuple(int(w.shape[0]) for w in params["W1"])
    n_branch = len(ksizes)
    assert n_branch == 4
    n_tap = max(ksizes)
    pad = n_tap // 2
    C1 = int(params["W1"][0].shape[-1])
    C2 = int(params["W2"][0].shape[-1])
    nb_classes = int(params["Wl2"].shape[-1])
    NOUT = ((nb_classes + 127) // 128) * 128           # lane-dense output slab
    C1P = ((C1 + 127) // 128) * 128                    # lane-aligned branch width

    # NB heuristic: fill the MXU row dimension (NB*T ~= 512). For small B use
    # a single fat step (splitting only starves M); when splitting, keep NB a
    # multiple of 8 for full-sublane blocks / unmasked output stores.
    if rows_per_step is None:
        target = max(1, 512 // T)
        if B <= target:
            rows_per_step = B
        elif target >= 8:
            rows_per_step = (target // 8) * 8
        else:
            rows_per_step = target
    NB = rows_per_step
    GB = pl.cdiv(B, NB)
    Bpad = GB * NB

    x = jnp.zeros((Bpad, T, CIN), jnp.float32).at[:B].set(
        action_units.astype(jnp.float32))
    lens = jnp.zeros((Bpad, 1), jnp.int32).at[:B, 0].set(lengths.astype(jnp.int32))

    # ---- pack weights: bf16 MXU operands, f32 biases -------------------------
    # conv1: embed each branch's taps into a centered 9-tap window, pad the
    # output channels of each branch to a 128-lane block, fuse branches along
    # the output axis -> one (9*CIN, 4*128) matrix.
    w1_cols = []
    for i, s in enumerate(ksizes):
        w = jnp.zeros((n_tap, CIN, C1P), jnp.float32)
        w = w.at[pad - s // 2: pad - s // 2 + s, :, :C1].set(params["W1"][i])
        w1_cols.append(w.reshape(n_tap * CIN, C1P))
    W1p = jnp.concatenate(w1_cols, axis=1).astype(jnp.bfloat16)     # (9*CIN, 4*128)
    B1p = jnp.zeros((1, n_branch * C1P), jnp.float32)
    for i in range(n_branch):
        B1p = B1p.at[0, i * C1P:i * C1P + C1].set(params["B1"][i])

    # conv2: exact tap support per branch, input-channel blocks padded to the
    # 128-lane layout (the padded rows multiply zero activations).
    W2p = []
    for i, s in enumerate(ksizes):
        w = jnp.zeros((s, C1P, C2), jnp.float32)
        w = w.at[:, :C1, :].set(params["W2"][i])
        W2p.append(w.reshape(s * C1P, C2).astype(jnp.bfloat16))
    B2p = jnp.stack([params["B2"][i].reshape(1, C2)
                     for i in range(n_branch)], axis=0).astype(jnp.float32)

    Wl1p = params["Wl1"].astype(jnp.bfloat16)                       # (4*C2, C2)
    bl1p = params["bl1"].reshape(1, C2).astype(jnp.float32)
    Wl2p = jnp.zeros((C2, NOUT), jnp.float32).at[:, :nb_classes].set(
        params["Wl2"]).astype(jnp.bfloat16)
    bl2p = jnp.zeros((1, NOUT), jnp.float32).at[:, :nb_classes].set(
        params["bl2"].reshape(1, nb_classes))

    def _full(a):
        nd = a.ndim
        return pl.BlockSpec(a.shape, lambda g, nd=nd: (0,) * nd)

    grid_spec = pltpu.PrefetchScalarGridSpec(
        num_scalar_prefetch=0,
        grid=(GB,),
        in_specs=[
            pl.BlockSpec((NB, 1), lambda g: (g, 0)),                # lengths
            pl.BlockSpec((NB, T, CIN), lambda g: (g, 0, 0)),        # action_units
            _full(W1p), _full(B1p),
            _full(W2p[0]), _full(W2p[1]), _full(W2p[2]), _full(W2p[3]),
            _full(B2p),
            _full(Wl1p), _full(bl1p),
            _full(Wl2p), _full(bl2p),
        ],
        out_specs=pl.BlockSpec((NB, NOUT), lambda g: (g, 0)),
    )

    out = pl.pallas_call(
        _personality_kernel,
        out_shape=jax.ShapeDtypeStruct((Bpad, NOUT), jnp.float32),
        grid_spec=grid_spec,
        compiler_params=pltpu.CompilerParams(
            dimension_semantics=("parallel",)),
    )(lens, x, W1p, B1p, W2p[0], W2p[1], W2p[2], W2p[3], B2p,
      Wl1p, bl1p, Wl2p, bl2p)

    return out[:B, :nb_classes]


# ----------------------------------------------------------------------------
# Deterministic synthetic parameters (shapes from the module __init__).
# ----------------------------------------------------------------------------
def make_params(key, cin=17, c1=64, c2=128, nb_classes=25, ksizes=(3, 5, 7, 9)):
    n_branch = len(ksizes)
    keys = jax.random.split(key, 4 * n_branch + 4)
    W1, B1, W2, B2 = [], [], [], []
    ki = 0
    for s in ksizes:
        W1.append(0.10 * jax.random.normal(keys[ki], (s, cin, c1), jnp.float32)); ki += 1
        B1.append(0.10 * jax.random.normal(keys[ki], (c1,), jnp.float32)); ki += 1
        W2.append(0.05 * jax.random.normal(keys[ki], (s, c1, c2), jnp.float32)); ki += 1
        B2.append(0.10 * jax.random.normal(keys[ki], (c2,), jnp.float32)); ki += 1
    Wl1 = 0.05 * jax.random.normal(keys[ki], (n_branch * c2, c2), jnp.float32); ki += 1
    bl1 = 0.10 * jax.random.normal(keys[ki], (c2,), jnp.float32); ki += 1
    Wl2 = 0.05 * jax.random.normal(keys[ki], (c2, nb_classes), jnp.float32); ki += 1
    bl2 = 0.10 * jax.random.normal(keys[ki], (nb_classes,), jnp.float32); ki += 1
    return dict(W1=W1, B1=B1, W2=W2, B2=B2, Wl1=Wl1, bl1=bl1, Wl2=Wl2, bl2=bl2)


# ----------------------------------------------------------------------------
# Pure-JAX f32 reference (pad + slice formulation) for verification.
# ----------------------------------------------------------------------------
def reference_forward(action_units, lengths, params):
    B, T, CIN = action_units.shape
    keep = jnp.arange(T)[None, :, None] < lengths[:, None, None]
    y = jnp.where(keep, action_units.astype(jnp.float32), 0.0)     # (B, T, CIN)

    def conv_same(z, w, bias):                                     # w: (s, Cin, Cout)
        s = w.shape[0]
        p = s // 2
        zp = jnp.pad(z, ((0, 0), (p, p), (0, 0)))
        out = jnp.zeros((z.shape[0], z.shape[1], w.shape[2]), jnp.float32)
        for j in range(s):
            out = out + jnp.einsum("btc,cd->btd", zp[:, j:j + T, :], w[j])
        return out + bias[None, None, :]

    feats = []
    for i in range(len(params["W1"])):
        h1 = jax.nn.relu(conv_same(y, params["W1"][i], params["B1"][i]))
        h2 = jax.nn.relu(conv_same(h1, params["W2"][i], params["B2"][i]))
        feats.append(jnp.mean(h2, axis=1))                          # (B, 128)
    feat = jnp.concatenate(feats, axis=-1)                          # (B, 512)
    z = feat @ params["Wl1"] + params["bl1"]
    return z @ params["Wl2"] + params["bl2"]


if __name__ == "__main__":
    key = jax.random.PRNGKey(0)
    k_x, k_p = jax.random.split(key)

    B, T, AU_DIM = 2, 16, 17          # max_nb_variables = au_dim = 17 (fixed by convs)
    action_units = jax.random.normal(k_x, (B, T, AU_DIM), jnp.float32)
    lengths = jnp.array([10, 16], dtype=jnp.int32)
    timesteps = jnp.arange(T, dtype=jnp.int32)   # unused by the torch forward

    params = make_params(k_p, cin=AU_DIM)

    out = personality_forward(action_units, lengths, timesteps, params)
    out = jax.block_until_ready(out)

    ref = reference_forward(action_units, lengths, params)
    assert out.shape == (B, 25), out.shape
    # bf16 MXU operands with f32 accumulation -> a few-percent tolerance.
    assert jnp.allclose(out, ref, atol=5e-2, rtol=5e-2), \
        f"max abs diff {jnp.max(jnp.abs(out - ref))}"

    print("KERNEL_OK")
</pallas_src>

<mosaic_0001>
module attributes {stable_mosaic.version = 11 : i64} {
  func.func @_personality_kernel(%arg0: i32, %arg1: memref<2x1xi32, #tpu.memory_space<vmem>>, %arg2: memref<2x16x17xf32, #tpu.memory_space<vmem>>, %arg3: memref<153x512xbf16, #tpu.memory_space<vmem>>, %arg4: memref<1x512xf32, #tpu.memory_space<vmem>>, %arg5: memref<384x128xbf16, #tpu.memory_space<vmem>>, %arg6: memref<640x128xbf16, #tpu.memory_space<vmem>>, %arg7: memref<896x128xbf16, #tpu.memory_space<vmem>>, %arg8: memref<1152x128xbf16, #tpu.memory_space<vmem>>, %arg9: memref<4x1x128xf32, #tpu.memory_space<vmem>>, %arg10: memref<512x128xbf16, #tpu.memory_space<vmem>>, %arg11: memref<1x128xf32, #tpu.memory_space<vmem>>, %arg12: memref<128x128xbf16, #tpu.memory_space<vmem>>, %arg13: memref<1x128xf32, #tpu.memory_space<vmem>>, %arg14: memref<2x128xf32, #tpu.memory_space<vmem>>) attributes {dimension_semantics = [#tpu.dimension_semantics<parallel>], iteration_bounds = array<i64: 1>, scalar_prefetch = 0 : i64, scratch_operands = 0 : i64, tpu.core_type = #tpu.core_type<tc>, window_params = [{transform_indices = @transform_0, window_bounds = array<i64: 2, 1>}, {transform_indices = @transform_1, window_bounds = array<i64: 2, 16, 17>}, {pipeline_mode = #tpu.pipeline_mode<synchronous>, transform_indices = @transform_2, window_bounds = array<i64: 153, 512>}, {pipeline_mode = #tpu.pipeline_mode<synchronous>, transform_indices = @transform_3, window_bounds = array<i64: 1, 512>}, {pipeline_mode = #tpu.pipeline_mode<synchronous>, transform_indices = @transform_4, window_bounds = array<i64: 384, 128>}, {pipeline_mode = #tpu.pipeline_mode<synchronous>, transform_indices = @transform_5, window_bounds = array<i64: 640, 128>}, {pipeline_mode = #tpu.pipeline_mode<synchronous>, transform_indices = @transform_6, window_bounds = array<i64: 896, 128>}, {pipeline_mode = #tpu.pipeline_mode<synchronous>, transform_indices = @transform_7, window_bounds = array<i64: 1152, 128>}, {pipeline_mode = #tpu.pipeline_mode<synchronous>, transform_indices = @transform_8, window_bounds = array<i64: 4, 1, 128>}, {pipeline_mode = #tpu.pipeline_mode<synchronous>, transform_indices = @transform_9, window_bounds = array<i64: 512, 128>}, {pipeline_mode = #tpu.pipeline_mode<synchronous>, transform_indices = @transform_10, window_bounds = array<i64: 1, 128>}, {pipeline_mode = #tpu.pipeline_mode<synchronous>, transform_indices = @transform_11, window_bounds = array<i64: 128, 128>}, {pipeline_mode = #tpu.pipeline_mode<synchronous>, transform_indices = @transform_12, window_bounds = array<i64: 1, 128>}, {transform_indices = @transform_13, window_bounds = array<i64: 2, 128>}]} {
    %c0 = arith.constant 0 : index
    %c0_0 = arith.constant 0 : index
    %0 = vector.load %arg1[%c0, %c0_0] : memref<2x1xi32, #tpu.memory_space<vmem>>, vector<2x1xi32>
    %1 = vector.shape_cast %0 : vector<2x1xi32> to vector<2x1x1xi32>
    %2 = tpu.iota {dimensions = array<i32: 1>} : vector<2x16x1xi32>
    %3 = vector.broadcast %1 : vector<2x1x1xi32> to vector<2x16x1xi32>
    %4 = arith.cmpi slt, %2, %3 : vector<2x16x1xi32>
    %c0_1 = arith.constant 0 : index
    %c0_2 = arith.constant 0 : index
    %c0_3 = arith.constant 0 : index
    %5 = vector.load %arg2[%c0_1, %c0_2, %c0_3] : memref<2x16x17xf32, #tpu.memory_space<vmem>>, vector<2x16x17xf32>
    %cst = arith.constant 0.000000e+00 : f32
    %6 = vector.shape_cast %4 : vector<2x16x1xi1> to vector<2x16x1xi1>
    %7 = vector.broadcast %6 : vector<2x16x1xi1> to vector<2x16x17xi1>
    %8 = vector.broadcast %cst : f32 to vector<2x16x17xf32>
    %9 = arith.select %7, %5, %8 : vector<2x16x17xi1>, vector<2x16x17xf32>
    %10 = arith.truncf %9 : vector<2x16x17xf32> to vector<2x16x17xbf16>
    %cst_4 = arith.constant 0.000000e+00 : bf16
    %11 = vector.broadcast %cst_4 : bf16 to vector<2x4x17xbf16>
    %12 = tpu.concatenate %11, %10, %11 in 1 : vector<2x4x17xbf16>, vector<2x16x17xbf16>, vector<2x4x17xbf16> -> vector<2x24x17xbf16>
    %13 = vector.extract_strided_slice %12 {offsets = [0, 0, 0], sizes = [2, 16, 17], strides = [1, 1, 1]} : vector<2x24x17xbf16> to vector<2x16x17xbf16>
    %14 = vector.extract_strided_slice %12 {offsets = [0, 1, 0], sizes = [2, 16, 17], strides = [1, 1, 1]} : vector<2x24x17xbf16> to vector<2x16x17xbf16>
    %15 = vector.extract_strided_slice %12 {offsets = [0, 2, 0], sizes = [2, 16, 17], strides = [1, 1, 1]} : vector<2x24x17xbf16> to vector<2x16x17xbf16>
    %16 = vector.extract_strided_slice %12 {offsets = [0, 3, 0], sizes = [2, 16, 17], strides = [1, 1, 1]} : vector<2x24x17xbf16> to vector<2x16x17xbf16>
    %17 = vector.extract_strided_slice %12 {offsets = [0, 4, 0], sizes = [2, 16, 17], strides = [1, 1, 1]} : vector<2x24x17xbf16> to vector<2x16x17xbf16>
    %18 = vector.extract_strided_slice %12 {offsets = [0, 5, 0], sizes = [2, 16, 17], strides = [1, 1, 1]} : vector<2x24x17xbf16> to vector<2x16x17xbf16>
    %19 = vector.extract_strided_slice %12 {offsets = [0, 6, 0], sizes = [2, 16, 17], strides = [1, 1, 1]} : vector<2x24x17xbf16> to vector<2x16x17xbf16>
    %20 = vector.extract_strided_slice %12 {offsets = [0, 7, 0], sizes = [2, 16, 17], strides = [1, 1, 1]} : vector<2x24x17xbf16> to vector<2x16x17xbf16>
    %21 = vector.extract_strided_slice %12 {offsets = [0, 8, 0], sizes = [2, 16, 17], strides = [1, 1, 1]} : vector<2x24x17xbf16> to vector<2x16x17xbf16>
    %22 = tpu.concatenate %13, %14, %15, %16, %17, %18, %19, %20, %21 in 2 : vector<2x16x17xbf16>, vector<2x16x17xbf16>, vector<2x16x17xbf16>, vector<2x16x17xbf16>, vector<2x16x17xbf16>, vector<2x16x17xbf16>, vector<2x16x17xbf16>, vector<2x16x17xbf16>, vector<2x16x17xbf16> -> vector<2x16x153xbf16>
    %23 = vector.shape_cast %22 : vector<2x16x153xbf16> to vector<32x153xbf16>
    %c0_5 = arith.constant 0 : index
    %c0_6 = arith.constant 0 : index
    %24 = vector.load %arg3[%c0_5, %c0_6] : memref<153x512xbf16, #tpu.memory_space<vmem>>, vector<153x512xbf16>
    %cst_7 = arith.constant dense<0.000000e+00> : vector<32x512xf32>
    %25 = tpu.matmul %23, %24, %cst_7 {dimension_numbers = #tpu.dot_dimension_numbers<[1], [0], [0], [1], [0, 0, 1, 1], [], []>} : vector<32x153xbf16>, vector<153x512xbf16>, vector<32x512xf32> -> vector<32x512xf32>
    %c0_8 = arith.constant 0 : index
    %c0_9 = arith.constant 0 : index
    %26 = vector.load %arg4[%c0_8, %c0_9] : memref<1x512xf32, #tpu.memory_space<vmem>>, vector<1x512xf32>
    %27 = vector.broadcast %26 : vector<1x512xf32> to vector<32x512xf32>
    %28 = arith.addf %25, %27 : vector<32x512xf32>
    %cst_10 = arith.constant 0.000000e+00 : f32
    %29 = vector.broadcast %cst_10 : f32 to vector<32x512xf32>
    %30 = arith.maximumf %28, %29 : vector<32x512xf32>
    %31 = arith.truncf %30 : vector<32x512xf32> to vector<32x512xbf16>
    %32 = vector.shape_cast %31 : vector<32x512xbf16> to vector<2x16x512xbf16>
    %cst_11 = arith.constant 0.000000e+00 : bf16
    %33 = vector.broadcast %cst_11 : bf16 to vector<2x4x512xbf16>
    %34 = tpu.concatenate %33, %32, %33 in 1 : vector<2x4x512xbf16>, vector<2x16x512xbf16>, vector<2x4x512xbf16> -> vector<2x24x512xbf16>
    %35 = vector.extract_strided_slice %34 {offsets = [0, 3, 0], sizes = [2, 16, 128], strides = [1, 1, 1]} : vector<2x24x512xbf16> to vector<2x16x128xbf16>
    %36 = vector.extract_strided_slice %34 {offsets = [0, 4, 0], sizes = [2, 16, 128], strides = [1, 1, 1]} : vector<2x24x512xbf16> to vector<2x16x128xbf16>
    %37 = vector.extract_strided_slice %34 {offsets = [0, 5, 0], sizes = [2, 16, 128], strides = [1, 1, 1]} : vector<2x24x512xbf16> to vector<2x16x128xbf16>
    %38 = tpu.concatenate %35, %36, %37 in 2 : vector<2x16x128xbf16>, vector<2x16x128xbf16>, vector<2x16x128xbf16> -> vector<2x16x384xbf16>
    %39 = vector.shape_cast %38 : vector<2x16x384xbf16> to vector<32x384xbf16>
    %c0_12 = arith.constant 0 : index
    %c0_13 = arith.constant 0 : index
    %40 = vector.load %arg5[%c0_12, %c0_13] : memref<384x128xbf16, #tpu.memory_space<vmem>>, vector<384x128xbf16>
    %cst_14 = arith.constant dense<0.000000e+00> : vector<32x128xf32>
    %41 = tpu.matmul %39, %40, %cst_14 {dimension_numbers = #tpu.dot_dimension_numbers<[1], [0], [0], [1], [0, 0, 1, 1], [], []>} : vector<32x384xbf16>, vector<384x128xbf16>, vector<32x128xf32> -> vector<32x128xf32>
    %c0_15 = arith.constant 0 : index
    %c0_16 = arith.constant 0 : index
    %c0_17 = arith.constant 0 : index
    %42 = vector.load %arg9[%c0_15, %c0_16, %c0_17] : memref<4x1x128xf32, #tpu.memory_space<vmem>>, vector<1x1x128xf32>
    %43 = vector.shape_cast %42 : vector<1x1x128xf32> to vector<1x128xf32>
    %44 = vector.broadcast %43 : vector<1x128xf32> to vector<32x128xf32>
    %45 = arith.addf %41, %44 : vector<32x128xf32>
    %cst_18 = arith.constant 0.000000e+00 : f32
    %46 = vector.broadcast %cst_18 : f32 to vector<32x128xf32>
    %47 = arith.maximumf %45, %46 : vector<32x128xf32>
    %48 = vector.shape_cast %47 : vector<32x128xf32> to vector<2x16x128xf32>
    %cst_19 = arith.constant dense<0.000000e+00> : vector<2x128xf32>
    %49 = vector.multi_reduction <add>, %48, %cst_19 [1] : vector<2x16x128xf32> to vector<2x128xf32>
    %cst_20 = arith.constant 6.250000e-02 : f32
    %50 = vector.broadcast %cst_20 : f32 to vector<2x128xf32>
    %51 = arith.mulf %49, %50 : vector<2x128xf32>
    %52 = vector.extract_strided_slice %34 {offsets = [0, 2, 128], sizes = [2, 16, 128], strides = [1, 1, 1]} : vector<2x24x512xbf16> to vector<2x16x128xbf16>
    %53 = vector.extract_strided_slice %34 {offsets = [0, 3, 128], sizes = [2, 16, 128], strides = [1, 1, 1]} : vector<2x24x512xbf16> to vector<2x16x128xbf16>
    %54 = vector.extract_strided_slice %34 {offsets = [0, 4, 128], sizes = [2, 16, 128], strides = [1, 1, 1]} : vector<2x24x512xbf16> to vector<2x16x128xbf16>
    %55 = vector.extract_strided_slice %34 {offsets = [0, 5, 128], sizes = [2, 16, 128], strides = [1, 1, 1]} : vector<2x24x512xbf16> to vector<2x16x128xbf16>
    %56 = vector.extract_strided_slice %34 {offsets = [0, 6, 128], sizes = [2, 16, 128], strides = [1, 1, 1]} : vector<2x24x512xbf16> to vector<2x16x128xbf16>
    %57 = tpu.concatenate %52, %53, %54, %55, %56 in 2 : vector<2x16x128xbf16>, vector<2x16x128xbf16>, vector<2x16x128xbf16>, vector<2x16x128xbf16>, vector<2x16x128xbf16> -> vector<2x16x640xbf16>
    %58 = vector.shape_cast %57 : vector<2x16x640xbf16> to vector<32x640xbf16>
    %c0_21 = arith.constant 0 : index
    %c0_22 = arith.constant 0 : index
    %59 = vector.load %arg6[%c0_21, %c0_22] : memref<640x128xbf16, #tpu.memory_space<vmem>>, vector<640x128xbf16>
    %cst_23 = arith.constant dense<0.000000e+00> : vector<32x128xf32>
    %60 = tpu.matmul %58, %59, %cst_23 {dimension_numbers = #tpu.dot_dimension_numbers<[1], [0], [0], [1], [0, 0, 1, 1], [], []>} : vector<32x640xbf16>, vector<640x128xbf16>, vector<32x128xf32> -> vector<32x128xf32>
    %c1 = arith.constant 1 : index
    %c0_24 = arith.constant 0 : index
    %c0_25 = arith.constant 0 : index
    %61 = vector.load %arg9[%c1, %c0_24, %c0_25] : memref<4x1x128xf32, #tpu.memory_space<vmem>>, vector<1x1x128xf32>
    %62 = vector.shape_cast %61 : vector<1x1x128xf32> to vector<1x128xf32>
    %63 = vector.broadcast %62 : vector<1x128xf32> to vector<32x128xf32>
    %64 = arith.addf %60, %63 : vector<32x128xf32>
    %cst_26 = arith.constant 0.000000e+00 : f32
    %65 = vector.broadcast %cst_26 : f32 to vector<32x128xf32>
    %66 = arith.maximumf %64, %65 : vector<32x128xf32>
    %67 = vector.shape_cast %66 : vector<32x128xf32> to vector<2x16x128xf32>
    %cst_27 = arith.constant dense<0.000000e+00> : vector<2x128xf32>
    %68 = vector.multi_reduction <add>, %67, %cst_27 [1] : vector<2x16x128xf32> to vector<2x128xf32>
    %cst_28 = arith.constant 6.250000e-02 : f32
    %69 = vector.broadcast %cst_28 : f32 to vector<2x128xf32>
    %70 = arith.mulf %68, %69 : vector<2x128xf32>
    %71 = vector.extract_strided_slice %34 {offsets = [0, 1, 256], sizes = [2, 16, 128], strides = [1, 1, 1]} : vector<2x24x512xbf16> to vector<2x16x128xbf16>
    %72 = vector.extract_strided_slice %34 {offsets = [0, 2, 256], sizes = [2, 16, 128], strides = [1, 1, 1]} : vector<2x24x512xbf16> to vector<2x16x128xbf16>
    %73 = vector.extract_strided_slice %34 {offsets = [0, 3, 256], sizes = [2, 16, 128], strides = [1, 1, 1]} : vector<2x24x512xbf16> to vector<2x16x128xbf16>
    %74 = vector.extract_strided_slice %34 {offsets = [0, 4, 256], sizes = [2, 16, 128], strides = [1, 1, 1]} : vector<2x24x512xbf16> to vector<2x16x128xbf16>
    %75 = vector.extract_strided_slice %34 {offsets = [0, 5, 256], sizes = [2, 16, 128], strides = [1, 1, 1]} : vector<2x24x512xbf16> to vector<2x16x128xbf16>
    %76 = vector.extract_strided_slice %34 {offsets = [0, 6, 256], sizes = [2, 16, 128], strides = [1, 1, 1]} : vector<2x24x512xbf16> to vector<2x16x128xbf16>
    %77 = vector.extract_strided_slice %34 {offsets = [0, 7, 256], sizes = [2, 16, 128], strides = [1, 1, 1]} : vector<2x24x512xbf16> to vector<2x16x128xbf16>
    %78 = tpu.concatenate %71, %72, %73, %74, %75, %76, %77 in 2 : vector<2x16x128xbf16>, vector<2x16x128xbf16>, vector<2x16x128xbf16>, vector<2x16x128xbf16>, vector<2x16x128xbf16>, vector<2x16x128xbf16>, vector<2x16x128xbf16> -> vector<2x16x896xbf16>
    %79 = vector.shape_cast %78 : vector<2x16x896xbf16> to vector<32x896xbf16>
    %c0_29 = arith.constant 0 : index
    %c0_30 = arith.constant 0 : index
    %80 = vector.load %arg7[%c0_29, %c0_30] : memref<896x128xbf16, #tpu.memory_space<vmem>>, vector<896x128xbf16>
    %cst_31 = arith.constant dense<0.000000e+00> : vector<32x128xf32>
    %81 = tpu.matmul %79, %80, %cst_31 {dimension_numbers = #tpu.dot_dimension_numbers<[1], [0], [0], [1], [0, 0, 1, 1], [], []>} : vector<32x896xbf16>, vector<896x128xbf16>, vector<32x128xf32> -> vector<32x128xf32>
    %c2 = arith.constant 2 : index
    %c0_32 = arith.constant 0 : index
    %c0_33 = arith.constant 0 : index
    %82 = vector.load %arg9[%c2, %c0_32, %c0_33] : memref<4x1x128xf32, #tpu.memory_space<vmem>>, vector<1x1x128xf32>
    %83 = vector.shape_cast %82 : vector<1x1x128xf32> to vector<1x128xf32>
    %84 = vector.broadcast %83 : vector<1x128xf32> to vector<32x128xf32>
    %85 = arith.addf %81, %84 : vector<32x128xf32>
    %cst_34 = arith.constant 0.000000e+00 : f32
    %86 = vector.broadcast %cst_34 : f32 to vector<32x128xf32>
    %87 = arith.maximumf %85, %86 : vector<32x128xf32>
    %88 = vector.shape_cast %87 : vector<32x128xf32> to vector<2x16x128xf32>
    %cst_35 = arith.constant dense<0.000000e+00> : vector<2x128xf32>
    %89 = vector.multi_reduction <add>, %88, %cst_35 [1] : vector<2x16x128xf32> to vector<2x128xf32>
    %cst_36 = arith.constant 6.250000e-02 : f32
    %90 = vector.broadcast %cst_36 : f32 to vector<2x128xf32>
    %91 = arith.mulf %89, %90 : vector<2x128xf32>
    %92 = vector.extract_strided_slice %34 {offsets = [0, 0, 384], sizes = [2, 16, 128], strides = [1, 1, 1]} : vector<2x24x512xbf16> to vector<2x16x128xbf16>
    %93 = vector.extract_strided_slice %34 {offsets = [0, 1, 384], sizes = [2, 16, 128], strides = [1, 1, 1]} : vector<2x24x512xbf16> to vector<2x16x128xbf16>
    %94 = vector.extract_strided_slice %34 {offsets = [0, 2, 384], sizes = [2, 16, 128], strides = [1, 1, 1]} : vector<2x24x512xbf16> to vector<2x16x128xbf16>
    %95 = vector.extract_strided_slice %34 {offsets = [0, 3, 384], sizes = [2, 16, 128], strides = [1, 1, 1]} : vector<2x24x512xbf16> to vector<2x16x128xbf16>
    %96 = vector.extract_strided_slice %34 {offsets = [0, 4, 384], sizes = [2, 16, 128], strides = [1, 1, 1]} : vector<2x24x512xbf16> to vector<2x16x128xbf16>
    %97 = vector.extract_strided_slice %34 {offsets = [0, 5, 384], sizes = [2, 16, 128], strides = [1, 1, 1]} : vector<2x24x512xbf16> to vector<2x16x128xbf16>
    %98 = vector.extract_strided_slice %34 {offsets = [0, 6, 384], sizes = [2, 16, 128], strides = [1, 1, 1]} : vector<2x24x512xbf16> to vector<2x16x128xbf16>
    %99 = vector.extract_strided_slice %34 {offsets = [0, 7, 384], sizes = [2, 16, 128], strides = [1, 1, 1]} : vector<2x24x512xbf16> to vector<2x16x128xbf16>
    %100 = vector.extract_strided_slice %34 {offsets = [0, 8, 384], sizes = [2, 16, 128], strides = [1, 1, 1]} : vector<2x24x512xbf16> to vector<2x16x128xbf16>
    %101 = tpu.concatenate %92, %93, %94, %95, %96, %97, %98, %99, %100 in 2 : vector<2x16x128xbf16>, vector<2x16x128xbf16>, vector<2x16x128xbf16>, vector<2x16x128xbf16>, vector<2x16x128xbf16>, vector<2x16x128xbf16>, vector<2x16x128xbf16>, vector<2x16x128xbf16>, vector<2x16x128xbf16> -> vector<2x16x1152xbf16>
    %102 = vector.shape_cast %101 : vector<2x16x1152xbf16> to vector<32x1152xbf16>
    %c0_37 = arith.constant 0 : index
    %c0_38 = arith.constant 0 : index
    %103 = vector.load %arg8[%c0_37, %c0_38] : memref<1152x128xbf16, #tpu.memory_space<vmem>>, vector<1152x128xbf16>
    %cst_39 = arith.constant dense<0.000000e+00> : vector<32x128xf32>
    %104 = tpu.matmul %102, %103, %cst_39 {dimension_numbers = #tpu.dot_dimension_numbers<[1], [0], [0], [1], [0, 0, 1, 1], [], []>} : vector<32x1152xbf16>, vector<1152x128xbf16>, vector<32x128xf32> -> vector<32x128xf32>
    %c3 = arith.constant 3 : index
    %c0_40 = arith.constant 0 : index
    %c0_41 = arith.constant 0 : index
    %105 = vector.load %arg9[%c3, %c0_40, %c0_41] : memref<4x1x128xf32, #tpu.memory_space<vmem>>, vector<1x1x128xf32>
    %106 = vector.shape_cast %105 : vector<1x1x128xf32> to vector<1x128xf32>
    %107 = vector.broadcast %106 : vector<1x128xf32> to vector<32x128xf32>
    %108 = arith.addf %104, %107 : vector<32x128xf32>
    %cst_42 = arith.constant 0.000000e+00 : f32
    %109 = vector.broadcast %cst_42 : f32 to vector<32x128xf32>
    %110 = arith.maximumf %108, %109 : vector<32x128xf32>
    %111 = vector.shape_cast %110 : vector<32x128xf32> to vector<2x16x128xf32>
    %cst_43 = arith.constant dense<0.000000e+00> : vector<2x128xf32>
    %112 = vector.multi_reduction <add>, %111, %cst_43 [1] : vector<2x16x128xf32> to vector<2x128xf32>
    %cst_44 = arith.constant 6.250000e-02 : f32
    %113 = vector.broadcast %cst_44 : f32 to vector<2x128xf32>
    %114 = arith.mulf %112, %113 : vector<2x128xf32>
    %115 = tpu.concatenate %51, %70, %91, %114 in 1 : vector<2x128xf32>, vector<2x128xf32>, vector<2x128xf32>, vector<2x128xf32> -> vector<2x512xf32>
    %116 = arith.truncf %115 : vector<2x512xf32> to vector<2x512xbf16>
    %c0_45 = arith.constant 0 : index
    %c0_46 = arith.constant 0 : index
    %117 = vector.load %arg10[%c0_45, %c0_46] : memref<512x128xbf16, #tpu.memory_space<vmem>>, vector<512x128xbf16>
    %cst_47 = arith.constant dense<0.000000e+00> : vector<2x128xf32>
    %118 = tpu.matmul %116, %117, %cst_47 {dimension_numbers = #tpu.dot_dimension_numbers<[1], [0], [0], [1], [0, 0, 1, 1], [], []>} : vector<2x512xbf16>, vector<512x128xbf16>, vector<2x128xf32> -> vector<2x128xf32>
    %c0_48 = arith.constant 0 : index
    %c0_49 = arith.constant 0 : index
    %119 = vector.load %arg11[%c0_48, %c0_49] : memref<1x128xf32, #tpu.memory_space<vmem>>, vector<1x128xf32>
    %120 = vector.broadcast %119 : vector<1x128xf32> to vector<2x128xf32>
    %121 = arith.addf %118, %120 : vector<2x128xf32>
    %122 = arith.truncf %121 : vector<2x128xf32> to vector<2x128xbf16>
    %c0_50 = arith.constant 0 : index
    %c0_51 = arith.constant 0 : index
    %123 = vector.load %arg12[%c0_50, %c0_51] : memref<128x128xbf16, #tpu.memory_space<vmem>>, vector<128x128xbf16>
    %cst_52 = arith.constant dense<0.000000e+00> : vector<2x128xf32>
    %124 = tpu.matmul %122, %123, %cst_52 {dimension_numbers = #tpu.dot_dimension_numbers<[1], [0], [0], [1], [0, 0, 1, 1], [], []>} : vector<2x128xbf16>, vector<128x128xbf16>, vector<2x128xf32> -> vector<2x128xf32>
    %c0_53 = arith.constant 0 : index
    %c0_54 = arith.constant 0 : index
    %125 = vector.load %arg13[%c0_53, %c0_54] : memref<1x128xf32, #tpu.memory_space<vmem>>, vector<1x128xf32>
    %126 = vector.broadcast %125 : vector<1x128xf32> to vector<2x128xf32>
    %127 = arith.addf %124, %126 : vector<2x128xf32>
    %c0_55 = arith.constant 0 : index
    %c0_56 = arith.constant 0 : index
    %128 = vector.load %arg14[%c0_55, %c0_56] : memref<2x128xf32, #tpu.memory_space<vmem>>, vector<2x128xf32>
    tpu.vector_store %arg14[%c0_55, %c0_56], %127 {strides = array<i32>} : memref<2x128xf32, #tpu.memory_space<vmem>>, vector<2x128xf32>,
    return
  }
  func.func @transform_0(%arg0: i32) -> (i32, i32) {
    %c0_i32 = arith.constant 0 : i32
    %c0_i32_0 = arith.constant 0 : i32
    return %arg0, %c0_i32 : i32, i32
  }
  func.func @transform_1(%arg0: i32) -> (i32, i32, i32) {
    %c0_i32 = arith.constant 0 : i32
    %c0_i32_0 = arith.constant 0 : i32
    %c0_i32_1 = arith.constant 0 : i32
    return %arg0, %c0_i32, %c0_i32_0 : i32, i32, i32
  }
  func.func @transform_2(%arg0: i32) -> (i32, i32) {
    %c0_i32 = arith.constant 0 : i32
    %c0_i32_0 = arith.constant 0 : i32
    %c0_i32_1 = arith.constant 0 : i32
    return %c0_i32, %c0_i32_0 : i32, i32
  }
  func.func @transform_3(%arg0: i32) -> (i32, i32) {
    %c0_i32 = arith.constant 0 : i32
    %c0_i32_0 = arith.constant 0 : i32
    %c0_i32_1 = arith.constant 0 : i32
    return %c0_i32, %c0_i32_0 : i32, i32
  }
  func.func @transform_4(%arg0: i32) -> (i32, i32) {
    %c0_i32 = arith.constant 0 : i32
    %c0_i32_0 = arith.constant 0 : i32
    %c0_i32_1 = arith.constant 0 : i32
    return %c0_i32, %c0_i32_0 : i32, i32
  }
  func.func @transform_5(%arg0: i32) -> (i32, i32) {
    %c0_i32 = arith.constant 0 : i32
    %c0_i32_0 = arith.constant 0 : i32
    %c0_i32_1 = arith.constant 0 : i32
    return %c0_i32, %c0_i32_0 : i32, i32
  }
  func.func @transform_6(%arg0: i32) -> (i32, i32) {
    %c0_i32 = arith.constant 0 : i32
    %c0_i32_0 = arith.constant 0 : i32
    %c0_i32_1 = arith.constant 0 : i32
    return %c0_i32, %c0_i32_0 : i32, i32
  }
  func.func @transform_7(%arg0: i32) -> (i32, i32) {
    %c0_i32 = arith.constant 0 : i32
    %c0_i32_0 = arith.constant 0 : i32
    %c0_i32_1 = arith.constant 0 : i32
    return %c0_i32, %c0_i32_0 : i32, i32
  }
  func.func @transform_8(%arg0: i32) -> (i32, i32, i32) {
    %c0_i32 = arith.constant 0 : i32
    %c0_i32_0 = arith.constant 0 : i32
    %c0_i32_1 = arith.constant 0 : i32
    %c0_i32_2 = arith.constant 0 : i32
    return %c0_i32, %c0_i32_0, %c0_i32_1 : i32, i32, i32
  }
  func.func @transform_9(%arg0: i32) -> (i32, i32) {
    %c0_i32 = arith.constant 0 : i32
    %c0_i32_0 = arith.constant 0 : i32
    %c0_i32_1 = arith.constant 0 : i32
    return %c0_i32, %c0_i32_0 : i32, i32
  }
  func.func @transform_10(%arg0: i32) -> (i32, i32) {
    %c0_i32 = arith.constant 0 : i32
    %c0_i32_0 = arith.constant 0 : i32
    %c0_i32_1 = arith.constant 0 : i32
    return %c0_i32, %c0_i32_0 : i32, i32
  }
  func.func @transform_11(%arg0: i32) -> (i32, i32) {
    %c0_i32 = arith.constant 0 : i32
    %c0_i32_0 = arith.constant 0 : i32
    %c0_i32_1 = arith.constant 0 : i32
    return %c0_i32, %c0_i32_0 : i32, i32
  }
  func.func @transform_12(%arg0: i32) -> (i32, i32) {
    %c0_i32 = arith.constant 0 : i32
    %c0_i32_0 = arith.constant 0 : i32
    %c0_i32_1 = arith.constant 0 : i32
    return %c0_i32, %c0_i32_0 : i32, i32
  }
  func.func @transform_13(%arg0: i32) -> (i32, i32) {
    %c0_i32 = arith.constant 0 : i32
    %c0_i32_0 = arith.constant 0 : i32
    return %arg0, %c0_i32 : i32, i32
  }
}

</mosaic_0001>

<bundles_post_ra>
// kernel: tpu_custom_call.1
= control target key start
LH: loop header
LB: loop body
LE: loop exit
PB: predicated region body
PF: predicated region fallthrough
CT: control target
= control target key end

     0   :  { %18 = vsyncpa [#allocation3], 0  ;;  %s6337_s0 = inlined_call_operand.vmem [shape: s32[2,1], index: 0, kind: input, shape index: {}]   ;;  %s6338_s1 = inlined_call_operand.hbm [shape: f32[2,16,17], index: 1, kind: input, shape index: {}]   ;;  %s6339_s2 = inlined_call_operand.hbm [shape: bf16[153,512], index: 2, kind: input, shape index: {}]   ;;  %s6340_s3 = inlined_call_operand.vmem [shape: f32[1,512], index: 3, kind: input, shape index: {}]   ;;  %s6341_s4 = inlined_call_operand.hbm [shape: bf16[384,128], index: 4, kind: input, shape index: {}]   ;;  %s6342_s5 = inlined_call_operand.hbm [shape: bf16[640,128], index: 5, kind: input, shape index: {}]   ;;  %s6343_s6 = inlined_call_operand.hbm [shape: bf16[896,128], index: 6, kind: input, shape index: {}]   ;;  %s6344_s7 = inlined_call_operand.hbm [shape: bf16[1152,128], index: 7, kind: input, shape index: {}]   ;;  %s6345_s8 = inlined_call_operand.vmem [shape: f32[4,1,128], index: 8, kind: input, shape index: {}]   ;;  %s6346_s9 = inlined_call_operand.hbm [shape: bf16[512,128], index: 9, kind: input, shape index: {}]   ;;  %s6347_s10 = inlined_call_operand.vmem [shape: f32[1,128], index: 10, kind: input, shape index: {}]   ;;  %s6348_s11 = inlined_call_operand.hbm [shape: bf16[128,128], index: 11, kind: input, shape index: {}]   ;;  %s6349_s12 = inlined_call_operand.vmem [shape: f32[1,128], index: 12, kind: input, shape index: {}]   ;;  %s6350_s13 = inlined_call_operand.hbm [shape: f32[2,128], index: 13, kind: output, shape index: {}]  }
   0x1   :  { %19 = vsyncpa [#allocation6], 0 }
   0x2   :  { %20 = vsyncpa [#allocation9], 0 }
   0x3   :  { %21 = vsyncpa [#allocation12], 0 }
   0x4   :  { %22 = vsyncpa [#allocation15], 0 }
   0x5   :  { %23 = vsyncpa [#allocation4], 0  ;;  %s5541_s25 = smov [#allocation5]   ;;  %s5331_s29 = scalar_lea.hbm %s6339_s2, 5120 }
   0x6   :  { %s43_s26 = sshll.u32 %s5541_s25, 4  ;;  %p5332_p0 = scmp.ne.s32.totalorder %s6339_s2, %s5331_s29  ;;  %s44_s26 = int_to_ptr.vmem [resolvable:$true] %s43_s26 }
   0x7   :  { %p5335_p1 = scmp.lt.u32.totalorder %s5331_s29, %s6339_s2 }
   0x9   :  { %p5337_p2 = pnand %p5335_p1, %p5332_p0 }
   0xb   :  { %5340 = shalt.err (!%p5337_p2)
}
   0xc   :  { %s5341_s17 = scalar_lea.vmem %s44_s26, 5120  ;;  %p5346_p4 = scmp.lt.s32.totalorder %s44_s26, %s44_s26 }
   0xd   :  { %p5342_p3 = scmp.ne.s32.totalorder %s44_s26, %s5341_s17  ;;  %p5347_p5 = scmp.lt.s32.totalorder %s5341_s17, %s5341_s17 }
   0xf   :  { %p5348_p6 = por %p5347_p5, %p5346_p4 }
  0x11   :  { %p5349_p7 = pnand %p5348_p6, %p5342_p3 }
  0x13   :  { %5352 = shalt.err (!%p5349_p7)
}
  0x14   :  { %s5542_s18 = smov 256   ;;  %s5543_s19 = smov 16  }
  0x15   :  { %49 = dma.hbm_to_vmem [thread:$0]  %s6339_s2, 5120, %s44_s26, [#allocation6], %s5542_s18, %s5542_s18, %s5543_s19  }
  0x16   :  { %s5544_s22 = smov [#allocation8]   ;;  %s5545_s24 = smov [#allocation11]  }
  0x17   :  { %s69_s23 = sshll.u32 %s5544_s22, 4  ;;  %s93_s25 = sshll.u32 %s5545_s24, 4  ;;  %s70_s23 = int_to_ptr.vmem [resolvable:$true] %s69_s23  ;;  %s94_s25 = int_to_ptr.vmem [resolvable:$true] %s93_s25 }
  0x18   :  { %s5353_s29 = scalar_lea.hbm %s6342_s5, 5120 }
  0x19   :  { %p5354_p8 = scmp.ne.s32.totalorder %s6342_s5, %s5353_s29  ;;  %p5357_p9 = scmp.lt.u32.totalorder %s5353_s29, %s6342_s5 }
  0x1b   :  { %p5359_p10 = pnand %p5357_p9, %p5354_p8 }
  0x1d   :  { %5362 = shalt.err (!%p5359_p10)
}
  0x1e   :  { %s5363_s2 = scalar_lea.vmem %s70_s23, 5120  ;;  %p5368_p12 = scmp.lt.s32.totalorder %s70_s23, %s70_s23 }
  0x1f   :  { %p5364_p11 = scmp.ne.s32.totalorder %s70_s23, %s5363_s2  ;;  %p5369_p13 = scmp.lt.s32.totalorder %s5363_s2, %s5363_s2 }
  0x21   :  { %p5370_p0 = por %p5369_p13, %p5368_p12 }
  0x23   :  { %p5371_p1 = pnand %p5370_p0, %p5364_p11 }
  0x25   :  { %5374 = shalt.err (!%p5371_p1)
}
  0x26   :  { %s5546_s26 = smov 64   ;;  %s5547_s17 = smov 4  }
  0x27   :  { %75 = dma.hbm_to_vmem [thread:$0]  %s6342_s5, 5120, %s70_s23, [#allocation9], %s5546_s26, %s5546_s26, %s5547_s17  }
  0x28   :  { %s5375_s22 = scalar_lea.hbm %s6344_s7, 9216 }
  0x29   :  { %p5376_p2 = scmp.ne.s32.totalorder %s6344_s7, %s5375_s22  ;;  %p5379_p3 = scmp.lt.u32.totalorder %s5375_s22, %s6344_s7 }
  0x2b   :  { %p5381_p4 = pnand %p5379_p3, %p5376_p2 }
  0x2d   :  { %5384 = shalt.err (!%p5381_p4)
}
  0x2e   :  { %s5385_s30 = scalar_lea.vmem %s94_s25, 9216  ;;  %p5390_p6 = scmp.lt.s32.totalorder %s94_s25, %s94_s25 }
  0x2f   :  { %p5386_p5 = scmp.ne.s32.totalorder %s94_s25, %s5385_s30  ;;  %p5391_p7 = scmp.lt.s32.totalorder %s5385_s30, %s5385_s30 }
  0x31   :  { %p5392_p8 = por %p5391_p7, %p5390_p6 }
  0x33   :  { %p5393_p9 = pnand %p5392_p8, %p5386_p5 }
  0x35   :  { %5396 = shalt.err (!%p5393_p9)
}
  0x36   :  { %99 = dma.hbm_to_vmem [thread:$0]  %s6344_s7, 9216, %s94_s25, [#allocation12], %s5546_s26, %s5546_s26, %s5547_s17  }
  0x37   :  { %s5548_s14 = smov [#allocation2]   ;;  %s5397_s18 = scalar_lea.hbm %s6338_s1, 512 }
  0x38   :  { %s31_s15 = sshll.u32 %s5548_s14, 4  ;;  %p5398_p10 = scmp.ne.s32.totalorder %s6338_s1, %s5397_s18  ;;  %s32_s15 = int_to_ptr.vmem [resolvable:$true] %s31_s15 }
  0x39   :  { %p5401_p11 = scmp.lt.u32.totalorder %s5397_s18, %s6338_s1 }
  0x3b   :  { %p5403_p12 = pnand %p5401_p11, %p5398_p10 }
  0x3d   :  { %5406 = shalt.err (!%p5403_p12)
}
  0x3e   :  { %s5407_s24 = scalar_lea.vmem %s32_s15, 512  ;;  %p5412_p0 = scmp.lt.s32.totalorder %s32_s15, %s32_s15 }
  0x3f   :  { %p5408_p13 = scmp.ne.s32.totalorder %s32_s15, %s5407_s24  ;;  %p5413_p1 = scmp.lt.s32.totalorder %s5407_s24, %s5407_s24 }
  0x41   :  { %p5414_p2 = por %p5413_p1, %p5412_p0 }
  0x43   :  { %p5415_p3 = pnand %p5414_p2, %p5408_p13 }
  0x45   :  { %5418 = shalt.err (!%p5415_p3)
}
  0x46   :  { %s5549_s7 = smov 128   ;;  %s5550_s25 = smov 8  }
  0x47   :  { %37 = dma.hbm_to_vmem [thread:$0]  %s6338_s1, 512, %s32_s15, [#allocation3], %s5549_s7, %s5549_s7, %s5550_s25  }
  0x48   :  { %s5551_s29 = smov [#allocation7]   ;;  %s5552_s5 = smov [#allocation10]  }
  0x49   :  { %s57_s30 = sshll.u32 %s5551_s29, 4  ;;  %s81_s23 = sshll.u32 %s5552_s5, 4  ;;  %s58_s30 = int_to_ptr.vmem [resolvable:$true] %s57_s30  ;;  %s5693_s23 = int_to_ptr.vmem [resolvable:$true] %s81_s23 }
  0x4a   :  { %s5419_s2 = scalar_lea.hbm %s6341_s4, 3072 }
  0x4b   :  { %p5420_p4 = scmp.ne.s32.totalorder %s6341_s4, %s5419_s2  ;;  %p5423_p5 = scmp.lt.u32.totalorder %s5419_s2, %s6341_s4 }
  0x4d   :  { %p5425_p6 = pnand %p5423_p5, %p5420_p4 }
  0x4f   :  { %5428 = shalt.err (!%p5425_p6)
}
  0x50   :  { %s5429_s1 = scalar_lea.vmem %s58_s30, 3072  ;;  %p5434_p8 = scmp.lt.s32.totalorder %s58_s30, %s58_s30 }
  0x51   :  { %p5430_p7 = scmp.ne.s32.totalorder %s58_s30, %s5429_s1  ;;  %p5435_p9 = scmp.lt.s32.totalorder %s5429_s1, %s5429_s1 }
  0x53   :  { %p5436_p10 = por %p5435_p9, %p5434_p8 }
  0x55   :  { %p5437_p11 = pnand %p5436_p10, %p5430_p7 }
  0x57   :  { %5440 = shalt.err (!%p5437_p11)
}
  0x58   :  { %63 = dma.hbm_to_vmem [thread:$0]  %s6341_s4, 3072, %s58_s30, [#allocation6], %s5546_s26, %s5546_s26, %s5547_s17  }
  0x59   :  { %s5441_s27 = scalar_lea.hbm %s6343_s6, 7168 }
  0x5a   :  { %p5442_p12 = scmp.ne.s32.totalorder %s6343_s6, %s5441_s27  ;;  %p5445_p13 = scmp.lt.u32.totalorder %s5441_s27, %s6343_s6 }
  0x5c   :  { %p5447_p0 = pnand %p5445_p13, %p5442_p12 }
  0x5e   :  { %5450 = shalt.err (!%p5447_p0)
}
  0x5f   :  { %s5451_s16 = scalar_lea.vmem %s5693_s23, 7168  ;;  %p5456_p2 = scmp.lt.s32.totalorder %s5693_s23, %s5693_s23 }
  0x60   :  { %p5452_p1 = scmp.ne.s32.totalorder %s5693_s23, %s5451_s16  ;;  %p5457_p3 = scmp.lt.s32.totalorder %s5451_s16, %s5451_s16 }
  0x62   :  { %p5458_p4 = por %p5457_p3, %p5456_p2 }
  0x64   :  { %p5459_p5 = pnand %p5458_p4, %p5452_p1 }
  0x66   :  { %5462 = shalt.err (!%p5459_p5)
}
  0x67   :  { %87 = dma.hbm_to_vmem [thread:$0]  %s6343_s6, 7168, %s5693_s23, [#allocation9], %s5546_s26, %s5546_s26, %s5547_s17  }
  0x68   :  { %s5553_s2 = smov [#allocation13]   ;;  %s5554_s19 = smov [#allocation14]  }
  0x69   :  { %s107_s18 = sshll.u32 %s5553_s2, 4  ;;  %s121_s20 = sshll.u32 %s5554_s19, 4  ;;  %s108_s18 = int_to_ptr.vmem [resolvable:$true] %s107_s18  ;;  %s5730_s20 = int_to_ptr.vmem [resolvable:$true] %s121_s20 }
  0x6a   :  { %s5463_s15 = scalar_lea.hbm %s6346_s9, 4096 }
  0x6b   :  { %p5464_p6 = scmp.ne.s32.totalorder %s6346_s9, %s5463_s15  ;;  %p5467_p7 = scmp.lt.u32.totalorder %s5463_s15, %s6346_s9 }
  0x6d   :  { %p5469_p8 = pnand %p5467_p7, %p5464_p6 }
  0x6f   :  { %5472 = shalt.err (!%p5469_p8)
}
  0x70   :  { %s5473_s6 = scalar_lea.vmem %s108_s18, 4096  ;;  %p5478_p10 = scmp.lt.s32.totalorder %s108_s18, %s108_s18 }
  0x71   :  { %p5474_p9 = scmp.ne.s32.totalorder %s108_s18, %s5473_s6  ;;  %p5479_p11 = scmp.lt.s32.totalorder %s5473_s6, %s5473_s6 }
  0x73   :  { %p5480_p12 = por %p5479_p11, %p5478_p10 }
  0x75   :  { %p5481_p13 = pnand %p5480_p12, %p5474_p9 }
  0x77   :  { %5484 = shalt.err (!%p5481_p13)
}
  0x78   :  { %113 = dma.hbm_to_vmem [thread:$0]  %s6346_s9, 4096, %s108_s18, [#allocation12], %s5546_s26, %s5546_s26, %s5547_s17  }
  0x79   :  { %s5485_s14 = scalar_lea.hbm %s6348_s11, 1024 }
  0x7a   :  { %p5486_p0 = scmp.ne.s32.totalorder %s6348_s11, %s5485_s14  ;;  %p5489_p1 = scmp.lt.u32.totalorder %s5485_s14, %s6348_s11 }
  0x7c   :  { %p5491_p2 = pnand %p5489_p1, %p5486_p0 }
  0x7e   :  { %5494 = shalt.err (!%p5491_p2)
}
  0x7f   :  { %s5495_s19 = scalar_lea.vmem %s5730_s20, 1024  ;;  %p5500_p4 = scmp.lt.s32.totalorder %s5730_s20, %s5730_s20 }
  0x80   :  { %p5496_p3 = scmp.ne.s32.totalorder %s5730_s20, %s5495_s19  ;;  %p5501_p5 = scmp.lt.s32.totalorder %s5495_s19, %s5495_s19 }
  0x82   :  { %p5502_p6 = por %p5501_p5, %p5500_p4 }
  0x84   :  { %p5503_p7 = pnand %p5502_p6, %p5496_p3 }
  0x86   :  { %5506 = shalt.err (!%p5503_p7)
}
  0x87   :  { %127 = dma.hbm_to_vmem [thread:$0]  %s6348_s11, 1024, %s5730_s20, [#allocation15], %s5546_s26, %s5546_s26, %s5547_s17  }
  0x88   :  { %5529 = dma.done.wait [#allocation3], 512  }
  0x89   :  { %5530 = vsyncadd [#allocation3], 4294966784 }
  0x8a   :  { %5531 = dma.done.wait [#allocation6], 8192  }
  0x8b   :  { %5532 = vsyncadd [#allocation6], 4294959104 }
  0x8c   :  { %5533 = dma.done.wait [#allocation9], 12288  }
  0x8d   :  { %5534 = vsyncadd [#allocation9], 4294955008 }
  0x8e   :  { %5535 = dma.done.wait [#allocation12], 13312  }
  0x8f   :  { %5536 = vsyncadd [#allocation12], 4294953984 }
  0x90   :  { %5537 = dma.done.wait [#allocation15], 1024  }
  0x91   :  { %5538 = vsyncadd [#allocation15], 4294966272  ;;  %v167_v0 = vlaneseq  ;;  %v5555_v1 = vmov 0   ;;  %v5556_v2 = vmov 1966171168   ;;  %v193_v44 = vld [vmem:[#allocation2] sm:$0xff] }
  0x92   :  { %5037 = vset.pattern.permute.xlu0 %v5555_v1  ;;  %v165_v3 = vunpack.c.l.s4 %v5556_v2  ;;  %5038 = vset.pattern.permute.xlu1 %v5555_v1  ;;  %v4247_v8 = vld.sshfl [vmem:[%s6337_s0] sm:$0x11 pattern:$0x75316420]  ;;  %v5039_v19 = vld [vmem:[#allocation5 + $0x4] ss:$16 sps:$4 sm:$0xff]  }
  0x93   :  { %v5767_v4 = vshrl.u32 %v167_v0, 7  ;;  %v163_v11 = vcombine.high %v4247_v8, %v4247_v8  ;;  %v5041_v20 = vld [vmem:[#allocation5 + $0xc] ss:$16 sps:$4 sm:$0xff]   ;;  %v5043_v21 = vld [vmem:[#allocation5] ss:$16 sps:$4 sm:$0xff]   ;;  %690 = vmatprep.subr.bf16.mxu0 %v5039_v19  ;;  %vm227_vm7 = vcmask 1041408  }
  0x94   :  { %v166_v5 = vunpack.c.0.s8 %v165_v3  ;;  %v5044_v22 = vld [vmem:[#allocation5 + $0x8] ss:$16 sps:$4 sm:$0xff]   ;;  %v5045_v23 = vld [vmem:[#allocation5 + $0x24] ss:$16 sps:$4 sm:$0xff]   ;;  %v5047_v24 = vld [vmem:[#allocation5 + $0x2c] ss:$16 sps:$4 sm:$0xff]   ;;  %743 = vmatprep.subr.bf16.mxu1 %v5041_v20  ;;  %691 = vmatpush1.bf16.msra.mxu0 %v5043_v21 }
  0x95   :  { %v5771_v7 = vsub.s32 0, %v5767_v4  ;;  %v180_v10 = vadd.s32 8, %v5767_v4  ;;  %744 = vmatpush1.bf16.msra.mxu1 %v5044_v22  ;;  %v5049_v25 = vld [vmem:[#allocation5 + $0x20] ss:$16 sps:$4 sm:$0xff]   ;;  %v5050_v26 = vld [vmem:[#allocation5 + $0x28] ss:$16 sps:$4 sm:$0xff]   ;;  %692 = vmatprep.subr.bf16.mxu0 %v5045_v23 }
  0x96   :  { %v169_v6 = vsub.s32 %v166_v5, %v5767_v4  ;;  %745 = vmatprep.subr.bf16.mxu1 %v5047_v24  ;;  %v5051_v27 = vld [vmem:[#allocation5 + $0x44] ss:$16 sps:$4 sm:$0xff]   ;;  %v5053_v28 = vld [vmem:[#allocation5 + $0x4c] ss:$16 sps:$4 sm:$0xff]   ;;  %v5055_v29 = vld [vmem:[#allocation5 + $0x40] ss:$16 sps:$4 sm:$0xff]  }
  0x97   :  { %v5056_v30 = vld [vmem:[#allocation5 + $0x48] ss:$16 sps:$4 sm:$0xff]   ;;  %v5057_v31 = vld [vmem:[#allocation5 + $0x64] ss:$16 sps:$4 sm:$0xff]   ;;  %v5059_v32 = vld [vmem:[#allocation5 + $0x6c] ss:$16 sps:$4 sm:$0xff]  }
  0x98   :  { %v170_v9 = vrot.slane %v4247_v8, %v169_v6  ;;  %v177_v13 = vrot.slane %v163_v11, %v169_v6  ;;  %693 = vmatpush1.bf16.msra.mxu0 %v5049_v25  ;;  %v5061_v33 = vld [vmem:[#allocation5 + $0x60] ss:$16 sps:$4 sm:$0xff]   ;;  %v5062_v34 = vld [vmem:[#allocation5 + $0x68] ss:$16 sps:$4 sm:$0xff]   ;;  %v5063_v35 = vld [vmem:[#allocation5 + $0x84] ss:$16 sps:$4 sm:$0xff]  }
  0x99   :  { %746 = vmatpush1.bf16.msra.mxu1 %v5050_v26  ;;  %694 = vmatprep.subr.bf16.mxu0 %v5051_v27  ;;  %v5065_v36 = vld [vmem:[#allocation5 + $0x8c] ss:$16 sps:$4 sm:$0xff]   ;;  %v5067_v37 = vld [vmem:[#allocation5 + $0x80] ss:$16 sps:$4 sm:$0xff]   ;;  %v5068_v38 = vld [vmem:[#allocation5 + $0x88] ss:$16 sps:$4 sm:$0xff]  }
  0x9a   :  { %v184_v12 = vrot.slane %v170_v9, %v5771_v7  ;;  %v188_v14 = vrot.slane %v177_v13, %v5771_v7  ;;  %747 = vmatprep.subr.bf16.mxu1 %v5053_v28  ;;  %v5069_v39 = vld [vmem:[#allocation5 + $0xa4] ss:$16 sps:$4 sm:$0xff]   ;;  %v5071_v40 = vld [vmem:[#allocation5 + $0xac] ss:$16 sps:$4 sm:$0xff]   ;;  %v5073_v41 = vld [vmem:[#allocation5 + $0xa0] ss:$16 sps:$4 sm:$0xff]  }
  0x9b   :  { %v5074_v42 = vld [vmem:[#allocation5 + $0xa8] ss:$16 sps:$4 sm:$0xff]   ;;  %v5075_v45 = vld [vmem:[#allocation5 + $0xc4] ss:$16 sps:$4 sm:$0xff]   ;;  %v5077_v46 = vld [vmem:[#allocation5 + $0xcc] ss:$16 sps:$4 sm:$0xff]  }
  0x9c   :  { %vm189_vm0 = vcmp.lt.s32.totalorder %v5767_v4, %v184_v12  ;;  %vm190_vm1 = vcmp.lt.s32.totalorder %v180_v10, %v184_v12  ;;  %vm191_vm2 = vcmp.lt.s32.totalorder %v5767_v4, %v188_v14  ;;  %vm192_vm3 = vcmp.lt.s32.totalorder %v180_v10, %v188_v14  ;;  %695 = vmatpush1.bf16.msra.mxu0 %v5055_v29  ;;  %v194_v47 = vld [vmem:[#allocation2 + $0x8] sm:$0xff]  ;;  %v5079_v49 = vld [vmem:[#allocation5 + $0xc0] ss:$16 sps:$4 sm:$0xff]   ;;  %v196_v53 = vld [vmem:[#allocation2 + $0x18] sm:$0xff]  ;;  %s5557_s0 = smov 34   ;;  %s5558_s17 = smov 68  }
  0x9d   :  { %v197_v15 = vsel %vm189_vm0, 1, %v5555_v1  ;;  %v198_v16 = vsel %vm190_vm1, 1, %v5555_v1  ;;  %v199_v17 = vsel %vm191_vm2, 1, %v5555_v1  ;;  %v200_v18 = vsel %vm192_vm3, 1, %v5555_v1  ;;  %748 = vmatpush1.bf16.msra.mxu1 %v5056_v30  ;;  %696 = vmatprep.subr.bf16.mxu0 %v5057_v31  ;;  %v5080_v50 = vld [vmem:[#allocation5 + $0xc8] ss:$16 sps:$4 sm:$0xff]  }
  0x9e   :  { %202 = vperm.xlu0 %5037, %v197_v15   ;;  %208 = vperm.xlu1 %5038, %v199_v17   ;;  %v195_v51 = vld [vmem:[#allocation2 + $0x10] sm:$0xff]  ;;  %v5083_v59 = vld [vmem:[#allocation5 + $0xec] ss:$16 sps:$4 sm:$0xff]   ;;  %v5086_v63 = vld [vmem:[#allocation5 + $0xe8] ss:$16 sps:$4 sm:$0xff]   ;;  %vm264_vm9 = vcmask 1046528  }
  0x9f   :  { %749 = vmatprep.subr.bf16.mxu1 %v5059_v32  ;;  %v5081_v58 = vld [vmem:[#allocation5 + $0xe4] ss:$16 sps:$4 sm:$0xff]   ;;  %v5085_v62 = vld [vmem:[#allocation5 + $0xe0] ss:$16 sps:$4 sm:$0xff]   ;;  %vm298_vm10 = vcmask 1045504   ;;  %vm328_vm13 = vcmask 1044480  }
  0xa0   :  { %697 = vmatpush1.bf16.msra.mxu0 %v5061_v33  ;;  %v5087_v5 = vld [vmem:[#allocation5 + $0x104] ss:$16 sps:$4 sm:$0xff]   ;;  %v5089_v11 = vld [vmem:[#allocation5 + $0x10c] ss:$16 sps:$4 sm:$0xff]   ;;  %vm235_vm11 = vsmask.f32 7424 }
  0xa1   :  { %750 = vmatpush1.bf16.msra.mxu1 %v5062_v34  ;;  %698 = vmatprep.subr.bf16.mxu0 %v5063_v35  ;;  %v5091_v14 = vld [vmem:[#allocation5 + $0x100] ss:$16 sps:$4 sm:$0xff]   ;;  %vm275_vm12 = vsmask.f32 6400  ;;  %v5092_v17 = vld [vmem:[#allocation5 + $0x108] ss:$16 sps:$4 sm:$0xff]  }
  0xa2   :  { %205 = vperm.xlu0 %5037, %v198_v16   ;;  %211 = vperm.xlu1 %5038, %v200_v18   ;;  %vm6352_vm14 = vcmask 1043456   ;;  %vm309_vm15 = vsmask.f32 5376  ;;  %s5559_s20 = smov 17   ;;  %s5560_s21 = smov 102   ;;  %vm369_vm1 = vcmask 138240  }
  0xa3   :  { %751 = vmatprep.subr.bf16.mxu1 %v5065_v36  ;;  %s5561_s1 = smov 51   ;;  %vm6351_vm0 = vsmask.f32 4352  ;;  %s5562_s15 = smov 85   ;;  %vm374_vm2 = vcmask 277504   ;;  %vm379_vm3 = vcmask 416768  }
  0xa4   :  { %699 = vmatpush1.bf16.msra.mxu0 %v5067_v37  ;;  %s5563_s22 = smov 119   ;;  %s5567_s30 = smov [#allocation16]  }
  0xa5   :  { %752 = vmatpush1.bf16.msra.mxu1 %v5068_v38  ;;  %700 = vmatprep.subr.bf16.mxu0 %v5069_v39  ;;  %s4234_s2 = sshll.u32 %s5567_s30, 4  ;;  %s4235_s2 = int_to_ptr.vmem [resolvable:$true] %s4234_s2 }
  0xa6   :  { %753 = vmatprep.subr.bf16.mxu1 %v5071_v40  ;;  %p5512_p9 = scmp.lt.s32.totalorder %s4235_s2, %s4235_s2 }
  0xa8   :  { %701 = vmatpush1.bf16.msra.mxu0 %v5073_v41 }
  0xa9   :  { %754 = vmatpush1.bf16.msra.mxu1 %v5074_v42  ;;  %702 = vmatprep.subr.bf16.mxu0 %v5075_v45 }
  0xaa   :  { %755 = vmatprep.subr.bf16.mxu1 %v5077_v46 }
  0xac   :  { %703 = vmatpush1.bf16.msra.mxu0 %v5079_v49 }
  0xad   :  { %756 = vmatpush1.bf16.msra.mxu1 %v5080_v50  ;;  %704 = vmatprep.subr.bf16.mxu0 %v5081_v58 }
  0xae   :  { %757 = vmatprep.subr.bf16.mxu1 %v5083_v59 }
  0xb0   :  { %705 = vmatpush1.bf16.msra.mxu0 %v5085_v62 }
  0xb1   :  { %758 = vmatpush1.bf16.msra.mxu1 %v5086_v63  ;;  %706 = vmatprep.subr.bf16.mxu0 %v5087_v5 }
  0xb2   :  { %759 = vmatprep.subr.bf16.mxu1 %v5089_v11 }
  0xb4   :  { %707 = vmatpush1.bf16.msra.mxu0 %v5091_v14 }
  0xb5   :  { %760 = vmatpush1.bf16.msra.mxu1 %v5092_v17 }
 0x11d   :  { %v203_v43 = vpop.permute.xlu0 %202  ;;  %v209_v48 = vpop.permute.xlu1 %208 }
 0x11e   :  { %vm213_vm4 = vcmp.eq.s32.totalorder %v203_v43, 1  ;;  %vm215_vm6 = vcmp.eq.s32.totalorder %v209_v48, 1 }
 0x11f   :  { %v217_v54 = vsel %vm213_vm4, %v193_v44, 0.0  ;;  %v219_v60 = vsel %vm215_vm6, %v195_v51, 0.0  ;;  %vm384_vm4 = vcmask 556032   ;;  %vm394_vm6 = vcmask 834560  }
 0x121   :  { %v206_v52 = vpop.permute.xlu0 %205  ;;  %v212_v56 = vpop.permute.xlu1 %211 }
 0x122   :  { %vm214_vm5 = vcmp.eq.s32.totalorder %v206_v52, 1  ;;  %vm216_vm8 = vcmp.eq.s32.totalorder %v212_v56, 1 }
 0x123   :  { %v218_v55 = vsel %vm214_vm5, %v194_v47, 0.0  ;;  %v220_v61 = vsel %vm216_vm8, %v196_v53, 0.0  ;;  %vm389_vm5 = vcmask 695296   ;;  %vm406_vm8 = vcmask 64512  }
 0x124   :  { %v221_v57 = vpack.c.bf16 %v218_v55, %v217_v54  ;;  %v222_v3 = vpack.c.bf16 %v220_v61, %v219_v60 }
 0x126   :  { %v225_v0 = vrot.slane %v221_v57, 6  ;;  %v226_v22 = vrot.slane %v222_v3, 6  ;;  %v5097_v3 = vld [vmem:[#allocation5 + $0x120] ss:$16 sps:$4 sm:$0x1f]  }
 0x128   :  { %v5782_v1 = vsel %vm227_vm7, 0, %v225_v0  ;;  %v5785_v2 = vsel %vm227_vm7, %v225_v0, 0  ;;  %v5818_v37 = vsel %vm227_vm7, 0, %v226_v22  ;;  %v5822_v38 = vsel %vm227_vm7, %v226_v22, 0 }
 0x129   :  { %v5788_v6 = vshll.u32 %v5785_v2, 16  ;;  %v265_v8 = vrot.slane %v5782_v1, 1  ;;  %v266_v9 = vrot.slane %v5785_v2, 1  ;;  %v5793_v10 = vshrl.u32 %v5782_v1, 16 }
 0x12a   :  { %v5796_v12 = vshll.u32 %v5782_v1, 16  ;;  %v299_v13 = vrot.slane %v5782_v1, 2  ;;  %v300_v16 = vrot.slane %v5785_v2, 2  ;;  %v279_v21 = vshrl.u32 %v5785_v2, 16 }
 0x12b   :  { %v267_v15 = vsel %vm264_vm9, %v265_v8, %v266_v9  ;;  %v276_v19 = vrot.slane %v5793_v10, 1  ;;  %v244_v23 = vrot.slane %v5788_v6, 1  ;;  %v282_v25 = vrot.slane %v5788_v6, 2  ;;  %v5093_v0 = vld [vmem:[#allocation5 + $0x124] ss:$16 sps:$4 sm:$0x1f]  }
 0x12c   :  { %271 = vrot.lane.b32.xlu1 %v267_v15, %s5557_s0  ;;  %v240_v18 = vrot.slane %v5796_v12, 1  ;;  %v277_v20 = vrot.slane %v5796_v12, 2  ;;  %v301_v24 = vsel %vm298_vm10, %v299_v13, %v300_v16  ;;  %v281_v27 = vrot.slane %v279_v21, 1 }
 0x12d   :  { %v329_v28 = vrot.slane %v5782_v1, 3  ;;  %v330_v29 = vrot.slane %v5785_v2, 3  ;;  %v310_v30 = vrot.slane %v5793_v10, 2  ;;  %v311_v31 = vrot.slane %v5796_v12, 3 }
 0x12e   :  { %v241_v26 = vor.u32 %v240_v18, %v5793_v10  ;;  %v313_v32 = vrot.slane %v279_v21, 2  ;;  %v314_v33 = vrot.slane %v5788_v6, 3  ;;  %v278_v35 = vor.u32 %v277_v20, %v276_v19 }
 0x12f   :  { %v283_v36 = vor.u32 %v282_v25, %v281_v27  ;;  %v331_v39 = vsel %vm328_vm13, %v329_v28, %v330_v29  ;;  %v359_v40 = vrot.slane %v5782_v1, 4  ;;  %v312_v41 = vor.u32 %v311_v31, %v310_v30 }
 0x130   :  { %v245_v34 = vsel %vm235_vm11, %v241_v26, %v244_v23  ;;  %305 = vrot.lane.b32.xlu1 %v301_v24, %s5558_s17  ;;  %v315_v42 = vor.u32 %v314_v33, %v313_v32  ;;  %v360_v43 = vrot.slane %v5785_v2, 4  ;;  %v340_v44 = vrot.slane %v5793_v10, 3  ;;  %v5095_v2 = vld [vmem:[#allocation5 + $0x12c] ss:$16 sps:$4 sm:$0x1f]   ;;  %v5099_v33 = vld [vmem:[#allocation7 + $0x40] sm:$0xff]  }
 0x131   :  { %256 = vrot.lane.b32.xlu0 %v245_v34, %s5559_s20  ;;  %v284_v45 = vsel %vm275_vm12, %v278_v35, %v283_v36  ;;  %v341_v46 = vrot.slane %v5796_v12, 4  ;;  %v343_v47 = vrot.slane %v279_v21, 3  ;;  %v344_v48 = vrot.slane %v5788_v6, 4  ;;  %v5098_v10 = vld [vmem:[#allocation5 + $0x128] ss:$16 sps:$4 sm:$0x1f]  }
 0x132   :  { %v5834_v49 = vshll.u32 %v5818_v37, 16  ;;  %v5837_v50 = vshll.u32 %v5822_v38, 16  ;;  %v5840_v51 = vshrl.u32 %v5818_v37, 16  ;;  %v361_v52 = vsel %vm6352_vm14, %v359_v40, %v360_v43 }
 0x133   :  { %v268_v53 = vrot.slane %v5818_v37, 1  ;;  %v269_v54 = vrot.slane %v5822_v38, 1  ;;  %v316_v56 = vsel %vm309_vm15, %v312_v41, %v315_v42  ;;  %v342_v57 = vor.u32 %v341_v46, %v340_v44 }
 0x134   :  { %335 = vrot.lane.b32.xlu1 %v331_v39, %s5560_s21  ;;  %v250_v55 = vrot.slane %v5834_v49, 1  ;;  %v345_v58 = vor.u32 %v344_v48, %v343_v47  ;;  %v288_v59 = vshrl.u32 %v5822_v38, 16  ;;  %v302_v60 = vrot.slane %v5818_v37, 2 }
 0x135   :  { %294 = vrot.lane.b32.xlu0 %v284_v45, %s5561_s1  ;;  %v303_v61 = vrot.slane %v5822_v38, 2  ;;  %v285_v62 = vrot.slane %v5840_v51, 1  ;;  %v286_v63 = vrot.slane %v5834_v49, 2  ;;  %v270_v5 = vsel %vm264_vm9, %v268_v53, %v269_v54 }
 0x136   :  { %v251_v6 = vor.u32 %v250_v55, %v5840_v51  ;;  %v254_v8 = vrot.slane %v5837_v50, 1  ;;  %v332_v9 = vrot.slane %v5818_v37, 3  ;;  %v346_v11 = vsel %vm6351_vm0, %v342_v57, %v345_v58 }
 0x137   :  { %v333_v12 = vrot.slane %v5822_v38, 3  ;;  %v290_v13 = vrot.slane %v288_v59, 1  ;;  %v291_v14 = vrot.slane %v5837_v50, 2  ;;  %v317_v15 = vrot.slane %v5840_v51, 2 }
 0x138   :  { %365 = vrot.lane.b32.xlu1 %v361_v52, %s5550_s25  ;;  %v304_v16 = vsel %vm298_vm10, %v302_v60, %v303_v61  ;;  %v287_v17 = vor.u32 %v286_v63, %v285_v62  ;;  %v318_v18 = vrot.slane %v5834_v49, 3  ;;  %v5564_v19 = vmov 65535   ;;  %v5100_v61 = vld [vmem:[#allocation7] sm:$0xff]  }
 0x139   :  { %324 = vrot.lane.b32.xlu0 %v316_v56, %s5562_s15  ;;  %v676_v20 = vsel %vm6352_vm14, 4294967295, %v5564_v19  ;;  %v255_v21 = vsel %vm235_vm11, %v251_v6, %v254_v8  ;;  %v320_v22 = vrot.slane %v288_v59, 2  ;;  %v321_v23 = vrot.slane %v5837_v50, 3  ;;  %v5103_v19 = vld [vmem:[#allocation7 + $0x50] sm:$0xff]  }
 0x13a   :  { %v677_v24 = vsel %vm328_vm13, %v676_v20, 0  ;;  %v292_v25 = vor.u32 %v291_v14, %v290_v13  ;;  %v334_v30 = vsel %vm328_vm13, %v332_v9, %v333_v12  ;;  %v362_v31 = vrot.slane %v5818_v37, 4  ;;  %v5104_v20 = vld [vmem:[#allocation7 + $0x10] sm:$0xff]  }
 0x13b   :  { %v682_v26 = vand.u32 %v5093_v0, %v677_v24  ;;  %v688_v27 = vand.u32 %v5095_v2, %v677_v24  ;;  %v679_v28 = vand.u32 %v5097_v3, %v677_v24  ;;  %v685_v29 = vand.u32 %v5098_v10, %v677_v24  ;;  %v5101_v0 = vld [vmem:[#allocation7 + $0x48] sm:$0xff]  }
 0x13c   :  { %273 = vrot.lane.b32.xlu1 %v270_v5, %s5557_s0  ;;  %v363_v32 = vrot.slane %v5822_v38, 4  ;;  %v347_v34 = vrot.slane %v5840_v51, 3  ;;  %v348_v35 = vrot.slane %v5834_v49, 4  ;;  %v350_v36 = vrot.slane %v288_v59, 3  ;;  %v5102_v5 = vld [vmem:[#allocation7 + $0x8] sm:$0xff]  }
 0x13d   :  { %354 = vrot.lane.b32.xlu0 %v346_v11, %s5563_s22  ;;  %708 = vmatprep.subr.bf16.mxu0 %v682_v26  ;;  %v351_v39 = vrot.slane %v5837_v50, 4  ;;  %v293_v40 = vsel %vm275_vm12, %v287_v17, %v292_v25  ;;  %v319_v41 = vor.u32 %v318_v18, %v317_v15  ;;  %v322_v42 = vor.u32 %v321_v23, %v320_v22  ;;  %v5106_v22 = vld [vmem:[#allocation7 + $0x58] sm:$0xff]   ;;  %v5108_v24 = vld [vmem:[#allocation7 + $0x88] sm:$0xff]   ;;  %v5109_v25 = vld [vmem:[#allocation7 + $0x60] sm:$0xff]  }
 0x13e   :  { %761 = vmatprep.subr.bf16.mxu1 %v688_v27  ;;  %709 = vmatpush1.bf16.msra.mxu0 %v679_v28  ;;  %v364_v38 = vsel %vm6352_vm14, %v362_v31, %v363_v32  ;;  %v349_v44 = vor.u32 %v348_v35, %v347_v34  ;;  %vm669_vm14 = vcmask 203776   ;;  %v5107_v23 = vld [vmem:[#allocation7 + $0x18] sm:$0xff]   ;;  %v5110_v26 = vld [vmem:[#allocation7 + $0x20] sm:$0xff]   ;;  %v5111_v27 = vld [vmem:[#allocation7 + $0x90] sm:$0xff]  }
 0x13f   :  { %762 = vmatpush1.bf16.msra.mxu1 %v685_v29  ;;  %4537 = vmatprep.subr.bf16.mxu0 %v5099_v33  ;;  %v323_v43 = vsel %vm309_vm15, %v319_v41, %v322_v42  ;;  %v352_v45 = vor.u32 %v351_v39, %v350_v36  ;;  %v5112_v28 = vld [vmem:[#allocation7 + $0x68] sm:$0xff]   ;;  %v5115_v31 = vld [vmem:[#allocation7 + $0x70] sm:$0xff]   ;;  %v5117_v33 = vld [vmem:[#allocation7 + $0xa0] sm:$0xff]  }
 0x140   :  { %307 = vrot.lane.b32.xlu1 %v304_v16, %s5558_s17  ;;  %v5113_v29 = vld [vmem:[#allocation7 + $0x28] sm:$0xff]   ;;  %v5116_v32 = vld [vmem:[#allocation7 + $0x30] sm:$0xff]   ;;  %v5118_v34 = vld [vmem:[#allocation7 + $0x78] sm:$0xff]  }
 0x141   :  { %258 = vrot.lane.b32.xlu0 %v255_v21, %s5559_s20  ;;  %v353_v46 = vsel %vm6351_vm0, %v349_v44, %v352_v45  ;;  %vm399_vm0 = vcmask 973824   ;;  %v5105_v21 = vld [vmem:[#allocation7 + $0x80] sm:$0xff]   ;;  %v5119_v35 = vld [vmem:[#allocation7 + $0x38] sm:$0xff]   ;;  %v5120_v36 = vld [vmem:[#allocation7 + $0xa8] sm:$0xff]   ;;  %v459_v44 = vsub.s32 1, %v5767_v4  ;;  %v467_v45 = vsub.s32 3, %v5767_v4 }
 0x142   :  { %4910 = vmatprep.subr.bf16.mxu1 %v5105_v21  ;;  %v5121_v39 = vld [vmem:[#allocation8 + $0x40] sm:$0xff]   ;;  %v5126_v41 = vld [vmem:[#allocation7 + $0xb8] sm:$0xff]  }
 0x143   :  { %v5129_v42 = vld [vmem:[#allocation8 + $0xc0] sm:$0xff]  }
 0x144   :  { %337 = vrot.lane.b32.xlu1 %v334_v30, %s5560_s21  ;;  %v5114_v30 = vld [vmem:[#allocation7 + $0x98] sm:$0xff]  }
 0x145   :  { %296 = vrot.lane.b32.xlu0 %v293_v40, %s5561_s1  ;;  %v5123_v40 = vld [vmem:[#allocation7 + $0xb0] sm:$0xff]  }
 0x148   :  { %367 = vrot.lane.b32.xlu1 %v364_v38, %s5550_s25  ;;  %v463_v38 = vsub.s32 2, %v5767_v4 }
 0x149   :  { %326 = vrot.lane.b32.xlu0 %v323_v43, %s5562_s15  ;;  %v451_v43 = vld [vmem:[%s6340_s3] sm:$0xf] }
 0x14d   :  { %356 = vrot.lane.b32.xlu0 %v353_v46, %s5563_s22  ;;  %v456_v46 = vrot.slane %v451_v43, %v5771_v7 }
 0x19e   :  { %v272_v47 = vpop.permute.xlu1 %271 }
 0x1a2   :  { %v306_v48 = vpop.permute.xlu1 %305 }
 0x1a3   :  { %v257_v49 = vpop.permute.xlu0 %256 }
 0x1a4   :  { %v371_v50 = vsel %vm369_vm1, %v5782_v1, %v257_v49  ;;  %v468_v49 = vrot.slane %v451_v43, %v467_v45 }
 0x1a5   :  { %v376_v53 = vsel %vm374_vm2, %v371_v50, %v272_v47  ;;  %v464_v47 = vrot.slane %v451_v43, %v463_v38 }
 0x1a6   :  { %v336_v51 = vpop.permute.xlu1 %335 }
 0x1a7   :  { %v295_v52 = vpop.permute.xlu0 %294 }
 0x1a8   :  { %v381_v54 = vsel %vm379_vm3, %v376_v53, %v295_v52 }
 0x1a9   :  { %v386_v57 = vsel %vm384_vm4, %v381_v54, %v306_v48  ;;  %v460_v48 = vrot.slane %v451_v43, %v459_v44 }
 0x1aa   :  { %v366_v55 = vpop.permute.xlu1 %365 }
 0x1ab   :  { %v325_v56 = vpop.permute.xlu0 %324 }
 0x1ac   :  { %v391_v58 = vsel %vm389_vm5, %v386_v57, %v325_v56 }
 0x1ad   :  { %v396_v60 = vsel %vm394_vm6, %v391_v58, %v336_v51 }
 0x1ae   :  { %v274_v1 = vpop.permute.xlu1 %273 }
 0x1af   :  { %v355_v59 = vpop.permute.xlu0 %354 }
 0x1b0   :  { %v408_v62 = vsel %vm406_vm8, %v355_v59, %v366_v55  ;;  %v401_v63 = vsel %vm399_vm0, %v396_v60, %v355_v59 }
 0x1b1   :  { %4288 = vmatprep.mubr.msk.bf16.mxu0 %vm669_vm14, %v408_v62  ;;  %4290 = vmatprep.mubr.msk.bf16.mxu1 %vm669_vm14, %v408_v62 }
 0x1b2   :  { %723 = vmatmul.mubr.bf16.vlgmr.msra.gmra.mrb[0].mxu0 %v401_v63  ;;  %776 = vmatmul.mubr.bf16.vlgmr.msra.gmra.mrb[0].mxu1 %v401_v63  ;;  %v308_v3 = vpop.permute.xlu1 %307 }
 0x1b3   :  { %v259_v2 = vpop.permute.xlu0 %258  ;;  %4538 = vmatpush3.bf16.msra.mxu0 %v5100_v61  ;;  %4911 = vmatpush3.bf16.msra.mxu1 %v5105_v21 }
 0x1b4   :  { %v373_v6 = vsel %vm369_vm1, %v5818_v37, %v259_v2  ;;  %4539 = vmatprep.subr.bf16.mxu0 %v5101_v0  ;;  %4912 = vmatprep.subr.bf16.mxu1 %v5108_v24 }
 0x1b5   :  { %v378_v9 = vsel %vm374_vm2, %v373_v6, %v274_v1 }
 0x1b6   :  { %v338_v11 = vpop.permute.xlu1 %337 }
 0x1b7   :  { %v297_v8 = vpop.permute.xlu0 %296  ;;  %4540 = vmatpush3.bf16.msra.mxu0 %v5102_v5  ;;  %4913 = vmatpush3.bf16.msra.mxu1 %v5108_v24 }
 0x1b8   :  { %v383_v10 = vsel %vm379_vm3, %v378_v9, %v297_v8  ;;  %4541 = vmatprep.subr.bf16.mxu0 %v5103_v19  ;;  %4914 = vmatprep.subr.bf16.mxu1 %v5111_v27 }
 0x1b9   :  { %v388_v13 = vsel %vm384_vm4, %v383_v10, %v308_v3 }
 0x1ba   :  { %v368_v15 = vpop.permute.xlu1 %367 }
 0x1bb   :  { %v327_v12 = vpop.permute.xlu0 %326  ;;  %4542 = vmatpush3.bf16.msra.mxu0 %v5104_v20  ;;  %4915 = vmatpush3.bf16.msra.mxu1 %v5111_v27 }
 0x1bc   :  { %v393_v14 = vsel %vm389_vm5, %v388_v13, %v327_v12  ;;  %4543 = vmatprep.subr.bf16.mxu0 %v5106_v22  ;;  %4916 = vmatprep.subr.bf16.mxu1 %v5114_v30 }
 0x1bd   :  { %v398_v17 = vsel %vm394_vm6, %v393_v14, %v338_v11 }
 0x1bf   :  { %v357_v16 = vpop.permute.xlu0 %356  ;;  %4544 = vmatpush3.bf16.msra.mxu0 %v5107_v23  ;;  %4917 = vmatpush3.bf16.msra.mxu1 %v5114_v30 }
 0x1c0   :  { %v410_v18 = vsel %vm406_vm8, %v357_v16, %v368_v15  ;;  %v404_v37 = vsel %vm399_vm0, %v398_v17, %v357_v16  ;;  %4545 = vmatprep.subr.bf16.mxu0 %v5109_v25  ;;  %4918 = vmatprep.subr.bf16.mxu1 %v5117_v33 }
 0x1c1   :  { %4289 = vmatprep.mubr.msk.bf16.mxu0 %vm669_vm14, %v410_v18  ;;  %4291 = vmatprep.mubr.msk.bf16.mxu1 %vm669_vm14, %v410_v18  ;;  %vm6353_vm14 = vcmask 1043456  }
 0x1c2   :  { %733 = vmatmul.mubr.bf16.gmra.mrb[4].mxu0 %v404_v37  ;;  %786 = vmatmul.mubr.bf16.gmra.mrb[4].mxu1 %v404_v37  ;;  %vm6354_vm0 = vmmov %vm6353_vm14 }
 0x1c3   :  { %4546 = vmatpush3.bf16.msra.mxu0 %v5110_v26  ;;  %4919 = vmatpush3.bf16.msra.mxu1 %v5117_v33 }
 0x1c4   :  { %4547 = vmatprep.subr.bf16.mxu0 %v5112_v28  ;;  %4920 = vmatprep.subr.bf16.mxu1 %v5120_v36 }
 0x1c7   :  { %4548 = vmatpush3.bf16.msra.mxu0 %v5113_v29  ;;  %4921 = vmatpush3.bf16.msra.mxu1 %v5120_v36 }
 0x1c8   :  { %4549 = vmatprep.subr.bf16.mxu0 %v5115_v31  ;;  %4922 = vmatprep.subr.bf16.mxu1 %v5123_v40 }
 0x1cb   :  { %4550 = vmatpush3.bf16.msra.mxu0 %v5116_v32  ;;  %4923 = vmatpush3.bf16.msra.mxu1 %v5123_v40 }
 0x1cc   :  { %4551 = vmatprep.subr.bf16.mxu0 %v5118_v34  ;;  %4924 = vmatprep.subr.bf16.mxu1 %v5126_v41 }
 0x1cf   :  { %4552 = vmatpush3.bf16.msra.mxu0 %v5119_v35  ;;  %4925 = vmatpush3.bf16.msra.mxu1 %v5126_v41 }
 0x1d0   :  { %4575 = vmatprep.subr.bf16.mxu0 %v5121_v39  ;;  %4603 = vmatprep.subr.bf16.mxu1 %v5129_v42 }
 0x285   :  { %v724_v50 = vpop.f32.mrb[0].mxu0  ;;  %v777_v51 = vpop.f32.mrb[0].mxu1 }
 0x286   :  { %v725_v52 = vadd.f32 %v724_v50, %v456_v46  ;;  %v778_v53 = vadd.f32 %v777_v51, %v464_v47  ;;  %v726_v54 = vpop.f32.mrb[1].mxu0  ;;  %v779_v55 = vpop.f32.mrb[1].mxu1 }
 0x287   :  { %v727_v56 = vadd.f32 %v726_v54, %v460_v48  ;;  %v780_v57 = vadd.f32 %v779_v55, %v468_v49  ;;  %v728_v58 = vpop.f32.mrb[2].mxu0  ;;  %v781_v1 = vpop.f32.mrb[2].mxu1 }
 0x288   :  { %v729_v59 = vadd.f32 %v728_v58, %v456_v46  ;;  %v782_v60 = vadd.f32 %v781_v1, %v464_v47  ;;  %v730_v61 = vpop.f32.mrb[3].mxu0  ;;  %v783_v62 = vpop.f32.mrb[3].mxu1  ;;  %v796_v7 = vmax.f32 %v725_v52, 0.0  ;;  %v798_v0 = vmax.f32 %v778_v53, 0.0 }
 0x289   :  { %v731_v4 = vadd.f32 %v730_v61, %v460_v48  ;;  %v784_v63 = vadd.f32 %v783_v62, %v468_v49  ;;  %v797_v5 = vmax.f32 %v727_v56, 0.0  ;;  %v799_v6 = vmax.f32 %v780_v57, 0.0 }
 0x28a   :  { %v800_v2 = vmax.f32 %v729_v59, 0.0  ;;  %v802_v3 = vmax.f32 %v782_v60, 0.0 }
 0x28b   :  { %v801_v8 = vmax.f32 %v731_v4, 0.0  ;;  %v803_v9 = vmax.f32 %v784_v63, 0.0 }
 0x28c   :  { %v812_v10 = vpack.c.bf16 %v800_v2, %v796_v7  ;;  %v5916_v11 = vpack.c.bf16 %v802_v3, %v798_v0 }
 0x28d   :  { %v5918_v12 = vpack.c.bf16 %v801_v8, %v797_v5  ;;  %v5920_v13 = vpack.c.bf16 %v803_v9, %v799_v6 }
 0x28e   :  { %v828_v14 = vrot.slane %v812_v10, 6 }
 0x28f   :  { %v829_v51 = vrot.slane %v5918_v12, 6 }
 0x290   :  { %v837_v15 = vsel %vm227_vm7, 0, %v828_v14  ;;  %v854_v37 = vsel %vm227_vm7, %v828_v14, 0 }
 0x291   :  { %v864_v16 = vshll.u32 %v837_v15, 16  ;;  %v892_v26 = vrot.slane %v837_v15, 1  ;;  %v893_v27 = vrot.slane %v854_v37, 1  ;;  %v862_v45 = vshrl.u32 %v837_v15, 16 }
 0x292   :  { %v868_v50 = vshll.u32 %v854_v37, 16  ;;  %v872_v58 = vshrl.u32 %v854_v37, 16  ;;  %v5933_v1 = vsel %vm227_vm7, 0, %v829_v51  ;;  %v5946_v10 = vsel %vm227_vm7, %v829_v51, 0 }
 0x293   :  { %v866_v25 = vrot.slane %v864_v16, 1  ;;  %v931_v55 = vshrl.u32 %v893_v27, 16  ;;  %v934_v56 = vshll.u32 %v893_v27, 16  ;;  %v898_v4 = vrot.slane %v862_v45, 1 }
 0x294   :  { %v870_v57 = vrot.slane %v868_v50, 1  ;;  %v899_v63 = vrot.slane %v864_v16, 2  ;;  %v1305_v2 = vshll.u32 %v5933_v1, 16  ;;  %v901_v8 = vrot.slane %v872_v58, 1 }
 0x295   :  { %v734_v17 = vpop.f32.mrb[4].mxu0  ;;  %v787_v18 = vpop.f32.mrb[4].mxu1  ;;  %v933_v3 = vrot.slane %v931_v55, 1  ;;  %v936_v5 = vrot.slane %v934_v56, 2  ;;  %v902_v9 = vrot.slane %v868_v50, 2  ;;  %v1303_v12 = vshrl.u32 %v5933_v1, 16 }
 0x296   :  { %v736_v19 = vpop.f32.mrb[5].mxu0  ;;  %v789_v20 = vpop.f32.mrb[5].mxu1  ;;  %v735_v28 = vadd.f32 %v734_v17, %v456_v46  ;;  %v788_v29 = vadd.f32 %v787_v18, %v464_v47  ;;  %v874_v18 = vor.u32 %v872_v58, %v870_v57 }
 0x297   :  { %v738_v21 = vpop.f32.mrb[6].mxu0  ;;  %v791_v22 = vpop.f32.mrb[6].mxu1  ;;  %v737_v30 = vadd.f32 %v736_v19, %v460_v48  ;;  %v790_v31 = vadd.f32 %v789_v20, %v468_v49 }
 0x298   :  { %v740_v23 = vpop.f32.mrb[7].mxu0  ;;  %v793_v24 = vpop.f32.mrb[7].mxu1  ;;  %v739_v32 = vadd.f32 %v738_v21, %v456_v46  ;;  %v792_v33 = vadd.f32 %v791_v22, %v464_v47  ;;  %v804_v36 = vmax.f32 %v735_v28, 0.0  ;;  %v806_v39 = vmax.f32 %v788_v29, 0.0 }
 0x299   :  { %v741_v34 = vadd.f32 %v740_v23, %v460_v48  ;;  %v794_v35 = vadd.f32 %v793_v24, %v468_v49  ;;  %v805_v40 = vmax.f32 %v737_v30, 0.0  ;;  %v807_v41 = vmax.f32 %v790_v31, 0.0 }
 0x29a   :  { %v808_v42 = vmax.f32 %v739_v32, 0.0  ;;  %v810_v38 = vmax.f32 %v792_v33, 0.0  ;;  %v894_v47 = vsel %vm264_vm9, %v892_v26, %v893_v27  ;;  %v867_v48 = vor.u32 %v866_v25, %v862_v45 }
 0x29b   :  { %v809_v43 = vmax.f32 %v741_v34, 0.0  ;;  %v811_v44 = vmax.f32 %v794_v35, 0.0  ;;  %v923_v61 = vshrl.u32 %v894_v47, 16  ;;  %v926_v62 = vshll.u32 %v894_v47, 16 }
 0x29c   :  { %v816_v52 = vpack.c.bf16 %v808_v42, %v804_v36  ;;  %v5925_v53 = vpack.c.bf16 %v810_v38, %v806_v39  ;;  %v871_v6 = vsel %vm235_vm11, %v867_v48, %v870_v57  ;;  %v5955_v21 = vrot.slane %v1305_v2, 1 }
 0x29d   :  { %v5927_v54 = vpack.c.bf16 %v809_v43, %v805_v40  ;;  %v5929_v46 = vpack.c.bf16 %v811_v44, %v807_v41  ;;  %v925_v16 = vrot.slane %v923_v61, 1  ;;  %v928_v17 = vrot.slane %v926_v62, 2 }
 0x29e   :  { %v832_v49 = vrot.slane %v816_v52, 6  ;;  %v906_v20 = vshrl.u32 %v871_v6, 16  ;;  %v1309_v22 = vshll.u32 %v5946_v10, 16  ;;  %v1313_v23 = vshrl.u32 %v5946_v10, 16 }
 0x29f   :  { %v937_v24 = vor.u32 %v936_v5, %v933_v3  ;;  %v1339_v25 = vrot.slane %v1303_v12, 1  ;;  %v1340_v26 = vrot.slane %v1305_v2, 2  ;;  %v929_v32 = vor.u32 %v928_v17, %v925_v16  ;;  %v5131_v2 = vld [vmem:[#allocation8 + $0x80] sm:$0xff]  }
 0x2a0   :  { %v5936_v59 = vsel %vm227_vm7, 0, %v832_v49  ;;  %v5939_v60 = vsel %vm227_vm7, %v832_v49, 0  ;;  %v908_v35 = vrot.slane %v906_v20, 1  ;;  %v909_v36 = vshll.u32 %v871_v6, 16 }
 0x2a1   :  { %v877_v7 = vshll.u32 %v5936_v59, 16  ;;  %v881_v0 = vshll.u32 %v5939_v60, 16  ;;  %v895_v14 = vrot.slane %v5936_v59, 1  ;;  %v896_v15 = vrot.slane %v5939_v60, 1 }
 0x2a2   :  { %v875_v27 = vshrl.u32 %v5936_v59, 16  ;;  %v885_v28 = vshrl.u32 %v5939_v60, 16  ;;  %v938_v39 = vsel %vm275_vm12, %v929_v32, %v937_v24  ;;  %v914_v40 = vshrl.u32 %v874_v18, 16 }
 0x2a3   :  { %v879_v37 = vrot.slane %v877_v7, 1  ;;  %v883_v19 = vrot.slane %v881_v0, 1  ;;  %v897_v29 = vsel %vm264_vm9, %v895_v14, %v896_v15  ;;  %v972_v30 = vshrl.u32 %v896_v15, 16  ;;  %4926 = vmatprep.mubr.bf16.mxu1 %v938_v39  ;;  %v5133_v14 = vld [vmem:[#allocation8 + $0xc8] sm:$0xff]  }
 0x2a4   :  { %v975_v31 = vshll.u32 %v896_v15, 16  ;;  %v917_v41 = vshll.u32 %v874_v18, 16  ;;  %v900_v42 = vor.u32 %v899_v63, %v898_v4  ;;  %v911_v38 = vrot.slane %v909_v36, 2  ;;  %v5122_v4 = vld [vmem:[#allocation8] sm:$0xff]  }
 0x2a5   :  { %v880_v33 = vor.u32 %v879_v37, %v875_v27  ;;  %v887_v34 = vor.u32 %v885_v28, %v883_v19  ;;  %v903_v43 = vor.u32 %v902_v9, %v901_v8  ;;  %v964_v44 = vshrl.u32 %v897_v29, 16  ;;  %v5124_v9 = vld [vmem:[#allocation8 + $0x48] sm:$0xff]  }
 0x2a6   :  { %v967_v45 = vshll.u32 %v897_v29, 16  ;;  %v916_v50 = vrot.slane %v914_v40, 1  ;;  %v919_v51 = vrot.slane %v917_v41, 2  ;;  %v974_v52 = vrot.slane %v972_v30, 1  ;;  %v5125_v30 = vld [vmem:[#allocation8 + $0x8] sm:$0xff]  }
 0x2a7   :  { %v977_v47 = vrot.slane %v975_v31, 2  ;;  %v912_v48 = vor.u32 %v911_v38, %v908_v35  ;;  %v904_v49 = vsel %vm275_vm12, %v900_v42, %v903_v43  ;;  %v966_v55 = vrot.slane %v964_v44, 1  ;;  %v5135_v40 = vld [vmem:[#allocation8 + $0x88] sm:$0xff]   ;;  %v5128_v38 = vld [vmem:[#allocation8 + $0x10] sm:$0xff]  }
 0x2a8   :  { %v969_v56 = vrot.slane %v967_v45, 2  ;;  %v920_v57 = vor.u32 %v919_v51, %v916_v50  ;;  %v1341_v61 = vor.u32 %v1340_v26, %v1339_v25  ;;  %v1342_v62 = vrot.slane %v1313_v23, 1 }
 0x2a9   :  { %v978_v58 = vor.u32 %v977_v47, %v974_v52  ;;  %v1343_v3 = vrot.slane %v1309_v22, 2  ;;  %v884_v5 = vsel %vm235_vm11, %v880_v33, %v883_v19  ;;  %v955_v6 = vshrl.u32 %v887_v34, 16  ;;  %v5139_v52 = vld [vmem:[#allocation8 + $0x90] sm:$0xff]   ;;  %v5141_v47 = vld [vmem:[#allocation8 + $0xd8] sm:$0xff]  }
 0x2aa   :  { %v970_v63 = vor.u32 %v969_v56, %v966_v55  ;;  %v921_v8 = vsel %vm275_vm12, %v912_v48, %v920_v57  ;;  %v947_v15 = vshrl.u32 %v884_v5, 16  ;;  %v950_v16 = vshll.u32 %v884_v5, 16  ;;  %v5132_v48 = vld [vmem:[#allocation8 + $0x18] sm:$0xff]   ;;  %v5145_v57 = vld [vmem:[#allocation8 + $0xe0] sm:$0xff]  }
 0x2ab   :  { %v958_v17 = vshll.u32 %v887_v34, 16  ;;  %1217 = vmatprep.mubr.bf16.mxu0 %v921_v8  ;;  %v1344_v37 = vor.u32 %v1343_v3, %v1342_v62  ;;  %v957_v20 = vrot.slane %v955_v6, 1  ;;  %v939_v24 = vrot.slane %v875_v27, 1  ;;  %v5127_v27 = vld [vmem:[#allocation8 + $0x50] sm:$0xff]   ;;  %v5143_v55 = vld [vmem:[#allocation8 + $0x98] sm:$0xff]   ;;  %v5147_v3 = vld [vmem:[#allocation8 + $0xa0] sm:$0xff]  }
 0x2ac   :  { %v979_v18 = vsel %vm275_vm12, %v970_v63, %v978_v58  ;;  %1218 = vmatmul.mubr.bf16.vlgmr.msra.gmra.mrb[8].mxu0 %v904_v49  ;;  %v949_v25 = vrot.slane %v947_v15, 1  ;;  %v952_v26 = vrot.slane %v950_v16, 2  ;;  %v940_v19 = vrot.slane %v877_v7, 2  ;;  %v5134_v49 = vld [vmem:[#allocation8 + $0x60] sm:$0xff]   ;;  %v5149_v6 = vld [vmem:[#allocation8 + $0xe8] sm:$0xff]   ;;  %v5142_v16 = vld [vmem:[#allocation8 + $0x70] sm:$0xff]  }
 0x2ad   :  { %4927 = vmatmul.mubr.bf16.vlgmr.msra.gmra.mrb[8].mxu1 %v979_v18  ;;  %v960_v29 = vrot.slane %v958_v17, 2  ;;  %4576 = vmatpush3.bf16.msra.mxu0 %v5122_v4  ;;  %v1345_v31 = vsel %vm275_vm12, %v1341_v61, %v1344_v37  ;;  %v1366_v32 = vrot.slane %v1344_v37, 1  ;;  %v942_v33 = vrot.slane %v885_v28, 1  ;;  %v5136_v61 = vld [vmem:[#allocation8 + $0x20] sm:$0xff]   ;;  %v5138_v4 = vld [vmem:[#allocation8 + $0x68] sm:$0xff]  }
 0x2ae   :  { %4604 = vmatpush3.bf16.msra.mxu1 %v5131_v2  ;;  %v943_v34 = vrot.slane %v881_v0, 2  ;;  %4577 = vmatprep.subr.bf16.mxu0 %v5124_v9  ;;  %v1365_v35 = vrot.slane %v1345_v31, 1  ;;  %v953_v36 = vor.u32 %v952_v26, %v949_v25  ;;  %v941_v41 = vor.u32 %v940_v19, %v939_v24  ;;  %v5137_v0 = vld [vmem:[#allocation8 + $0xd0] sm:$0xff]   ;;  %v5140_v9 = vld [vmem:[#allocation8 + $0x28] sm:$0xff]  }
 0x2af   :  { %4605 = vmatprep.subr.bf16.mxu1 %v5133_v14  ;;  %v961_v39 = vor.u32 %v960_v29, %v957_v20  ;;  %v1308_v7 = vor.u32 %v5955_v21, %v1303_v12  ;;  %v1311_v42 = vrot.slane %v1309_v22, 1  ;;  %v833_v45 = vrot.slane %v5927_v54, 6  ;;  %v5130_v12 = vld [vmem:[#allocation8 + $0x58] sm:$0xff]   ;;  %v5150_v37 = vld [vmem:[#allocation8 + $0xa8] sm:$0xff]   ;;  %v5152_v26 = vld [vmem:[#allocation8 + $0xf0] sm:$0xff]  }
 0x2b0   :  { %v944_v59 = vor.u32 %v943_v34, %v942_v33  ;;  %v1367_v28 = vsel %vm264_vm9, %v1365_v35, %v1366_v32  ;;  %v830_v22 = vrot.slane %v5916_v11, 6  ;;  %v1333_v32 = vrot.slane %v5933_v1, 1  ;;  %v5146_v34 = vld [vmem:[#allocation8 + $0x78] sm:$0xff]  }
 0x2b1   :  { %v962_v60 = vsel %vm275_vm12, %v953_v36, %v961_v39  ;;  %4578 = vmatpush3.bf16.msra.mxu0 %v5125_v30  ;;  %1802 = vmatprep.mubr.bf16.mxu1 %v1367_v28  ;;  %v1312_v43 = vsel %vm235_vm11, %v1308_v7, %v1311_v42  ;;  %v1315_v44 = vor.u32 %v1313_v23, %v1311_v42  ;;  %v5993_v54 = vsel %vm227_vm7, 0, %v833_v45  ;;  %v5144_v30 = vld [vmem:[#allocation8 + $0x30] sm:$0xff]  }
 0x2b2   :  { %4579 = vmatprep.subr.bf16.mxu0 %v5127_v27  ;;  %1225 = vmatprep.mubr.bf16.mxu0 %v962_v60  ;;  %v1359_v21 = vrot.slane %v1312_v43, 1  ;;  %v945_v50 = vsel %vm275_vm12, %v941_v41, %v944_v59  ;;  %v5996_v11 = vsel %vm227_vm7, 0, %v830_v22  ;;  %v5999_v56 = vsel %vm227_vm7, %v833_v45, 0  ;;  %v5153_v27 = vld [vmem:[#allocation8 + $0xb0] sm:$0xff]   ;;  %v5155_v41 = vld [vmem:[#allocation8 + $0xf8] sm:$0xff]   ;;  %v5151_v60 = vld [vmem:[#allocation8 + $0x100] sm:$0xff]  }
 0x2b3   :  { %4606 = vmatpush3.bf16.msra.mxu1 %v5135_v40  ;;  %v1360_v51 = vrot.slane %v1315_v44, 1  ;;  %v1318_v58 = vshll.u32 %v5993_v54, 16  ;;  %v6003_v62 = vshll.u32 %v5996_v11, 16  ;;  %v1316_v63 = vshrl.u32 %v5993_v54, 16  ;;  %v5148_v59 = vld [vmem:[#allocation8 + $0x38] sm:$0xff]  }
 0x2b4   :  { %1226 = vmatmul.mubr.bf16.gmra.mrb[12].mxu0 %v945_v50  ;;  %4607 = vmatprep.subr.bf16.mxu1 %v5137_v0  ;;  %v1322_v2 = vshll.u32 %v5999_v56, 16  ;;  %v1326_v5 = vshrl.u32 %v5999_v56, 16  ;;  %v6009_v14 = vsel %vm227_vm7, %v830_v22, 0  ;;  %v6013_v29 = vshrl.u32 %v5996_v11, 16  ;;  %v5156_v43 = vld [vmem:[#allocation8 + $0xb8] sm:$0xff]  }
 0x2b5   :  { %4580 = vmatpush3.bf16.msra.mxu0 %v5128_v38  ;;  %v1361_v23 = vsel %vm264_vm9, %v1359_v21, %v1360_v51  ;;  %v1320_v8 = vrot.slane %v1318_v58, 1  ;;  %v1892_v15 = vrot.slane %v6003_v62, 1  ;;  %v1346_v17 = vrot.slane %v1316_v63, 1  ;;  %v5158_v51 = vld [vmem:[#allocation10 + $0x40] sm:$0xff]  }
 0x2b6   :  { %4581 = vmatprep.subr.bf16.mxu0 %v5130_v12  ;;  %1753 = vmatprep.mubr.bf16.mxu0 %v1361_v23  ;;  %v1347_v18 = vrot.slane %v1318_v58, 2  ;;  %v1349_v20 = vrot.slane %v1326_v5, 1  ;;  %v1350_v24 = vrot.slane %v1322_v2, 2  ;;  %v1324_v25 = vrot.slane %v1322_v2, 1 }
 0x2b7   :  { %4608 = vmatpush3.bf16.msra.mxu1 %v5139_v52  ;;  %v6016_v19 = vshll.u32 %v6009_v14, 16  ;;  %v1321_v31 = vor.u32 %v1320_v8, %v1316_v63  ;;  %v1334_v33 = vrot.slane %v5946_v10, 1  ;;  %v1893_v39 = vor.u32 %v1892_v15, %v6013_v29  ;;  %v5161_v63 = vld [vmem:[#allocation10 + $0x48] sm:$0xff]   ;;  %v5157_v15 = vld [vmem:[#allocation8 + $0x110] sm:$0xff]  }
 0x2b8   :  { %4609 = vmatprep.subr.bf16.mxu1 %v5141_v47  ;;  %v1348_v35 = vor.u32 %v1347_v18, %v1346_v17  ;;  %v1351_v36 = vor.u32 %v1350_v24, %v1349_v20  ;;  %v1328_v40 = vor.u32 %v1326_v5, %v1324_v25  ;;  %v1336_v0 = vrot.slane %v5993_v54, 1  ;;  %v5163_v24 = vld [vmem:[#allocation10 + $0x8] sm:$0xff]  }
 0x2b9   :  { %4582 = vmatpush3.bf16.msra.mxu0 %v5132_v48  ;;  %v1325_v7 = vsel %vm235_vm11, %v1321_v31, %v1324_v25  ;;  %v1896_v42 = vrot.slane %v6016_v19, 1  ;;  %v1335_v28 = vsel %vm264_vm9, %v1333_v32, %v1334_v33  ;;  %v1337_v38 = vrot.slane %v5999_v56, 1 }
 0x2ba   :  { %4583 = vmatprep.subr.bf16.mxu0 %v5134_v49  ;;  %v1352_v44 = vsel %vm275_vm12, %v1348_v35, %v1351_v36  ;;  %v1353_v12 = vrot.slane %v5933_v1, 2  ;;  %v1371_v21 = vrot.slane %v1325_v7, 1  ;;  %v1372_v22 = vrot.slane %v1328_v40, 1  ;;  %v5154_v49 = vld [vmem:[#allocation8 + $0x108] sm:$0xff]   ;;  %v5166_v7 = vld [vmem:[#allocation10 + $0x10] sm:$0xff]  }
 0x2bb   :  { %4610 = vmatpush3.bf16.msra.mxu1 %v5143_v55  ;;  %v6028_v45 = vsel %vm235_vm11, %v1893_v39, %v1896_v42  ;;  %v1354_v50 = vrot.slane %v5946_v10, 2  ;;  %v1956_v52 = vrot.slane %v5996_v11, 3  ;;  %v834_v47 = vrot.slane %v5925_v53, 6  ;;  %v5160_v10 = vld [vmem:[#allocation10] sm:$0xff]  }
 0x2bc   :  { %4611 = vmatprep.subr.bf16.mxu1 %v5145_v57  ;;  %v1362_v48 = vrot.slane %v1335_v28, 1  ;;  %v1363_v23 = vrot.slane %v1334_v33, 1  ;;  %v1377_v55 = vrot.slane %v1352_v44, 1  ;;  %v1378_v57 = vrot.slane %v1351_v36, 1  ;;  %v5159_v36 = vld [vmem:[#allocation8 + $0x118] sm:$0xff]  }
 0x2bd   :  { %4584 = vmatpush3.bf16.msra.mxu0 %v5136_v61  ;;  %v1965_v58 = vshll.u32 %v6028_v45, 16  ;;  %v1957_v1 = vrot.slane %v6009_v14, 3  ;;  %v1338_v61 = vsel %vm264_vm9, %v1336_v0, %v1337_v38  ;;  %v1355_v53 = vsel %vm298_vm10, %v1353_v12, %v1354_v50  ;;  %v5167_v0 = vld [vmem:[#allocation10 + $0x58] sm:$0xff]  }
 0x2be   :  { %4585 = vmatprep.subr.bf16.mxu0 %v5138_v4  ;;  %v1373_v4 = vsel %vm264_vm9, %v1371_v21, %v1372_v22  ;;  %v6040_v2 = vshrl.u32 %v6009_v14, 16  ;;  %v6046_v5 = vsel %vm227_vm7, %v834_v47, 0  ;;  %v1369_v20 = vrot.slane %v1354_v50, 1  ;;  %v5162_v22 = vld [vmem:[#allocation8 + $0x120] sm:$0xff]  }
 0x2bf   :  { %4612 = vmatpush3.bf16.msra.mxu1 %v5147_v3  ;;  %v6043_v3 = vsel %vm227_vm7, 0, %v834_v47  ;;  %v1958_v8 = vsel %vm328_vm13, %v1956_v52, %v1957_v1  ;;  %v1967_v17 = vrot.slane %v1965_v58, 1  ;;  %v1375_v25 = vrot.slane %v1337_v38, 1  ;;  %v5169_v47 = vld [vmem:[#allocation10 + $0x18] sm:$0xff]  }
 0x2c0   :  { %4613 = vmatprep.subr.bf16.mxu1 %v5149_v6  ;;  %v1364_v6 = vsel %vm264_vm9, %v1362_v48, %v1363_v23  ;;  %v2025_v18 = vshll.u32 %v1958_v8, 16  ;;  %v1963_v31 = vshrl.u32 %v6028_v45, 16  ;;  %v1970_v32 = vshll.u32 %v6040_v2, 16  ;;  %v5170_v23 = vld [vmem:[#allocation10 + $0x60] sm:$0xff]  }
 0x2c1   :  { %4586 = vmatpush3.bf16.msra.mxu0 %v5140_v9  ;;  %v1374_v9 = vrot.slane %v1338_v61, 1  ;;  %v2023_v33 = vshrl.u32 %v1958_v8, 16  ;;  %v1960_v35 = vrot.slane %v6046_v5, 3  ;;  %v1923_v44 = vrot.slane %v6003_v62, 2 }
 0x2c2   :  { %4587 = vmatprep.subr.bf16.mxu0 %v5142_v16  ;;  %v1379_v16 = vsel %vm264_vm9, %v1377_v55, %v1378_v57  ;;  %v1968_v39 = vor.u32 %v1967_v17, %v1963_v31  ;;  %v1925_v12 = vrot.slane %v6040_v2, 1  ;;  %v1926_v21 = vrot.slane %v6016_v19, 2  ;;  %v5168_v17 = vld [vmem:[#allocation8 + $0x130] sm:$0xff]  }
 0x2c3   :  { %4614 = vmatpush3.bf16.msra.mxu1 %v5150_v37  ;;  %v1368_v37 = vrot.slane %v1355_v53, 1  ;;  %v6071_v48 = vshrl.u32 %v6043_v3, 16  ;;  %v1356_v31 = vrot.slane %v5993_v54, 2 }
 0x2c4   :  { %4615 = vmatprep.subr.bf16.mxu1 %v5152_v26  ;;  %v2030_v26 = vshll.u32 %v1957_v1, 16  ;;  %v1927_v57 = vor.u32 %v1926_v21, %v1925_v12  ;;  %v5165_v1 = vld [vmem:[#allocation8 + $0x128] sm:$0xff]  }
 0x2c5   :  { %4588 = vmatpush3.bf16.msra.mxu0 %v5144_v30  ;;  %v5164_v30 = vld [vmem:[#allocation10 + $0x50] sm:$0xff]   ;;  %v1370_v42 = vsel %vm264_vm9, %v1368_v37, %v1369_v20  ;;  %v1943_v37 = vrot.slane %v6003_v62, 3  ;;  %v5174_v20 = vld [vmem:[#allocation10 + $0x28] sm:$0xff]   ;;  %v6094_v62 = vrot.slane %v5920_v13, 6  ;;  %v6104_v13 = vrot.slane %v5929_v46, 6  ;;  %v5182_v46 = vld [vmem:[#allocation10 + $0x38] sm:$0xff]  }
 0x2c6   :  { %4589 = vmatprep.subr.bf16.mxu0 %v5146_v34  ;;  %v2027_v34 = vrot.slane %v2025_v18, 1  ;;  %v1942_v18 = vrot.slane %v6013_v29, 2 }
 0x2c7   :  { %4616 = vmatpush3.bf16.msra.mxu1 %v5153_v27  ;;  %v1959_v27 = vrot.slane %v6043_v3, 3 }
 0x2c8   :  { %4617 = vmatprep.subr.bf16.mxu1 %v5155_v41  ;;  %v2028_v40 = vor.u32 %v2027_v34, %v2023_v33  ;;  %v2032_v41 = vrot.slane %v2030_v26, 1  ;;  %v1946_v26 = vrot.slane %v6016_v19, 3  ;;  %v5177_v33 = vld [vmem:[#allocation10 + $0x70] sm:$0xff]   ;;  %v5171_v34 = vld [vmem:[#allocation8 + $0x138] sm:$0xff]  }
 0x2c9   :  { %4590 = vmatpush3.bf16.msra.mxu0 %v5148_v59  ;;  %v6056_v59 = vshll.u32 %v6043_v3, 16  ;;  %v5178_v19 = vld [vmem:[#allocation10 + $0x30] sm:$0xff]  }
 0x2ca   :  { %4930 = vmatprep.subr.bf16.mxu0 %v5151_v60  ;;  %v6061_v38 = vsel %vm235_vm11, %v2028_v40, %v2032_v41  ;;  %v6101_v40 = vshrl.u32 %v6046_v5, 16  ;;  %v1994_v41 = vshll.u32 %v1925_v12, 16  ;;  %v5185_v12 = vld [vmem:[#allocation10 + $0x140] sm:$0xff]  }
 0x2cb   :  { %4618 = vmatpush3.bf16.msra.mxu1 %v5156_v43  ;;  %v1922_v43 = vrot.slane %v6013_v29, 1  ;;  %v1904_v52 = vrot.slane %v6056_v59, 1 }
 0x2cc   :  { %1754 = vmatmul.mubr.bf16.vlgmr.msra.gmra.mrb[16].mxu0 %v1335_v28  ;;  %4641 = vmatprep.subr.bf16.mxu1 %v5158_v51  ;;  %v1376_v28 = vsel %vm264_vm9, %v1374_v9, %v1375_v25  ;;  %v1961_v51 = vsel %vm328_vm13, %v1959_v27, %v1960_v35  ;;  %v1945_v25 = vrot.slane %v6040_v2, 2  ;;  %v1930_v2 = vrot.slane %v6056_v59, 2 }
 0x2cd   :  { %1761 = vmatprep.mubr.bf16.mxu0 %v1373_v4  ;;  %4931 = vmatpush3.bf16.msra.mxu0 %v5151_v60  ;;  %v1972_v60 = vrot.slane %v1970_v32, 1  ;;  %v1924_v55 = vor.u32 %v1923_v44, %v1922_v43  ;;  %v2097_v58 = vshll.u32 %v1961_v51, 16  ;;  %v1905_v4 = vor.u32 %v1904_v52, %v6071_v48 }
 0x2ce   :  { %4932 = vmatprep.subr.bf16.mxu0 %v5154_v49  ;;  %1803 = vmatmul.mubr.bf16.vlgmr.msra.gmra.mrb[12].mxu1 %v1364_v6  ;;  %v2095_v53 = vshrl.u32 %v1961_v51, 16  ;;  %v5173_v6 = vld [vmem:[#allocation10 + $0x68] sm:$0xff]   ;;  %v1357_v32 = vrot.slane %v5999_v56, 2  ;;  %v2042_v51 = vshll.u32 %v6101_v40, 16  ;;  %v6121_v52 = vsel %vm227_vm7, 0, %v6104_v13 }
 0x2cf   :  { %1810 = vmatprep.mubr.bf16.mxu1 %v1379_v16  ;;  %4642 = vmatpush3.bf16.msra.mxu1 %v5160_v10  ;;  %v1973_v50 = vsel %vm235_vm11, %v1968_v39, %v1972_v60  ;;  %v5172_v10 = vld [vmem:[#allocation10 + $0x20] sm:$0xff]   ;;  %v1928_v8 = vsel %vm275_vm12, %v1924_v55, %v1927_v57  ;;  %v5181_v39 = vld [vmem:[#allocation10 + $0x78] sm:$0xff]   ;;  %v1996_v55 = vrot.slane %v1994_v41, 1  ;;  %v5195_v41 = vld [vmem:[#allocation10 + $0x110] sm:$0xff]  }
 0x2d0   :  { %4643 = vmatprep.subr.bf16.mxu1 %v5161_v63  ;;  %v2099_v63 = vrot.slane %v2097_v58, 1  ;;  %v1989_v29 = vshll.u32 %v1928_v8, 16  ;;  %v1358_v54 = vsel %vm298_vm10, %v1356_v31, %v1357_v32  ;;  %v1381_v44 = vrot.slane %v1357_v32, 1  ;;  %v5179_v58 = vld [vmem:[#allocation10 + $0xc8] sm:$0xff]  }
 0x2d1   :  { %4933 = vmatpush3.bf16.msra.mxu0 %v5154_v49  ;;  %v6074_v49 = vshll.u32 %v6046_v5, 16  ;;  %v1380_v43 = vrot.slane %v1358_v54, 1  ;;  %v5184_v54 = vld [vmem:[#allocation10 + $0x90] sm:$0xff]  }
 0x2d2   :  { %4934 = vmatprep.subr.bf16.mxu0 %v5157_v15  ;;  %v1991_v56 = vrot.slane %v1989_v29, 1  ;;  %v2897_v29 = vrot.slane %v6121_v52, 4 }
 0x2d3   :  { %4644 = vmatpush3.bf16.msra.mxu1 %v5163_v24  ;;  %v1908_v9 = vrot.slane %v6074_v49, 1 }
 0x2d4   :  { %1762 = vmatmul.mubr.bf16.gmra.mrb[20].mxu0 %v1338_v61  ;;  %4645 = vmatprep.subr.bf16.mxu1 %v5164_v30  ;;  %v2102_v61 = vshll.u32 %v1960_v35, 16  ;;  %v1944_v35 = vor.u32 %v1943_v37, %v1942_v18  ;;  %v2873_v37 = vrot.slane %v6121_v52, 3 }
 0x2d5   :  { %4935 = vmatpush3.bf16.msra.mxu0 %v5157_v15  ;;  %4946 = vmatprep.mubr.bf16.mxu0 %v1370_v42  ;;  %v2100_v15 = vor.u32 %v2099_v63, %v2095_v53  ;;  %v6084_v24 = vsel %vm235_vm11, %v1905_v4, %v1908_v9  ;;  %v5175_v42 = vld [vmem:[#allocation10 + $0xc0] sm:$0xff]   ;;  %v1382_v53 = vsel %vm264_vm9, %v1380_v43, %v1381_v44  ;;  %v2044_v9 = vrot.slane %v2042_v51, 1 }
 0x2d6   :  { %4936 = vmatprep.subr.bf16.mxu0 %v5159_v36  ;;  %1811 = vmatmul.mubr.bf16.gmra.mrb[16].mxu1 %v1376_v28  ;;  %v2104_v16 = vrot.slane %v2102_v61, 1  ;;  %v2037_v27 = vshll.u32 %v6084_v24, 16  ;;  %v1987_v28 = vshrl.u32 %v1928_v8, 16  ;;  %v5187_v63 = vld [vmem:[#allocation10 + $0x100] sm:$0xff]   ;;  %v1929_v43 = vrot.slane %v6071_v48, 1 }
 0x2d7   :  { %4646 = vmatpush3.bf16.msra.mxu1 %v5166_v7  ;;  %2608 = vmatprep.mubr.bf16.mxu1 %v1973_v50  ;;  %v6110_v7 = vsel %vm227_vm7, 0, %v6094_v62  ;;  %v2035_v50 = vshrl.u32 %v6084_v24, 16  ;;  %v1933_v44 = vrot.slane %v6074_v49, 2  ;;  %v1952_v51 = vrot.slane %v6101_v40, 2 }
 0x2d8   :  { %4647 = vmatprep.subr.bf16.mxu1 %v5167_v0  ;;  %v6089_v30 = vsel %vm235_vm11, %v2100_v15, %v2104_v16  ;;  %v2039_v60 = vrot.slane %v2037_v27, 1  ;;  %v6114_v0 = vsel %vm227_vm7, %v6094_v62, 0  ;;  %v2894_v57 = vrot.slane %v6110_v7, 4  ;;  %v5189_v15 = vld [vmem:[#allocation10 + $0x148] sm:$0xff]  }
 0x2d9   :  { %4937 = vmatpush3.bf16.msra.mxu0 %v5159_v36  ;;  %v1947_v36 = vor.u32 %v1946_v26, %v1945_v25  ;;  %v2870_v4 = vrot.slane %v6110_v7, 3  ;;  %v5183_v26 = vld [vmem:[#allocation10 + $0xd0] sm:$0xff]  }
 0x2da   :  { %4938 = vmatprep.subr.bf16.mxu0 %v5162_v22 }
 0x2db   :  { %4648 = vmatpush3.bf16.msra.mxu1 %v5169_v47  ;;  %v1948_v21 = vsel %vm309_vm15, %v1944_v35, %v1947_v36  ;;  %v6125_v47 = vsel %vm227_vm7, %v6104_v13, 0  ;;  %v2018_v36 = vshll.u32 %v1945_v25, 16  ;;  %v1932_v25 = vrot.slane %v6101_v40, 1 }
 0x2dc   :  { %4649 = vmatprep.subr.bf16.mxu1 %v5170_v23  ;;  %v5176_v23 = vld [vmem:[#allocation10 + $0x80] sm:$0xff]   ;;  %v2013_v61 = vshll.u32 %v1948_v21, 16  ;;  %v2011_v35 = vshrl.u32 %v1948_v21, 16 }
 0x2dd   :  { %4939 = vmatpush3.bf16.msra.mxu0 %v5162_v22  ;;  %v1992_v22 = vor.u32 %v1991_v56, %v1987_v28  ;;  %v5186_v56 = vld [vmem:[#allocation10 + $0xd8] sm:$0xff]  }
 0x2de   :  { %4940 = vmatprep.subr.bf16.mxu0 %v5165_v1  ;;  %v2015_v32 = vrot.slane %v2013_v61, 1  ;;  %v5197_v28 = vld [vmem:[#allocation10 + $0x158] sm:$0xff]   ;;  %v1934_v61 = vor.u32 %v1933_v44, %v1932_v25 }
 0x2df   :  { %4650 = vmatpush3.bf16.msra.mxu1 %v5172_v10  ;;  %v2895_v10 = vrot.slane %v6114_v0, 4  ;;  %v1997_v8 = vsel %vm235_vm11, %v1992_v22, %v1996_v55  ;;  %v5199_v22 = vld [vmem:[#allocation10 + $0x118] sm:$0xff]   ;;  %v1916_v55 = vrot.slane %v5996_v11, 1 }
 0x2e0   :  { %4651 = vmatprep.subr.bf16.mxu1 %v5173_v6  ;;  %v2871_v6 = vrot.slane %v6114_v0, 3 }
 0x2e1   :  { %4941 = vmatpush3.bf16.msra.mxu0 %v5165_v1  ;;  %v2040_v1 = vor.u32 %v2039_v60, %v2035_v50  ;;  %v6134_v16 = vsel %vm6353_vm14, %v2894_v57, %v2895_v10  ;;  %v5188_v60 = vld [vmem:[#allocation10 + $0x98] sm:$0xff]   ;;  %v1950_v50 = vrot.slane %v6056_v59, 3  ;;  %v5201_v57 = vld [vmem:[#allocation10 + $0x160] sm:$0xff]   ;;  %v1937_v59 = vrot.slane %v6009_v14, 2  ;;  %v5194_v10 = vld [vmem:[#allocation10 + $0xe8] sm:$0xff]  }
 0x2e2   :  { %4942 = vmatprep.subr.bf16.mxu0 %v5168_v17  ;;  %v6137_v18 = vsel %vm328_vm13, %v2870_v4, %v2871_v6 }
 0x2e3   :  { %4652 = vmatpush3.bf16.msra.mxu1 %v5174_v20  ;;  %v2874_v20 = vrot.slane %v6125_v47, 3  ;;  %v2045_v31 = vsel %vm235_vm11, %v2040_v1, %v2044_v9  ;;  %v1931_v1 = vor.u32 %v1930_v2, %v1929_v43 }
 0x2e4   :  { %4653 = vmatprep.subr.bf16.mxu1 %v5177_v33  ;;  %v2898_v33 = vrot.slane %v6125_v47, 4 }
 0x2e5   :  { %4943 = vmatpush3.bf16.msra.mxu0 %v5168_v17  ;;  %v5180_v17 = vld [vmem:[#allocation10 + $0x88] sm:$0xff]   ;;  %v6146_v27 = vsel %vm328_vm13, %v2873_v37, %v2874_v20  ;;  %v1935_v9 = vsel %vm275_vm12, %v1931_v1, %v1934_v61  ;;  %v1919_v20 = vrot.slane %v6043_v3, 1  ;;  %v2090_v61 = vshll.u32 %v1952_v51, 16  ;;  %vm6228_vm13 = vmneg %vm227_vm7 }
 0x2e6   :  { %4944 = vmatprep.subr.bf16.mxu0 %v5171_v34  ;;  %v2059_v44 = vshrl.u32 %v1935_v9, 16  ;;  %vm6357_vm7 = vsmask.f32 4352 }
 0x2e7   :  { %4654 = vmatpush3.bf16.msra.mxu1 %v5178_v19  ;;  %v5193_v19 = vld [vmem:[#allocation10 + $0x150] sm:$0xff]  }
 0x2e8   :  { %4655 = vmatprep.subr.bf16.mxu1 %v5181_v39  ;;  %v2016_v39 = vor.u32 %v2015_v32, %v2011_v35  ;;  %v1920_v32 = vrot.slane %v6046_v5, 1 }
 0x2e9   :  { %4945 = vmatpush3.bf16.msra.mxu0 %v5171_v34  ;;  %v5191_v34 = vld [vmem:[#allocation10 + $0x108] sm:$0xff]  }
 0x2ea   :  { %4669 = vmatprep.subr.bf16.mxu0 %v5175_v42  ;;  %v2020_v42 = vrot.slane %v2018_v36, 1  ;;  %v1940_v36 = vrot.slane %v6046_v5, 2 }
 0x2eb   :  { %4656 = vmatpush3.bf16.msra.mxu1 %v5182_v46  ;;  %v5190_v46 = vld [vmem:[#allocation10 + $0xe0] sm:$0xff]  }
 0x2ec   :  { %4947 = vmatmul.mubr.bf16.vlgmr.msra.gmra.mrb[24].mxu0 %v1382_v53  ;;  %4697 = vmatprep.subr.bf16.mxu1 %v5185_v12  ;;  %v2021_v21 = vsel %vm235_vm11, %v2016_v39, %v2020_v42  ;;  %v1949_v12 = vrot.slane %v6071_v48, 2  ;;  %v1936_v48 = vrot.slane %v5996_v11, 2  ;;  %v5198_v11 = vld [vmem:[#allocation10 + $0xf0] sm:$0xff]   ;;  %v1921_v42 = vsel %vm264_vm9, %v1919_v20, %v1920_v32 }
 0x2ed   :  { %4670 = vmatpush3.bf16.msra.mxu0 %v5176_v23  ;;  %2657 = vmatprep.mubr.bf16.mxu0 %v1997_v8  ;;  %v1953_v23 = vrot.slane %v6074_v49, 3  ;;  %v5203_v49 = vld [vmem:[#allocation10 + $0x120] sm:$0xff]   ;;  %v5196_v8 = vld [vmem:[#allocation10 + $0xa8] sm:$0xff]   ;;  %v5213_v20 = vld [vmem:[#allocation10 + $0x190] sm:$0xff]  }
 0x2ee   :  { %4671 = vmatprep.subr.bf16.mxu0 %v5179_v58  ;;  %2609 = vmatmul.mubr.bf16.vlgmr.msra.gmra.mrb[20].mxu1 %v6028_v45  ;;  %v6151_v45 = vsel %vm6354_vm0, %v2897_v29, %v2898_v33  ;;  %v1917_v58 = vrot.slane %v6009_v14, 1  ;;  %v1951_v4 = vor.u32 %v1950_v50, %v1949_v12  ;;  %v1938_v14 = vsel %vm298_vm10, %v1936_v48, %v1937_v59  ;;  %v5200_v29 = vld [vmem:[#allocation10 + $0xb0] sm:$0xff]  }
 0x2ef   :  { %2616 = vmatprep.mubr.bf16.mxu1 %v2045_v31  ;;  %4698 = vmatpush3.bf16.msra.mxu1 %v5187_v63  ;;  %v1954_v53 = vor.u32 %v1953_v23, %v1952_v51  ;;  %v5205_v63 = vld [vmem:[#allocation10 + $0x168] sm:$0xff]   ;;  %v5208_v31 = vld [vmem:[#allocation10 + $0x170] sm:$0xff]   ;;  %v2001_v33 = vshll.u32 %v1938_v14, 16  ;;  %v2049_v50 = vshll.u32 %v1921_v42, 16  ;;  %v5212_v23 = vld [vmem:[#allocation10 + $0x138] sm:$0xff]   ;;  %v2092_v51 = vrot.slane %v2090_v61, 1 }
 0x2f0   :  { %4699 = vmatprep.subr.bf16.mxu1 %v5189_v15  ;;  %v1918_v6 = vsel %vm264_vm9, %v1916_v55, %v1917_v58  ;;  %v1982_v43 = vshll.u32 %v1917_v58, 16  ;;  %v1999_v55 = vshrl.u32 %v1938_v14, 16  ;;  %v5214_v58 = vld [vmem:[#allocation11 + $0x40] sm:$0xff]   ;;  %v2047_v14 = vshrl.u32 %v1921_v42, 16 }
 0x2f1   :  { %4672 = vmatpush3.bf16.msra.mxu0 %v5180_v17  ;;  %v1977_v15 = vshll.u32 %v1918_v6, 16  ;;  %v5206_v17 = vld [vmem:[#allocation10 + $0x128] sm:$0xff]   ;;  %v1955_v37 = vsel %vm309_vm15, %v1951_v4, %v1954_v53  ;;  %v2003_v2 = vrot.slane %v2001_v33, 1 }
 0x2f2   :  { %4673 = vmatprep.subr.bf16.mxu0 %v5183_v26  ;;  %v2061_v26 = vshll.u32 %v1935_v9, 16  ;;  %v2085_v35 = vshll.u32 %v1955_v37, 16  ;;  %v2083_v1 = vshrl.u32 %v1955_v37, 16  ;;  %v5210_v4 = vld [vmem:[#allocation10 + $0x188] sm:$0xff]   ;;  %v5216_v9 = vld [vmem:[#allocation11] sm:$0xff]  }
 0x2f3   :  { %4700 = vmatpush3.bf16.msra.mxu1 %v5191_v34  ;;  %v1939_v34 = vrot.slane %v6043_v3, 2  ;;  %v5207_v3 = vld [vmem:[#allocation10 + $0x180] sm:$0xff]   ;;  %v2004_v48 = vor.u32 %v2003_v2, %v1999_v55  ;;  %v5219_v33 = vld [vmem:[#allocation11 + $0x8] sm:$0xff]   ;;  %v6210_v55 = vshrl.u32 %v6114_v0, 16 }
 0x2f4   :  { %4701 = vmatprep.subr.bf16.mxu1 %v5193_v19  ;;  %v5202_v19 = vld [vmem:[#allocation10 + $0xf8] sm:$0xff]   ;;  %v2063_v39 = vrot.slane %v2061_v26, 1 }
 0x2f5   :  { %4674 = vmatpush3.bf16.msra.mxu0 %v5184_v54  ;;  %v1979_v54 = vrot.slane %v1977_v15, 1  ;;  %v2054_v15 = vshll.u32 %v1920_v32, 16  ;;  %v5220_v32 = vld [vmem:[#allocation11 + $0x50] sm:$0xff]  }
 0x2f6   :  { %4675 = vmatprep.subr.bf16.mxu0 %v5186_v56  ;;  %2617 = vmatmul.mubr.bf16.gmra.mrb[24].mxu1 %v6084_v24  ;;  %v5192_v24 = vld [vmem:[#allocation10 + $0xa0] sm:$0xff]   ;;  %v5209_v56 = vld [vmem:[#allocation10 + $0x130] sm:$0xff]  }
 0x2f7   :  { %4702 = vmatpush3.bf16.msra.mxu1 %v5195_v41  ;;  %2706 = vmatprep.mubr.bf16.mxu1 %v2021_v21  ;;  %v5211_v41 = vld [vmem:[#allocation10 + $0x178] sm:$0xff]   ;;  %v2087_v21 = vrot.slane %v2085_v35, 1  ;;  %v6198_v35 = vshrl.u32 %v6110_v7, 16 }
 0x2f8   :  { %4703 = vmatprep.subr.bf16.mxu1 %v5197_v28  ;;  %v5204_v28 = vld [vmem:[#allocation10 + $0xb8] sm:$0xff]  }
 0x2f9   :  { %4676 = vmatpush3.bf16.msra.mxu0 %v5188_v60  ;;  %v1975_v60 = vshrl.u32 %v1918_v6, 16  ;;  %v2088_v53 = vor.u32 %v2087_v21, %v2083_v1  ;;  %v2051_v6 = vrot.slane %v2049_v50, 1  ;;  %v5226_v21 = vld [vmem:[#allocation11 + $0x60] sm:$0xff]   ;;  %v5229_v50 = vld [vmem:[#allocation11 + $0x68] sm:$0xff]   ;;  %v5234_v1 = vld [vmem:[#allocation11 + $0x30] sm:$0xff]   ;;  %v2826_v61 = vrot.slane %v6198_v35, 1 }
 0x2fa   :  { %4677 = vmatprep.subr.bf16.mxu0 %v5190_v46  ;;  %v2066_v46 = vshll.u32 %v1932_v25, 16  ;;  %v1984_v25 = vrot.slane %v1982_v43, 1  ;;  %v5223_v43 = vld [vmem:[#allocation11 + $0x58] sm:$0xff]  }
 0x2fb   :  { %4704 = vmatpush3.bf16.msra.mxu1 %v5199_v22  ;;  %v1941_v22 = vsel %vm298_vm10, %v1939_v34, %v1940_v36  ;;  %v1980_v12 = vor.u32 %v1979_v54, %v1975_v60  ;;  %v2093_v26 = vsel %vm235_vm11, %v2088_v53, %v2092_v51  ;;  %v6201_v54 = vshll.u32 %v6114_v0, 16 }
 0x2fc   :  { %4705 = vmatprep.subr.bf16.mxu1 %v5201_v57  ;;  %v2006_v57 = vshll.u32 %v1937_v59, 16  ;;  %v2071_v34 = vshrl.u32 %v1941_v22, 16  ;;  %v6224_v51 = vshll.u32 %v6125_v47, 16 }
 0x2fd   :  { %4678 = vmatpush3.bf16.msra.mxu0 %v5192_v24  ;;  %v2064_v24 = vor.u32 %v2063_v39, %v2059_v44  ;;  %v1985_v59 = vsel %vm235_vm11, %v1980_v12, %v1984_v25  ;;  %v2800_v60 = vrot.slane %v6201_v54, 1  ;;  %v5228_v12 = vld [vmem:[#allocation11 + $0x20] sm:$0xff]  }
 0x2fe   :  { %4679 = vmatprep.subr.bf16.mxu0 %v5194_v10  ;;  %v2073_v10 = vshll.u32 %v1941_v22, 16  ;;  %v5221_v22 = vld [vmem:[#allocation10 + $0x1a8] sm:$0xff]  }
 0x2ff   :  { %4706 = vmatpush3.bf16.msra.mxu1 %v5203_v49  ;;  %v2068_v49 = vrot.slane %v2066_v46, 1  ;;  %v5225_v46 = vld [vmem:[#allocation11 + $0x18] sm:$0xff]  }
 0x300   :  { %4707 = vmatprep.subr.bf16.mxu1 %v5205_v63  ;;  %v6188_v63 = vshll.u32 %v6110_v7, 16  ;;  %v2075_v37 = vrot.slane %v2073_v10, 1  ;;  %v2832_v10 = vrot.slane %v6201_v54, 2 }
 0x301   :  { %4680 = vmatpush3.bf16.msra.mxu0 %v5196_v8  ;;  %v2008_v8 = vrot.slane %v2006_v57, 1  ;;  %v2069_v40 = vsel %vm235_vm11, %v2064_v24, %v2068_v49  ;;  %v5233_v57 = vld [vmem:[#allocation11 + $0x70] sm:$0xff]   ;;  %v5227_v24 = vld [vmem:[#allocation10 + $0x1b8] sm:$0xff]  }
 0x302   :  { %4681 = vmatprep.subr.bf16.mxu0 %v5198_v11  ;;  %v5217_v11 = vld [vmem:[#allocation11 + $0x48] sm:$0xff]   ;;  %v2076_v39 = vor.u32 %v2075_v37, %v2071_v34  ;;  %v2827_v25 = vrot.slane %v6188_v63, 2  ;;  %v5237_v49 = vld [vmem:[#allocation11 + $0x78] sm:$0xff]   ;;  %v5243_v37 = vld [vmem:[#allocation11 + $0x100] sm:$0xff]  }
 0x303   :  { %4708 = vmatpush3.bf16.msra.mxu1 %v5206_v17  ;;  %v2009_v17 = vsel %vm235_vm11, %v2004_v48, %v2008_v8  ;;  %v2831_v48 = vrot.slane %v6210_v55, 1  ;;  %v5239_v34 = vld [vmem:[#allocation11 + $0xd0] sm:$0xff]  }
 0x304   :  { %4709 = vmatprep.subr.bf16.mxu1 %v5208_v31  ;;  %v2796_v31 = vrot.slane %v6188_v63, 1 }
 0x305   :  { %4682 = vmatpush3.bf16.msra.mxu0 %v5200_v29  ;;  %v2052_v29 = vor.u32 %v2051_v6, %v2047_v14  ;;  %v2828_v6 = vor.u32 %v2827_v25, %v2826_v61  ;;  %v2833_v8 = vor.u32 %v2832_v10, %v2831_v48  ;;  %v5235_v14 = vld [vmem:[#allocation11 + $0xc8] sm:$0xff]   ;;  %v5258_v61 = vld [vmem:[#allocation11 + $0xf8] sm:$0xff]   ;;  %v5266_v25 = vld [vmem:[#allocation11 + $0x130] sm:$0xff]  }
 0x306   :  { %4683 = vmatprep.subr.bf16.mxu0 %v5202_v19  ;;  %v2078_v19 = vshll.u32 %v1940_v36, 16  ;;  %v2797_v42 = vor.u32 %v2796_v31, %v6198_v35  ;;  %v5222_v36 = vld [vmem:[#allocation11 + $0x10] sm:$0xff]   ;;  %v5245_v31 = vld [vmem:[#allocation11 + $0x148] sm:$0xff]  }
 0x307   :  { %4710 = vmatpush3.bf16.msra.mxu1 %v5209_v56  ;;  %v2056_v56 = vrot.slane %v2054_v15, 1 }
 0x308   :  { %4711 = vmatprep.subr.bf16.mxu1 %v5211_v41  ;;  %v5215_v41 = vld [vmem:[#allocation10 + $0x198] sm:$0xff]   ;;  %v2080_v5 = vrot.slane %v2078_v19, 1  ;;  %v2801_v44 = vsel %vm235_vm11, %v2797_v42, %v2800_v60  ;;  %v5240_v42 = vld [vmem:[#allocation11 + $0x90] sm:$0xff]  }
 0x309   :  { %4684 = vmatpush3.bf16.msra.mxu0 %v5204_v28  ;;  %v2057_v28 = vsel %vm235_vm11, %v2052_v29, %v2056_v56  ;;  %v5236_v29 = vld [vmem:[#allocation11 + $0x88] sm:$0xff]   ;;  %v2858_v56 = vrot.slane %v6201_v54, 3  ;;  %v5253_v60 = vld [vmem:[#allocation11 + $0x158] sm:$0xff]  }
 0x30a   :  { %4950 = vmatprep.subr.bf16.mxu0 %v5207_v3  ;;  %v2081_v2 = vsel %vm235_vm11, %v2076_v39, %v2080_v5  ;;  %v5247_v39 = vld [vmem:[#allocation11 + $0x108] sm:$0xff]  }
 0x30b   :  { %4712 = vmatpush3.bf16.msra.mxu1 %v5212_v23  ;;  %v5230_v23 = vld [vmem:[#allocation11 + $0x28] sm:$0xff]  }
 0x30c   :  { %2658 = vmatmul.mubr.bf16.vlgmr.msra.gmra.mrb[28].mxu0 %v1985_v59  ;;  %4735 = vmatprep.subr.bf16.mxu1 %v5214_v58  ;;  %v6213_v58 = vshll.u32 %v6121_v52, 16  ;;  %v5238_v59 = vld [vmem:[#allocation11 + $0x38] sm:$0xff]  }
 0x30d   :  { %2665 = vmatprep.mubr.bf16.mxu0 %v2069_v40  ;;  %4951 = vmatpush3.bf16.msra.mxu0 %v5207_v3  ;;  %v5218_v3 = vld [vmem:[#allocation10 + $0x1a0] sm:$0xff]   ;;  %v6221_v40 = vshrl.u32 %v6121_v52, 16 }
 0x30e   :  { %4952 = vmatprep.subr.bf16.mxu0 %v5210_v4  ;;  %2707 = vmatmul.mubr.bf16.vlgmr.msra.gmra.mrb[28].mxu1 %v2009_v17  ;;  %v2806_v53 = vrot.slane %v6213_v58, 1  ;;  %v2836_v10 = vrot.slane %v6213_v58, 2  ;;  %v2819_v17 = vrot.slane %v6114_v0, 1 }
 0x30f   :  { %2714 = vmatprep.mubr.bf16.mxu1 %v2093_v26  ;;  %4736 = vmatpush3.bf16.msra.mxu1 %v5216_v9  ;;  %v5241_v9 = vld [vmem:[#allocation11 + $0x140] sm:$0xff]   ;;  %v2810_v26 = vrot.slane %v6224_v51, 1  ;;  %v2835_v48 = vrot.slane %v6221_v40, 1 }
 0x310   :  { %4737 = vmatprep.subr.bf16.mxu1 %v5217_v11  ;;  %v5232_v11 = vld [vmem:[#allocation11 + $0x80] sm:$0xff]   ;;  %v2807_v15 = vor.u32 %v2806_v53, %v6221_v40  ;;  %v5269_v53 = vld [vmem:[#allocation11 + $0x178] sm:$0xff]  }
 0x311   :  { %4953 = vmatpush3.bf16.msra.mxu0 %v5210_v4  ;;  %v5231_v4 = vld [vmem:[#allocation11 + $0xc0] sm:$0xff]  }
 0x312   :  { %4954 = vmatprep.subr.bf16.mxu0 %v5213_v20  ;;  %v2811_v19 = vsel %vm235_vm11, %v2807_v15, %v2810_v26  ;;  %v2818_v15 = vrot.slane %v6110_v7, 1  ;;  %vm5566_vm11 = vmmov 0  }
 0x313   :  { %4738 = vmatpush3.bf16.msra.mxu1 %v5219_v33  ;;  %v2854_v33 = vrot.slane %v6198_v35, 2 }
 0x314   :  { %2666 = vmatmul.mubr.bf16.gmra.mrb[32].mxu0 %v2057_v28  ;;  %4739 = vmatprep.subr.bf16.mxu1 %v5220_v32  ;;  %v2857_v32 = vrot.slane %v6210_v55, 2  ;;  %v5242_v28 = vld [vmem:[#allocation11 + $0xd8] sm:$0xff]  }
 0x315   :  { %4955 = vmatpush3.bf16.msra.mxu0 %v5213_v20  ;;  %4966 = vmatprep.mubr.bf16.mxu0 %v6061_v38  ;;  %v5224_v38 = vld [vmem:[#allocation10 + $0x1b0] sm:$0xff]   ;;  %v2834_v20 = vsel %vm275_vm12, %v2828_v6, %v2833_v8  ;;  %v5263_v6 = vld [vmem:[#allocation11 + $0x1c0] sm:$0xff]   ;;  %v2861_v8 = vrot.slane %v6221_v40, 2 }
 0x316   :  { %4956 = vmatprep.subr.bf16.mxu0 %v5215_v41  ;;  %2715 = vmatmul.mubr.bf16.gmra.mrb[32].mxu1 %v2081_v2  ;;  %v5246_v2 = vld [vmem:[#allocation11 + $0xe0] sm:$0xff]  }
 0x317   :  { %4740 = vmatpush3.bf16.msra.mxu1 %v5222_v36  ;;  %3518 = vmatprep.mubr.bf16.mxu1 %v2801_v44  ;;  %v2859_v36 = vor.u32 %v2858_v56, %v2857_v32  ;;  %v5255_v44 = vld [vmem:[#allocation11 + $0x118] sm:$0xff]   ;;  %v2820_v56 = vsel %vm264_vm9, %v2818_v15, %v2819_v17  ;;  %v5296_v15 = vld [vmem:[#allocation13 + $0x10] sm:$0xff]  }
 0x318   :  { %4741 = vmatprep.subr.bf16.mxu1 %v5223_v43  ;;  %v5244_v43 = vld [vmem:[#allocation11 + $0x98] sm:$0xff]  }
 0x319   :  { %4957 = vmatpush3.bf16.msra.mxu0 %v5215_v41  ;;  %v5249_v41 = vld [vmem:[#allocation11 + $0x150] sm:$0xff]   ;;  %v5297_v17 = vld [vmem:[#allocation13 + $0x58] sm:$0xff]  }
 0x31a   :  { %4958 = vmatprep.subr.bf16.mxu0 %v5218_v3 }
 0x31b   :  { %4742 = vmatpush3.bf16.msra.mxu1 %v5225_v46  ;;  %v5257_v46 = vld [vmem:[#allocation11 + $0x160] sm:$0xff]  }
 0x31c   :  { %4743 = vmatprep.subr.bf16.mxu1 %v5226_v21  ;;  %v5248_v21 = vld [vmem:[#allocation11 + $0xa0] sm:$0xff]  }
 0x31d   :  { %4959 = vmatpush3.bf16.msra.mxu0 %v5218_v3 }
 0x31e   :  { %4960 = vmatprep.subr.bf16.mxu0 %v5221_v22 }
 0x31f   :  { %4744 = vmatpush3.bf16.msra.mxu1 %v5228_v12  ;;  %v5259_v12 = vld [vmem:[#allocation11 + $0x120] sm:$0xff]  }
 0x320   :  { %4745 = vmatprep.subr.bf16.mxu1 %v5229_v50  ;;  %v5261_v50 = vld [vmem:[#allocation11 + $0x168] sm:$0xff]  }
 0x321   :  { %4961 = vmatpush3.bf16.msra.mxu0 %v5221_v22  ;;  %v5250_v22 = vld [vmem:[#allocation11 + $0xe8] sm:$0xff]  }
 0x322   :  { %4962 = vmatprep.subr.bf16.mxu0 %v5224_v38 }
 0x323   :  { %4746 = vmatpush3.bf16.msra.mxu1 %v5230_v23  ;;  %v5254_v23 = vld [vmem:[#allocation11 + $0xf0] sm:$0xff]  }
 0x324   :  { %4747 = vmatprep.subr.bf16.mxu1 %v5233_v57  ;;  %v6248_v57 = vshrl.u32 %v6125_v47, 16 }
 0x325   :  { %4963 = vmatpush3.bf16.msra.mxu0 %v5224_v38  ;;  %v5252_v38 = vld [vmem:[#allocation11 + $0xa8] sm:$0xff]  }
 0x326   :  { %4964 = vmatprep.subr.bf16.mxu0 %v5227_v24 }
 0x327   :  { %4748 = vmatpush3.bf16.msra.mxu1 %v5234_v1  ;;  %v5256_v1 = vld [vmem:[#allocation11 + $0xb0] sm:$0xff]  }
 0x328   :  { %4749 = vmatprep.subr.bf16.mxu1 %v5237_v49  ;;  %v2840_v49 = vrot.slane %v6248_v57, 1 }
 0x329   :  { %4965 = vmatpush3.bf16.msra.mxu0 %v5227_v24  ;;  %v5265_v24 = vld [vmem:[#allocation11 + $0x170] sm:$0xff]  }
 0x32a   :  { %4763 = vmatprep.subr.bf16.mxu0 %v5231_v4  ;;  %v2841_v4 = vrot.slane %v6224_v51, 2 }
 0x32b   :  { %4750 = vmatpush3.bf16.msra.mxu1 %v5238_v59  ;;  %v5260_v59 = vld [vmem:[#allocation11 + $0xb8] sm:$0xff]  }
 0x32c   :  { %4967 = vmatmul.mubr.bf16.vlgmr.msra.gmra.mrb[36].mxu0 %v6089_v30  ;;  %4791 = vmatprep.subr.bf16.mxu1 %v5241_v9  ;;  %v2855_v30 = vrot.slane %v6188_v63, 3  ;;  %v2862_v9 = vrot.slane %v6213_v58, 3  ;;  %v2842_v26 = vor.u32 %v2841_v4, %v2840_v49  ;;  %v2886_v49 = vrot.slane %v6213_v58, 4 }
 0x32d   :  { %4764 = vmatpush3.bf16.msra.mxu0 %v5232_v11  ;;  %3567 = vmatprep.mubr.bf16.mxu0 %v2834_v20  ;;  %v2864_v11 = vrot.slane %v6248_v57, 2  ;;  %v2837_v20 = vor.u32 %v2836_v10, %v2835_v48  ;;  %v5284_v48 = vld [vmem:[#allocation11 + $0x1b0] sm:$0xff]   ;;  %v2885_v10 = vrot.slane %v6221_v40, 3  ;;  %v2888_v4 = vrot.slane %v6248_v57, 3  ;;  %v5293_v40 = vld [vmem:[#allocation13 + $0x48] sm:$0xff]  }
 0x32e   :  { %4765 = vmatprep.subr.bf16.mxu0 %v5235_v14  ;;  %4492 = vmatmul.mubr.msk.bf16.vlgmr.msra.gmra.mrb[36].mxu1 %vm6228_vm13, %v6094_v62  ;;  %v2856_v5 = vor.u32 %v2855_v30, %v2854_v33  ;;  %v5251_v62 = vld [vmem:[#allocation11 + $0x110] sm:$0xff]   ;;  %v2865_v14 = vrot.slane %v6224_v51, 3  ;;  %v2846_v33 = vrot.slane %v6110_v7, 2  ;;  %v2863_v30 = vor.u32 %v2862_v9, %v2861_v8  ;;  %v5291_v8 = vld [vmem:[#allocation13 + $0x40] sm:$0xff]  }
 0x32f   :  { %3526 = vmatprep.mubr.bf16.mxu1 %v2811_v19  ;;  %4792 = vmatpush3.bf16.msra.mxu1 %v5243_v37  ;;  %v5270_v37 = vld [vmem:[#allocation11 + $0x138] sm:$0xff]   ;;  %v5267_v19 = vld [vmem:[#allocation11 + $0x1c8] sm:$0xff]   ;;  %v2882_v7 = vrot.slane %v6201_v54, 4  ;;  %v2887_v9 = vor.u32 %v2886_v49, %v2885_v10  ;;  %v5295_v57 = vld [vmem:[#allocation13 + $0x50] sm:$0xff]  }
 0x330   :  { %4793 = vmatprep.subr.bf16.mxu1 %v5245_v31  ;;  %v2860_v3 = vsel %vm309_vm15, %v2856_v5, %v2859_v36  ;;  %v5273_v31 = vld [vmem:[#allocation11 + $0x200] sm:$0xff]   ;;  %v2866_v32 = vor.u32 %v2865_v14, %v2864_v11  ;;  %v5268_v5 = vld [vmem:[#allocation11 + $0x188] sm:$0xff]  }
 0x331   :  { %4766 = vmatpush3.bf16.msra.mxu0 %v5236_v29  ;;  %v5264_v29 = vld [vmem:[#allocation11 + $0x180] sm:$0xff]  }
 0x332   :  { %4767 = vmatprep.subr.bf16.mxu0 %v5239_v34  ;;  %v2847_v34 = vrot.slane %v6114_v0, 2  ;;  %v5276_v0 = vld [vmem:[#allocation11 + $0x208] sm:$0xff]   ;;  %v5292_v14 = vld [vmem:[#allocation13] sm:$0xff]  }
 0x333   :  { %4794 = vmatpush3.bf16.msra.mxu1 %v5247_v39  ;;  %v2878_v39 = vrot.slane %v6198_v35, 3  ;;  %v2867_v35 = vsel %vm309_vm15, %v2863_v30, %v2866_v32 }
 0x334   :  { %4795 = vmatprep.subr.bf16.mxu1 %v5249_v41  ;;  %v2843_v41 = vsel %vm275_vm12, %v2837_v20, %v2842_v26  ;;  %v2848_v36 = vsel %vm298_vm10, %v2846_v33, %v2847_v34  ;;  %v5299_v20 = vld [vmem:[#allocation13 + $0x60] sm:$0xff]   ;;  %v5301_v26 = vld [vmem:[#allocation13 + $0x68] sm:$0xff]  }
 0x335   :  { %4768 = vmatpush3.bf16.msra.mxu0 %v5240_v42  ;;  %v2879_v42 = vrot.slane %v6188_v63, 4  ;;  %v2822_v63 = vrot.slane %v6125_v47, 1 }
 0x336   :  { %4769 = vmatprep.subr.bf16.mxu0 %v5242_v28  ;;  %4494 = vmatmul.mubr.msk.bf16.gmra.mrb[40].mxu1 %vm6228_vm13, %v6104_v13  ;;  %v5262_v13 = vld [vmem:[#allocation11 + $0x128] sm:$0xff]   ;;  %v2881_v28 = vrot.slane %v6210_v55, 3 }
 0x337   :  { %4796 = vmatpush3.bf16.msra.mxu1 %v5251_v62  ;;  %3616 = vmatprep.mubr.bf16.mxu1 %v2860_v3  ;;  %v5271_v62 = vld [vmem:[#allocation11 + $0x1d0] sm:$0xff]   ;;  %v2880_v55 = vor.u32 %v2879_v42, %v2878_v39  ;;  %v2849_v3 = vrot.slane %v6121_v52, 2 }
 0x338   :  { %4797 = vmatprep.subr.bf16.mxu1 %v5253_v60  ;;  %v2821_v60 = vrot.slane %v6121_v52, 1  ;;  %v2883_v54 = vor.u32 %v2882_v7, %v2881_v28  ;;  %v5285_v52 = vld [vmem:[#allocation11 + $0x220] sm:$0xff]   ;;  %v5304_v39 = vld [vmem:[#allocation13 + $0x30] sm:$0xff]   ;;  %v5305_v28 = vld [vmem:[#allocation13 + $0x78] sm:$0xff]  }
 0x339   :  { %4770 = vmatpush3.bf16.msra.mxu0 %v5244_v43  ;;  %v5279_v43 = vld [vmem:[#allocation11 + $0x210] sm:$0xff]  }
 0x33a   :  { %4771 = vmatprep.subr.bf16.mxu0 %v5246_v2  ;;  %v5272_v2 = vld [vmem:[#allocation11 + $0x190] sm:$0xff]  }
 0x33b   :  { %4798 = vmatpush3.bf16.msra.mxu1 %v5255_v44  ;;  %v2850_v44 = vrot.slane %v6125_v47, 2  ;;  %v5278_v47 = vld [vmem:[#allocation11 + $0x1a0] sm:$0xff]  }
 0x33c   :  { %4799 = vmatprep.subr.bf16.mxu1 %v5257_v46  ;;  %v5274_v46 = vld [vmem:[#allocation11 + $0x1d8] sm:$0xff]  }
 0x33d   :  { %4772 = vmatpush3.bf16.msra.mxu0 %v5248_v21  ;;  %v2823_v21 = vsel %vm264_vm9, %v2821_v60, %v2822_v63  ;;  %vm6358_vm9 = vmmov %vm6357_vm7 }
 0x33e   :  { %4773 = vmatprep.subr.bf16.mxu0 %v5250_v22  ;;  %v2884_v22 = vsel %vm6357_vm7, %v2880_v55, %v2883_v54 }
 0x33f   :  { %4800 = vmatpush3.bf16.msra.mxu1 %v5259_v12  ;;  %v5282_v12 = vld [vmem:[#allocation11 + $0x218] sm:$0xff]  }
 0x340   :  { %4801 = vmatprep.subr.bf16.mxu1 %v5261_v50  ;;  %v5275_v50 = vld [vmem:[#allocation11 + $0x198] sm:$0xff]  }
 0x341   :  { %4774 = vmatpush3.bf16.msra.mxu0 %v5252_v38  ;;  %v2851_v38 = vsel %vm298_vm10, %v2849_v3, %v2850_v44  ;;  %vm3753_vm10 = vcmask 1041409  }
 0x342   :  { %4775 = vmatprep.subr.bf16.mxu0 %v5254_v23  ;;  %v5277_v23 = vld [vmem:[#allocation11 + $0x1e0] sm:$0xff]  }
 0x343   :  { %4802 = vmatpush3.bf16.msra.mxu1 %v5262_v13  ;;  %v5280_v13 = vld [vmem:[#allocation11 + $0x1e8] sm:$0xff]  }
 0x344   :  { %4803 = vmatprep.subr.bf16.mxu1 %v5265_v24  ;;  %v5288_v24 = vld [vmem:[#allocation11 + $0x228] sm:$0xff]  }
 0x345   :  { %4776 = vmatpush3.bf16.msra.mxu0 %v5256_v1  ;;  %v5281_v1 = vld [vmem:[#allocation11 + $0x1a8] sm:$0xff]  }
 0x346   :  { %4777 = vmatprep.subr.bf16.mxu0 %v5258_v61  ;;  %v5283_v61 = vld [vmem:[#allocation11 + $0x1f0] sm:$0xff]  }
 0x347   :  { %4804 = vmatpush3.bf16.msra.mxu1 %v5266_v25  ;;  %v5289_v25 = vld [vmem:[#allocation11 + $0x230] sm:$0xff]  }
 0x348   :  { %4805 = vmatprep.subr.bf16.mxu1 %v5269_v53  ;;  %v2889_v53 = vrot.slane %v6224_v51, 4  ;;  %v5294_v51 = vld [vmem:[#allocation13 + $0x8] sm:$0xff]  }
 0x349   :  { %4778 = vmatpush3.bf16.msra.mxu0 %v5260_v59  ;;  %v5290_v59 = vld [vmem:[#allocation11 + $0x238] sm:$0xff]  }
 0x34a   :  { %4819 = vmatprep.subr.bf16.mxu0 %v5263_v6  ;;  %v5287_v6 = vld [vmem:[#allocation11 + $0x1b8] sm:$0xff]   ;;  %v2890_v11 = vor.u32 %v2889_v53, %v2888_v4 }
 0x34b   :  { %4806 = vmatpush3.bf16.msra.mxu1 %v5270_v37  ;;  %v5298_v37 = vld [vmem:[#allocation13 + $0x18] sm:$0xff]  }
 0x34c   :  { %3568 = vmatmul.mubr.bf16.vlgmr.msra.gmra.mrb[40].mxu0 %v2820_v56  ;;  %4970 = vmatprep.subr.bf16.mxu1 %v5273_v31  ;;  %v2891_v58 = vsel %vm6358_vm9, %v2887_v9, %v2890_v11 }
 0x34d   :  { %3575 = vmatprep.mubr.bf16.mxu0 %v2843_v41  ;;  %4820 = vmatpush3.bf16.msra.mxu0 %v5264_v29 }
 0x34e   :  { %4821 = vmatprep.subr.bf16.mxu0 %v5267_v19  ;;  %3617 = vmatmul.mubr.bf16.vlgmr.msra.gmra.mrb[44].mxu1 %v2848_v36  ;;  %v4292_v19 = vld [vmem:[%s6345_s8] ss:$0 sm:$0xff] }
 0x34f   :  { %3624 = vmatprep.mubr.bf16.mxu1 %v2867_v35  ;;  %4971 = vmatpush3.bf16.msra.mxu1 %v5273_v31  ;;  %v5302_v31 = vld [vmem:[#allocation13 + $0x28] sm:$0xff]  }
 0x350   :  { %4972 = vmatprep.subr.bf16.mxu1 %v5276_v0 }
 0x351   :  { %4822 = vmatpush3.bf16.msra.mxu0 %v5268_v5 }
 0x352   :  { %4823 = vmatprep.subr.bf16.mxu0 %v5271_v62  ;;  %v5306_v62 = vld [vmem:[#allocation13 + $0x38] sm:$0xff]  }
 0x353   :  { %4973 = vmatpush3.bf16.msra.mxu1 %v5276_v0 }
 0x354   :  { %3576 = vmatmul.mubr.bf16.gmra.mrb[44].mxu0 %v2823_v21  ;;  %4974 = vmatprep.subr.bf16.mxu1 %v5279_v43 }
 0x355   :  { %4824 = vmatpush3.bf16.msra.mxu0 %v5272_v2  ;;  %3665 = vmatprep.mubr.bf16.mxu0 %v2884_v22 }
 0x356   :  { %4825 = vmatprep.subr.bf16.mxu0 %v5274_v46  ;;  %3625 = vmatmul.mubr.bf16.gmra.mrb[48].mxu1 %v2851_v38 }
 0x357   :  { %4975 = vmatpush3.bf16.msra.mxu1 %v5279_v43  ;;  %4986 = vmatprep.mubr.bf16.mxu1 %v6134_v16  ;;  %v5286_v16 = vld [vmem:[#allocation11 + $0x1f8] sm:$0xff]  }
 0x358   :  { %4976 = vmatprep.subr.bf16.mxu1 %v5282_v12 }
 0x359   :  { %4826 = vmatpush3.bf16.msra.mxu0 %v5275_v50 }
 0x35a   :  { %4827 = vmatprep.subr.bf16.mxu0 %v5277_v23 }
 0x35b   :  { %4977 = vmatpush3.bf16.msra.mxu1 %v5282_v12 }
 0x35c   :  { %4978 = vmatprep.subr.bf16.mxu1 %v5285_v52 }
 0x35d   :  { %4828 = vmatpush3.bf16.msra.mxu0 %v5278_v47 }
 0x35e   :  { %4829 = vmatprep.subr.bf16.mxu0 %v5280_v13 }
 0x35f   :  { %4979 = vmatpush3.bf16.msra.mxu1 %v5285_v52 }
 0x360   :  { %4980 = vmatprep.subr.bf16.mxu1 %v5288_v24 }
 0x361   :  { %4830 = vmatpush3.bf16.msra.mxu0 %v5281_v1 }
 0x362   :  { %4831 = vmatprep.subr.bf16.mxu0 %v5283_v61 }
 0x363   :  { %4981 = vmatpush3.bf16.msra.mxu1 %v5288_v24 }
 0x364   :  { %4982 = vmatprep.subr.bf16.mxu1 %v5289_v25 }
 0x365   :  { %4832 = vmatpush3.bf16.msra.mxu0 %v5284_v48 }
 0x366   :  { %4833 = vmatprep.subr.bf16.mxu0 %v5286_v16 }
 0x367   :  { %4983 = vmatpush3.bf16.msra.mxu1 %v5289_v25 }
 0x368   :  { %4984 = vmatprep.subr.bf16.mxu1 %v5290_v59 }
 0x369   :  { %4834 = vmatpush3.bf16.msra.mxu0 %v5287_v6  ;;  %v4318_v6 = vld [vmem:[%s6345_s8 + $0x1] ss:$0 sm:$0xff] }
 0x36a   :  { %4857 = vmatprep.subr.bf16.mxu0 %v5291_v8 }
 0x36b   :  { %4985 = vmatpush3.bf16.msra.mxu1 %v5290_v59 }
 0x36c   :  { %3666 = vmatmul.mubr.bf16.vlgmr.msra.gmra.mrb[48].mxu0 %v6137_v18  ;;  %v5300_v18 = vld [vmem:[#allocation13 + $0x20] sm:$0xff]  }
 0x36d   :  { %3673 = vmatprep.mubr.bf16.mxu0 %v2891_v58  ;;  %4858 = vmatpush3.bf16.msra.mxu0 %v5292_v14 }
 0x36e   :  { %4987 = vmatmul.mubr.bf16.vlgmr.msra.gmra.mrb[52].mxu1 %v6151_v45  ;;  %4859 = vmatprep.subr.bf16.mxu0 %v5293_v40  ;;  %v5303_v45 = vld [vmem:[#allocation13 + $0x70] sm:$0xff]  }
 0x371   :  { %4860 = vmatpush3.bf16.msra.mxu0 %v5294_v51 }
 0x372   :  { %4861 = vmatprep.subr.bf16.mxu0 %v5295_v57 }
 0x374   :  { %3674 = vmatmul.mubr.bf16.gmra.mrb[52].mxu0 %v6146_v27 }
 0x375   :  { %4862 = vmatpush3.bf16.msra.mxu0 %v5296_v15 }
 0x376   :  { %4863 = vmatprep.subr.bf16.mxu0 %v5297_v17 }
 0x379   :  { %4864 = vmatpush3.bf16.msra.mxu0 %v5298_v37 }
 0x37a   :  { %4865 = vmatprep.subr.bf16.mxu0 %v5299_v20 }
 0x37d   :  { %4866 = vmatpush3.bf16.msra.mxu0 %v5300_v18 }
 0x37e   :  { %4867 = vmatprep.subr.bf16.mxu0 %v5301_v26 }
 0x37f   :  { %v4553_v29 = vpop.f32.mrb[8].mxu0 }
 0x380   :  { %v4928_v33 = vpop.f32.mrb[8].mxu1  ;;  %v4554_v34 = vpop.f32.mrb[9].mxu0 }
 0x381   :  { %v1268_v27 = vpop.f32.mrb[9].mxu1  ;;  %v4555_v30 = vadd.f32 %v4554_v34, %v4553_v29  ;;  %v4556_v32 = vpop.f32.mrb[10].mxu0  ;;  %4868 = vmatpush3.bf16.msra.mxu0 %v5302_v31 }
 0x382   :  { %v4929_v56 = vpop.f32.mrb[10].mxu1  ;;  %v4557_v41 = vpop.f32.mrb[11].mxu0  ;;  %4869 = vmatprep.subr.bf16.mxu0 %v5303_v45 }
 0x383   :  { %v1271_v42 = vpop.f32.mrb[11].mxu1  ;;  %v4558_v7 = vadd.f32 %v4557_v41, %v4556_v32  ;;  %v1220_v0 = vadd.f32 %v4555_v30, %v4292_v19 }
 0x385   :  { %v1269_v5 = vadd.f32 %v1268_v27, %v1220_v0  ;;  %v1223_v36 = vadd.f32 %v4558_v7, %v4292_v19  ;;  %4870 = vmatpush3.bf16.msra.mxu0 %v5304_v39 }
 0x386   :  { %4871 = vmatprep.subr.bf16.mxu0 %v5305_v28 }
 0x387   :  { %v1272_v35 = vadd.f32 %v1271_v42, %v1223_v36  ;;  %v4559_v60 = vpop.f32.mrb[12].mxu0  ;;  %v1283_v55 = vmax.f32 %v1269_v5, 0.0 }
 0x388   :  { %v4560_v63 = vpop.f32.mrb[13].mxu0 }
 0x389   :  { %v1284_v54 = vmax.f32 %v1272_v35, 0.0  ;;  %v4561_v43 = vadd.f32 %v4560_v63, %v4559_v60  ;;  %v4562_v2 = vpop.f32.mrb[14].mxu0  ;;  %4872 = vmatpush3.bf16.msra.mxu0 %v5306_v62 }
 0x38a   :  { %v4563_v3 = vpop.f32.mrb[15].mxu0 }
 0x38b   :  { %v1287_v44 = vadd.f32 %v1284_v54, %v1283_v55  ;;  %v1228_v46 = vadd.f32 %v4561_v43, %v4292_v19  ;;  %v4564_v21 = vadd.f32 %v4563_v3, %v4562_v2 }
 0x38d   :  { %v1288_v22 = vrot.slane %v1287_v44, 4  ;;  %v1277_v12 = vadd.f32 %v4928_v33, %v1228_v46  ;;  %v1231_v50 = vadd.f32 %v4564_v21, %v4292_v19 }
 0x38f   :  { %v1289_v38 = vadd.f32 %v1288_v22, %v1287_v44  ;;  %v1280_v23 = vadd.f32 %v4929_v56, %v1231_v50  ;;  %v1285_v47 = vmax.f32 %v1277_v12, 0.0 }
 0x391   :  { %v1290_v52 = vrot.slane %v1289_v38, 2  ;;  %v1286_v13 = vmax.f32 %v1280_v23, 0.0 }
 0x393   :  { %v1294_v24 = vadd.f32 %v1286_v13, %v1285_v47  ;;  %v1291_v1 = vadd.f32 %v1290_v52, %v1289_v38 }
 0x395   :  { %v1295_v61 = vrot.slane %v1294_v24, 4  ;;  %v1292_v48 = vrot.slane %v1291_v1, 1 }
 0x397   :  { %v1296_v25 = vadd.f32 %v1295_v61, %v1294_v24  ;;  %v1293_v49 = vadd.f32 %v1292_v48, %v1291_v1  ;;  %v5307_v61 = vld [vmem:[#allocation13 + $0xc0] sm:$0xff]  }
 0x398   :  { %4879 = vmatprep.subr.bf16.mxu1 %v5307_v61 }
 0x399   :  { %v1297_v16 = vrot.slane %v1296_v25, 2  ;;  %v1301_v9 = vmul.f32 0.0625, %v1293_v49 }
 0x39b   :  { %v1298_v10 = vadd.f32 %v1297_v16, %v1296_v25 }
 0x39d   :  { %v1299_v4 = vrot.slane %v1298_v10, 1 }
 0x39f   :  { %v1300_v53 = vadd.f32 %v1299_v4, %v1298_v10  ;;  %v4591_v59 = vpop.f32.mrb[16].mxu0  ;;  %v5308_v10 = vld [vmem:[#allocation13 + $0x80] sm:$0xff]  }
 0x3a0   :  { %v4592_v8 = vpop.f32.mrb[17].mxu0  ;;  %4880 = vmatpush3.bf16.msra.mxu1 %v5308_v10 }
 0x3a1   :  { %v1302_v11 = vmul.f32 0.0625, %v1300_v53  ;;  %v4593_v14 = vadd.f32 %v4592_v8, %v4591_v59  ;;  %v4594_v40 = vpop.f32.mrb[18].mxu0  ;;  %v4619_v58 = vpop.f32.mrb[12].mxu1 }
 0x3a2   :  { %v4595_v51 = vpop.f32.mrb[19].mxu0  ;;  %v4620_v57 = vpop.f32.mrb[13].mxu1 }
 0x3a3   :  { %v1756_v15 = vadd.f32 %v4593_v14, %v4318_v6  ;;  %v4596_v17 = vadd.f32 %v4595_v51, %v4594_v40  ;;  %v4621_v37 = vadd.f32 %v4620_v57, %v4619_v58  ;;  %v4622_v20 = vpop.f32.mrb[14].mxu1  ;;  %v6293_v18 = vsel %vm3753_vm10, %v1302_v11, %v1301_v9  ;;  %v5309_v51 = vld [vmem:[#allocation13 + $0xc8] sm:$0xff]  }
 0x3a4   :  { %v4623_v26 = vpop.f32.mrb[15].mxu1  ;;  %4881 = vmatprep.subr.bf16.mxu1 %v5309_v51 }
 0x3a5   :  { %v1759_v31 = vadd.f32 %v4596_v17, %v4318_v6  ;;  %v4624_v45 = vadd.f32 %v4623_v26, %v4622_v20  ;;  %v1805_v29 = vadd.f32 %v4621_v37, %v1756_v15 }
 0x3a7   :  { %v4597_v33 = vpop.f32.mrb[20].mxu0  ;;  %v1808_v34 = vadd.f32 %v4624_v45, %v1759_v31 }
 0x3a8   :  { %v4598_v19 = vpop.f32.mrb[21].mxu0 }
 0x3a9   :  { %v4599_v27 = vadd.f32 %v4598_v19, %v4597_v33  ;;  %v4600_v30 = vpop.f32.mrb[22].mxu0  ;;  %v4625_v32 = vpop.f32.mrb[16].mxu1  ;;  %v4360_v33 = vld [vmem:[%s6345_s8 + $0x2] ss:$0 sm:$0xff]  ;;  %v5310_v19 = vld [vmem:[#allocation13 + $0x88] sm:$0xff]  }
 0x3aa   :  { %v4601_v56 = vpop.f32.mrb[23].mxu0  ;;  %v4626_v39 = vpop.f32.mrb[17].mxu1  ;;  %4882 = vmatpush3.bf16.msra.mxu1 %v5310_v19 }
 0x3ab   :  { %v1764_v41 = vadd.f32 %v4599_v27, %v4318_v6  ;;  %v4602_v42 = vadd.f32 %v4601_v56, %v4600_v30  ;;  %v4627_v28 = vadd.f32 %v4626_v39, %v4625_v32  ;;  %v4628_v7 = vpop.f32.mrb[18].mxu1  ;;  %v5311_v27 = vld [vmem:[#allocation13 + $0xd0] sm:$0xff]  }
 0x3ac   :  { %v4629_v0 = vpop.f32.mrb[19].mxu1  ;;  %4883 = vmatprep.subr.bf16.mxu1 %v5311_v27 }
 0x3ad   :  { %v1767_v5 = vadd.f32 %v4602_v42, %v4318_v6  ;;  %v4630_v36 = vadd.f32 %v4629_v0, %v4628_v7  ;;  %v1813_v62 = vadd.f32 %v4627_v28, %v1764_v41  ;;  %v5312_v42 = vld [vmem:[#allocation13 + $0x90] sm:$0xff]  }
 0x3ae   :  { %4884 = vmatpush3.bf16.msra.mxu1 %v5312_v42 }
 0x3af   :  { %v1816_v35 = vadd.f32 %v4630_v36, %v1767_v5 }
 0x3bf   :  { %v4948_v60 = vpop.f32.mrb[24].mxu0 }
 0x3c0   :  { %v1862_v63 = vadd.f32 %v4948_v60, %v1813_v62  ;;  %v1853_v55 = vpop.f32.mrb[25].mxu0 }
 0x3c1   :  { %v1854_v54 = vadd.f32 %v1853_v55, %v1805_v29  ;;  %v4949_v43 = vpop.f32.mrb[26].mxu0  ;;  %v4657_v2 = vpop.f32.mrb[20].mxu1  ;;  %v3768_v29 = vpack.c.bf16 %v6293_v18, %v6293_v18  ;;  %v5313_v18 = vld [vmem:[#allocation13 + $0xd8] sm:$0xff]  }
 0x3c2   :  { %v1865_v3 = vadd.f32 %v4949_v43, %v1816_v35  ;;  %v1856_v44 = vpop.f32.mrb[27].mxu0  ;;  %v4658_v46 = vpop.f32.mrb[21].mxu1  ;;  %v1870_v50 = vmax.f32 %v1862_v63, 0.0  ;;  %v5314_v43 = vld [vmem:[#allocation13 + $0x98] sm:$0xff]   ;;  %4885 = vmatprep.subr.bf16.mxu1 %v5313_v18 }
 0x3c3   :  { %v1857_v21 = vadd.f32 %v1856_v44, %v1808_v34  ;;  %v4659_v22 = vadd.f32 %v4658_v46, %v4657_v2  ;;  %v4660_v12 = vpop.f32.mrb[22].mxu1  ;;  %v1868_v52 = vmax.f32 %v1854_v54, 0.0  ;;  %v5315_v2 = vld [vmem:[#allocation13 + $0xe0] sm:$0xff]   ;;  %4886 = vmatpush3.bf16.msra.mxu1 %v5314_v43 }
 0x3c4   :  { %v1871_v38 = vmax.f32 %v1865_v3, 0.0  ;;  %v4661_v23 = vpop.f32.mrb[23].mxu1  ;;  %4887 = vmatprep.subr.bf16.mxu1 %v5315_v2 }
 0x3c5   :  { %v1869_v47 = vmax.f32 %v1857_v21, 0.0  ;;  %v4662_v13 = vadd.f32 %v4661_v23, %v4660_v12  ;;  %v2611_v32 = vadd.f32 %v4659_v22, %v4360_v33 }
 0x3c6   :  { %v1879_v24 = vadd.f32 %v1871_v38, %v1870_v50  ;;  %v5316_v38 = vld [vmem:[#allocation13 + $0xa0] sm:$0xff]  }
 0x3c7   :  { %v1872_v1 = vadd.f32 %v1869_v47, %v1868_v52  ;;  %v2614_v0 = vadd.f32 %v4662_v13, %v4360_v33  ;;  %v5317_v47 = vld [vmem:[#allocation13 + $0xe8] sm:$0xff]   ;;  %4888 = vmatpush3.bf16.msra.mxu1 %v5316_v38 }
 0x3c8   :  { %v1880_v25 = vrot.slane %v1879_v24, 4  ;;  %4889 = vmatprep.subr.bf16.mxu1 %v5317_v47 }
 0x3c9   :  { %v1873_v48 = vrot.slane %v1872_v1, 4  ;;  %v4663_v16 = vpop.f32.mrb[24].mxu1 }
 0x3ca   :  { %v1881_v49 = vadd.f32 %v1880_v25, %v1879_v24  ;;  %v4664_v4 = vpop.f32.mrb[25].mxu1 }
 0x3cb   :  { %v1874_v53 = vadd.f32 %v1873_v48, %v1872_v1  ;;  %v4665_v59 = vadd.f32 %v4664_v4, %v4663_v16  ;;  %v4666_v6 = vpop.f32.mrb[26].mxu1  ;;  %v5318_v4 = vld [vmem:[#allocation13 + $0xa8] sm:$0xff]  }
 0x3cc   :  { %v1882_v8 = vrot.slane %v1881_v49, 2  ;;  %v4667_v9 = vpop.f32.mrb[27].mxu1  ;;  %4890 = vmatpush3.bf16.msra.mxu1 %v5318_v4 }
 0x3cd   :  { %v1875_v11 = vrot.slane %v1874_v53, 2  ;;  %v4668_v14 = vadd.f32 %v4667_v9, %v4666_v6  ;;  %v2619_v21 = vadd.f32 %v4665_v59, %v4360_v33  ;;  %v5320_v6 = vld [vmem:[#allocation13 + $0xb0] sm:$0xff]   ;;  %v5322_v9 = vld [vmem:[#allocation13 + $0xb8] sm:$0xff]  }
 0x3ce   :  { %v1883_v40 = vadd.f32 %v1882_v8, %v1881_v49  ;;  %v5321_v8 = vld [vmem:[#allocation13 + $0xf8] sm:$0xff]  }
 0x3cf   :  { %v1876_v58 = vadd.f32 %v1875_v11, %v1874_v53  ;;  %v2622_v13 = vadd.f32 %v4668_v14, %v4360_v33  ;;  %v5319_v53 = vld [vmem:[#allocation13 + $0xf0] sm:$0xff]  }
 0x3d0   :  { %v1884_v57 = vrot.slane %v1883_v40, 1  ;;  %4891 = vmatprep.subr.bf16.mxu1 %v5319_v53 }
 0x3d1   :  { %v1877_v15 = vrot.slane %v1876_v58, 1  ;;  %4892 = vmatpush3.bf16.msra.mxu1 %v5320_v6 }
 0x3d2   :  { %v1885_v17 = vadd.f32 %v1884_v57, %v1883_v40  ;;  %4893 = vmatprep.subr.bf16.mxu1 %v5321_v8 }
 0x3d3   :  { %v1878_v37 = vadd.f32 %v1877_v15, %v1876_v58 }
 0x3d4   :  { %v1887_v20 = vmul.f32 0.0625, %v1885_v17 }
 0x3d5   :  { %v1886_v26 = vmul.f32 0.0625, %v1878_v37  ;;  %4894 = vmatpush3.bf16.msra.mxu1 %v5322_v9 }
 0x3d7   :  { %v3758_v31 = vsel %vm3753_vm10, %v1887_v20, %v1886_v26 }
 0x3d8   :  { %v3769_v45 = vpack.c.bf16 %v3758_v31, %v3758_v31 }
 0x3da   :  { %4067 = vmatprep.mubr.bf16.mxu0 %v3769_v45 }
 0x3db   :  { %4068 = vmatmul.mubr.bf16.vlgmr.msra.gmra.mrb[56].mxu0 %v3768_v29 }
 0x3df   :  { %v4685_v34 = vpop.f32.mrb[28].mxu0 }
 0x3e0   :  { %v4686_v30 = vpop.f32.mrb[29].mxu0 }
 0x3e1   :  { %v4687_v56 = vadd.f32 %v4686_v30, %v4685_v34  ;;  %v4688_v39 = vpop.f32.mrb[30].mxu0  ;;  %v4713_v41 = vpop.f32.mrb[28].mxu1 }
 0x3e2   :  { %v4689_v28 = vpop.f32.mrb[31].mxu0  ;;  %v4714_v7 = vpop.f32.mrb[29].mxu1 }
 0x3e3   :  { %v2660_v5 = vadd.f32 %v4687_v56, %v2611_v32  ;;  %v4690_v36 = vadd.f32 %v4689_v28, %v4688_v39  ;;  %v4715_v62 = vadd.f32 %v4714_v7, %v4713_v41  ;;  %v4716_v35 = vpop.f32.mrb[30].mxu1 }
 0x3e4   :  { %v4717_v60 = vpop.f32.mrb[31].mxu1 }
 0x3e5   :  { %v2663_v63 = vadd.f32 %v4690_v36, %v2614_v0  ;;  %v4718_v55 = vadd.f32 %v4717_v60, %v4716_v35  ;;  %v2709_v54 = vadd.f32 %v4715_v62, %v2660_v5 }
 0x3e7   :  { %v4691_v3 = vpop.f32.mrb[32].mxu0  ;;  %v2712_v44 = vadd.f32 %v4718_v55, %v2663_v63 }
 0x3e8   :  { %v4692_v46 = vpop.f32.mrb[33].mxu0 }
 0x3e9   :  { %v4693_v22 = vadd.f32 %v4692_v46, %v4691_v3  ;;  %v4694_v12 = vpop.f32.mrb[34].mxu0  ;;  %v4719_v50 = vpop.f32.mrb[32].mxu1 }
 0x3ea   :  { %v4695_v23 = vpop.f32.mrb[35].mxu0  ;;  %v4720_v52 = vpop.f32.mrb[33].mxu1 }
 0x3eb   :  { %v2668_v24 = vadd.f32 %v4693_v22, %v2619_v21  ;;  %v4696_v1 = vadd.f32 %v4695_v23, %v4694_v12  ;;  %v4721_v61 = vadd.f32 %v4720_v52, %v4719_v50  ;;  %v4722_v25 = vpop.f32.mrb[34].mxu1  ;;  %v4418_v21 = vld [vmem:[%s6345_s8 + $0x3] ss:$0 sm:$0xff] }
 0x3ec   :  { %v4723_v48 = vpop.f32.mrb[35].mxu1 }
 0x3ed   :  { %v2671_v16 = vadd.f32 %v4696_v1, %v2622_v13  ;;  %v4724_v10 = vadd.f32 %v4723_v48, %v4722_v25  ;;  %v2717_v49 = vadd.f32 %v4721_v61, %v2668_v24 }
 0x3ef   :  { %v2720_v59 = vadd.f32 %v4724_v10, %v2671_v16 }
 0x3ff   :  { %v4968_v11 = vpop.f32.mrb[36].mxu0 }
 0x400   :  { %v2766_v14 = vadd.f32 %v4968_v11, %v2717_v49  ;;  %v2757_v40 = vpop.f32.mrb[37].mxu0 }
 0x401   :  { %v2758_v58 = vadd.f32 %v2757_v40, %v2709_v54  ;;  %v4969_v51 = vpop.f32.mrb[38].mxu0  ;;  %v4751_v57 = vpop.f32.mrb[36].mxu1 }
 0x402   :  { %v2769_v15 = vadd.f32 %v4969_v51, %v2720_v59  ;;  %v2760_v17 = vpop.f32.mrb[39].mxu0  ;;  %v4752_v37 = vpop.f32.mrb[37].mxu1  ;;  %v2774_v45 = vmax.f32 %v2766_v14, 0.0 }
 0x403   :  { %v2761_v20 = vadd.f32 %v2760_v17, %v2712_v44  ;;  %v4753_v26 = vadd.f32 %v4752_v37, %v4751_v57  ;;  %v4754_v31 = vpop.f32.mrb[38].mxu1  ;;  %v2772_v34 = vmax.f32 %v2758_v58, 0.0 }
 0x404   :  { %v2775_v29 = vmax.f32 %v2769_v15, 0.0  ;;  %v4755_v33 = vpop.f32.mrb[39].mxu1 }
 0x405   :  { %v2773_v19 = vmax.f32 %v2761_v20, 0.0  ;;  %v4756_v27 = vadd.f32 %v4755_v33, %v4754_v31  ;;  %v3521_v50 = vadd.f32 %v4753_v26, %v4418_v21  ;;  %v5323_v33 = vld [vmem:[#allocation14] sm:$0xff]  }
 0x406   :  { %v2783_v30 = vadd.f32 %v2775_v29, %v2774_v45 }
 0x407   :  { %v2776_v32 = vadd.f32 %v2773_v19, %v2772_v34  ;;  %v3524_v24 = vadd.f32 %v4756_v27, %v4418_v21  ;;  %v5565_v34 = vmov 0.0   ;;  %v5324_v19 = vld [vmem:[#allocation14 + $0x8] sm:$0xff]   ;;  %v5325_v27 = vld [vmem:[#allocation14 + $0x10] sm:$0xff]  }
 0x408   :  { %v2784_v56 = vrot.slane %v2783_v30, 4  ;;  %4990 = vmatprep.subr.bf16.mxu0 %v5565_v34  ;;  %5006 = vmatprep.mubr.msk.bf16.mxu0 %vm5566_vm11, %v5565_v34 }
 0x409   :  { %v2777_v39 = vrot.slane %v2776_v32, 4  ;;  %v4757_v41 = vpop.f32.mrb[40].mxu1  ;;  %4991 = vmatpush3.bf16.msra.mxu0 %v5323_v33 }
 0x40a   :  { %v2785_v42 = vadd.f32 %v2784_v56, %v2783_v30  ;;  %v4758_v28 = vpop.f32.mrb[41].mxu1  ;;  %4992 = vmatprep.subr.bf16.mxu0 %v5565_v34  ;;  %v5326_v30 = vld [vmem:[#allocation14 + $0x18] sm:$0xff]  }
 0x40b   :  { %v2778_v7 = vadd.f32 %v2777_v39, %v2776_v32  ;;  %v4759_v18 = vadd.f32 %v4758_v28, %v4757_v41  ;;  %v4760_v0 = vpop.f32.mrb[42].mxu1  ;;  %v5327_v39 = vld [vmem:[#allocation14 + $0x20] sm:$0xff]  }
 0x40c   :  { %v2786_v5 = vrot.slane %v2785_v42, 2  ;;  %v4761_v36 = vpop.f32.mrb[43].mxu1 }
 0x40d   :  { %v2779_v62 = vrot.slane %v2778_v7, 2  ;;  %v4762_v35 = vadd.f32 %v4761_v36, %v4760_v0  ;;  %v3529_v8 = vadd.f32 %v4759_v18, %v4418_v21  ;;  %4993 = vmatpush3.bf16.msra.mxu0 %v5324_v19 }
 0x40e   :  { %v2787_v60 = vadd.f32 %v2786_v5, %v2785_v42  ;;  %4994 = vmatprep.subr.bf16.mxu0 %v5565_v34 }
 0x40f   :  { %v2780_v63 = vadd.f32 %v2779_v62, %v2778_v7  ;;  %v3532_v51 = vadd.f32 %v4762_v35, %v4418_v21  ;;  %v5328_v35 = vld [vmem:[#allocation14 + $0x28] sm:$0xff]  }
 0x410   :  { %v2788_v55 = vrot.slane %v2787_v60, 1 }
 0x411   :  { %v2781_v54 = vrot.slane %v2780_v63, 1  ;;  %4995 = vmatpush3.bf16.msra.mxu0 %v5325_v27 }
 0x412   :  { %v2789_v43 = vadd.f32 %v2788_v55, %v2787_v60  ;;  %4996 = vmatprep.subr.bf16.mxu0 %v5565_v34 }
 0x413   :  { %v2782_v2 = vadd.f32 %v2781_v54, %v2780_v63 }
 0x414   :  { %v2791_v3 = vmul.f32 0.0625, %v2789_v43 }
 0x415   :  { %v2790_v44 = vmul.f32 0.0625, %v2782_v2  ;;  %4997 = vmatpush3.bf16.msra.mxu0 %v5326_v30 }
 0x416   :  { %4998 = vmatprep.subr.bf16.mxu0 %v5565_v34 }
 0x417   :  { %v6302_v46 = vsel %vm3753_vm10, %v2791_v3, %v2790_v44 }
 0x419   :  { %4999 = vmatpush3.bf16.msra.mxu0 %v5327_v39  ;;  %v4528_v39 = vld [vmem:[%s6349_s12] ss:$0 sm:$0xff] }
 0x41a   :  { %5000 = vmatprep.subr.bf16.mxu0 %v5565_v34 }
 0x41d   :  { %5001 = vmatpush3.bf16.msra.mxu0 %v5328_v35 }
 0x41e   :  { %5002 = vmatprep.subr.bf16.mxu0 %v5565_v34 }
 0x41f   :  { %v4779_v22 = vpop.f32.mrb[40].mxu0 }
 0x420   :  { %v4780_v12 = vpop.f32.mrb[41].mxu0 }
 0x421   :  { %v4781_v38 = vadd.f32 %v4780_v12, %v4779_v22  ;;  %v4782_v23 = vpop.f32.mrb[42].mxu0  ;;  %v4807_v52 = vpop.f32.mrb[44].mxu1 }
 0x422   :  { %v4783_v47 = vpop.f32.mrb[43].mxu0  ;;  %v4808_v13 = vpop.f32.mrb[45].mxu1 }
 0x423   :  { %v3570_v1 = vadd.f32 %v4781_v38, %v3521_v50  ;;  %v4784_v61 = vadd.f32 %v4783_v47, %v4782_v23  ;;  %v4809_v25 = vadd.f32 %v4808_v13, %v4807_v52  ;;  %v4810_v48 = vpop.f32.mrb[46].mxu1 }
 0x424   :  { %v4811_v16 = vpop.f32.mrb[47].mxu1 }
 0x425   :  { %v3573_v10 = vadd.f32 %v4784_v61, %v3524_v24  ;;  %v3619_v49 = vadd.f32 %v4809_v25, %v3570_v1  ;;  %v4812_v4 = vadd.f32 %v4811_v16, %v4810_v48 }
 0x427   :  { %v4785_v53 = vpop.f32.mrb[44].mxu0  ;;  %v3622_v59 = vadd.f32 %v4812_v4, %v3573_v10 }
 0x428   :  { %v4786_v6 = vpop.f32.mrb[45].mxu0 }
 0x429   :  { %v4787_v9 = vadd.f32 %v4786_v6, %v4785_v53  ;;  %v4788_v11 = vpop.f32.mrb[46].mxu0  ;;  %v4813_v14 = vpop.f32.mrb[48].mxu1 }
 0x42a   :  { %v4789_v40 = vpop.f32.mrb[47].mxu0  ;;  %v4814_v58 = vpop.f32.mrb[49].mxu1 }
 0x42b   :  { %v3578_v57 = vadd.f32 %v4787_v9, %v3529_v8  ;;  %v4790_v15 = vadd.f32 %v4789_v40, %v4788_v11  ;;  %v4815_v17 = vadd.f32 %v4814_v58, %v4813_v14  ;;  %v4816_v37 = vpop.f32.mrb[50].mxu1 }
 0x42c   :  { %v4817_v20 = vpop.f32.mrb[51].mxu1 }
 0x42d   :  { %v3581_v26 = vadd.f32 %v4790_v15, %v3532_v51  ;;  %v3627_v31 = vadd.f32 %v4815_v17, %v3578_v57  ;;  %v4818_v45 = vadd.f32 %v4817_v20, %v4816_v37  ;;  %v3770_v51 = vpack.c.bf16 %v6302_v46, %v6302_v46  ;;  %v4495_v46 = vld [vmem:[%s6347_s10] ss:$0 sm:$0xff]  ;;  %s5507_s10 = scalar_lea.vmem %s4235_s2, 32 }
 0x42e   :  { %p5508_p8 = scmp.ne.s32.totalorder %s4235_s2, %s5507_s10  ;;  %p5513_p10 = scmp.lt.s32.totalorder %s5507_s10, %s5507_s10 }
 0x42f   :  { %v3630_v29 = vadd.f32 %v4818_v45, %v3581_v26  ;;  %v5329_v26 = vld [vmem:[#allocation14 + $0x30] sm:$0xff]  }
 0x430   :  { %5003 = vmatpush3.bf16.msra.mxu0 %v5329_v26  ;;  %p5514_p11 = por %p5513_p10, %p5512_p9 }
 0x431   :  { %5004 = vmatprep.subr.bf16.mxu0 %v5565_v34 }
 0x432   :  { %p5515_p12 = pnand %p5514_p11, %p5508_p8 }
 0x43f   :  { %v4835_v32 = vpop.f32.mrb[48].mxu0 }
 0x440   :  { %v4836_v56 = vpop.f32.mrb[49].mxu0 }
 0x441   :  { %v4837_v41 = vadd.f32 %v4836_v56, %v4835_v32  ;;  %v4838_v42 = vpop.f32.mrb[50].mxu0  ;;  %v4988_v28 = vpop.f32.mrb[52].mxu1 }
 0x442   :  { %v4839_v7 = vpop.f32.mrb[51].mxu0  ;;  %v3716_v18 = vpop.f32.mrb[53].mxu1 }
 0x443   :  { %v4840_v0 = vadd.f32 %v4839_v7, %v4838_v42  ;;  %v3668_v5 = vadd.f32 %v4837_v41, %v3619_v49  ;;  %v4989_v36 = vpop.f32.mrb[54].mxu1 }
 0x444   :  { %v3719_v62 = vpop.f32.mrb[55].mxu1 }
 0x445   :  { %v3717_v60 = vadd.f32 %v3716_v18, %v3668_v5  ;;  %v3671_v63 = vadd.f32 %v4840_v0, %v3622_v59 }
 0x447   :  { %v4841_v55 = vpop.f32.mrb[52].mxu0  ;;  %v3720_v54 = vadd.f32 %v3719_v62, %v3671_v63  ;;  %v3731_v44 = vmax.f32 %v3717_v60, 0.0 }
 0x448   :  { %v4842_v43 = vpop.f32.mrb[53].mxu0 }
 0x449   :  { %v4843_v2 = vadd.f32 %v4842_v43, %v4841_v55  ;;  %v4844_v3 = vpop.f32.mrb[54].mxu0  ;;  %v3732_v21 = vmax.f32 %v3720_v54, 0.0 }
 0x44a   :  { %v4845_v22 = vpop.f32.mrb[55].mxu0 }
 0x44b   :  { %v4846_v12 = vadd.f32 %v4845_v22, %v4844_v3  ;;  %v3676_v50 = vadd.f32 %v4843_v2, %v3627_v31  ;;  %v3735_v38 = vadd.f32 %v3732_v21, %v3731_v44  ;;  %v5330_v31 = vld [vmem:[#allocation14 + $0x38] sm:$0xff]  }
 0x44c   :  { %5005 = vmatpush3.bf16.msra.mxu0 %v5330_v31 }
 0x44d   :  { %v3725_v23 = vadd.f32 %v4988_v28, %v3676_v50  ;;  %v3679_v52 = vadd.f32 %v4846_v12, %v3630_v29  ;;  %v3736_v47 = vrot.slane %v3735_v38, 4 }
 0x44f   :  { %v3728_v13 = vadd.f32 %v4989_v36, %v3679_v52  ;;  %v3737_v24 = vadd.f32 %v3736_v47, %v3735_v38  ;;  %v3733_v1 = vmax.f32 %v3725_v23, 0.0 }
 0x451   :  { %v3734_v61 = vmax.f32 %v3728_v13, 0.0  ;;  %v3738_v25 = vrot.slane %v3737_v24, 2 }
 0x453   :  { %v3742_v48 = vadd.f32 %v3734_v61, %v3733_v1  ;;  %v3739_v16 = vadd.f32 %v3738_v25, %v3737_v24 }
 0x455   :  { %v3743_v10 = vrot.slane %v3742_v48, 4  ;;  %v3740_v4 = vrot.slane %v3739_v16, 1 }
 0x457   :  { %v3744_v49 = vadd.f32 %v3743_v10, %v3742_v48  ;;  %v3741_v6 = vadd.f32 %v3740_v4, %v3739_v16 }
 0x459   :  { %v3745_v53 = vrot.slane %v3744_v49, 2  ;;  %v3749_v11 = vmul.f32 0.0625, %v3741_v6 }
 0x45b   :  { %v3746_v59 = vadd.f32 %v3745_v53, %v3744_v49 }
 0x45d   :  { %v3747_v8 = vrot.slane %v3746_v59, 1 }
 0x45f   :  { %v3748_v9 = vadd.f32 %v3747_v8, %v3746_v59 }
 0x461   :  { %v3750_v14 = vmul.f32 0.0625, %v3748_v9 }
 0x463   :  { %v3766_v40 = vsel %vm3753_vm10, %v3750_v14, %v3749_v11 }
 0x464   :  { %v3771_v58 = vpack.c.bf16 %v3766_v40, %v3766_v40 }
 0x466   :  { %4107 = vmatprep.mubr.bf16.mxu1 %v3771_v58 }
 0x467   :  { %4108 = vmatmul.mubr.bf16.vlgmr.msra.gmra.mrb[56].mxu1 %v3770_v51 }
 0x4ae   :  { %v4873_v57 = vpop.f32.mrb[56].mxu0 }
 0x4af   :  { %v4874_v15 = vpop.f32.mrb[57].mxu0 }
 0x4b0   :  { %v4875_v17 = vadd.f32 %v4874_v15, %v4873_v57  ;;  %v4876_v37 = vpop.f32.mrb[58].mxu0 }
 0x4b1   :  { %v4877_v20 = vpop.f32.mrb[59].mxu0 }
 0x4b2   :  { %v4070_v33 = vadd.f32 %v4875_v17, %v4495_v46 }
 0x53a   :  { %v4895_v45 = vpop.f32.mrb[56].mxu1 }
 0x53b   :  { %v4896_v29 = vpop.f32.mrb[57].mxu1 }
 0x53c   :  { %v4897_v19 = vadd.f32 %v4896_v29, %v4895_v45  ;;  %v4898_v27 = vpop.f32.mrb[58].mxu1 }
 0x53d   :  { %v4899_v30 = vpop.f32.mrb[59].mxu1 }
 0x53e   :  { %v4110_v32 = vadd.f32 %v4897_v19, %v4070_v33 }
 0x540   :  { %v4115_v56 = vpack.c.bf16 %v4110_v32, %v4110_v32 }
 0x542   :  { %5007 = vmatmul.mubr.bf16.vlgmr.msra.gmra.mrb[60].mxu0 %v4115_v56 }
 0x615   :  { %v4221_v34 = vpop.f32.mrb[60].mxu0 }
 0x616   :  { %v4222_v41 = vadd.f32 %v4528_v39, %v4221_v34  ;;  %v5008_v42 = vpop.f32.mrb[61].mxu0 }
 0x617   :  { %v4224_v28 = vpop.f32.mrb[62].mxu0 }
 0x618   :  { %4227 = vst [vmem:[#allocation16] sm:$0x3] %v4222_v41  ;;  %v5009_v7 = vpop.f32.mrb[63].mxu0 }
 0x619   :  { %5518 = shalt.err (!%p5515_p12)
}
 0x61a   :  { %s5519_s12 = scalar_lea.hbm %s6350_s13, 32 }
 0x61b   :  { %p5520_p13 = scmp.ne.s32.totalorder %s6350_s13, %s5519_s12  ;;  %p5523_p0 = scmp.lt.u32.totalorder %s5519_s12, %s6350_s13 }
 0x61d   :  { %p5525_p1 = pnand %p5523_p0, %p5520_p13 }
 0x61f   :  { %5528 = shalt.err (!%p5525_p1)
}
 0x620   :  { %4237 = dma.vmem_to_hbm [thread:$0]  %s4235_s2, 32, %s6350_s13, [#allocation4]  }
 0x621   :  { %5539 = dma.done.wait [#allocation4], 32  }
 0x622   :  { %5540 = vsyncadd [#allocation4], 4294967264 }
 0x623   :  { %4241 = vsyncpa [#allocation3], 1 }
 0x624   :  { %4242 = vsyncpa [#allocation6], 1 }
 0x625   :  { %4243 = vsyncpa [#allocation9], 1 }
 0x626   :  { %4244 = vsyncpa [#allocation12], 1 }
 0x627   :  { %4245 = vsyncpa [#allocation15], 1 }
 0x628   :  { %4246 = vsyncpa [#allocation4], 1 }

</bundles_post_ra>
